<compile_context>
chip_gen: v5e
topology: v5e:2x2
jax: 0.10.0
libtpu: 0.0.40
codegen_flags: <defaults>
</compile_context>

<pallas_src>
import numpy as np

import jax
import jax.numpy as jnp
from jax import lax
from jax.experimental import pallas as pl
from jax.experimental.pallas import tpu as pltpu

LATENT_DIM = 16


# --------------------------------- kernel -----------------------------------

def _decoder_kernel(z_ref, fcw_ref, fcb_ref, s1_ref, w1r_ref, b1_ref,
                    s2_ref, w2r_ref, b2_ref, o_ref, xcore_ref):
    f32 = jnp.float32

    # ---- Stage 1: fc + ReLU.  Row u of the (7, 7*64) activation map is its own small
    # matmul, so the (1, 3136) fc output never needs a cross-lane reshape. ----
    zrow = z_ref[0]                                                     # (1, 16)
    for u in range(7):
        hu = jnp.dot(zrow, fcw_ref[u], preferred_element_type=f32)      # (1, 448)
        xcore_ref[u:u + 1, :] = jnp.maximum(hu + fcb_ref[u], 0.0)
    x = xcore_ref[...]                                                  # (7, 448) = (H, W*Cin)

    # ---- Stage 2: ConvTranspose2d(64->32, 4, 2, 1) + ReLU, pure-MXU form. ----
    acc1 = jnp.zeros((14, 448), f32)
    for t in range(4):                                                  # t = 2*ph + dh
        tmp = jnp.dot(x, w1r_ref[t], preferred_element_type=f32)        # (7, 448)
        acc1 += jnp.dot(s1_ref[t], tmp, preferred_element_type=f32)     # (14, 448)
    y1 = jnp.maximum(acc1 + b1_ref[...], 0.0)                           # (14, 448) = (H, W*C)

    # ---- Stage 3: ConvTranspose2d(32->1, 4, 2, 1) + sigmoid, output already (28, 28). ----
    acc2 = jnp.zeros((28, 28), f32)
    for t in range(4):
        tmp = jnp.dot(y1, w2r_ref[t], preferred_element_type=f32)       # (14, 28)
        acc2 += jnp.dot(s2_ref[t], tmp, preferred_element_type=f32)     # (28, 28)
    o_ref[0, 0] = jax.nn.sigmoid(acc2 + b2_ref[0, 0])


# -------------------------------- wrapper ------------------------------------

def _const_spec(shape):
    n = len(shape)
    return pl.BlockSpec(shape, lambda b, _n=n: (0,) * _n)


def decoder_forward(z, kp):
    B = z.shape[0]
    z3 = z.reshape(B, 1, LATENT_DIM)
    return pl.pallas_call(
        _decoder_kernel,
        out_shape=jax.ShapeDtypeStruct((B, 1, 28, 28), jnp.float32),
        grid=(B,),
        in_specs=[
            pl.BlockSpec((1, 1, LATENT_DIM), lambda b: (b, 0, 0)),
            _const_spec(kp["fcw"].shape), _const_spec(kp["fcb"].shape),
            _const_spec(kp["s1"].shape), _const_spec(kp["w1r"].shape),
            _const_spec(kp["b1"].shape),
            _const_spec(kp["s2"].shape), _const_spec(kp["w2r"].shape),
            _const_spec(kp["b2"].shape),
        ],
        out_specs=pl.BlockSpec((1, 1, 28, 28), lambda b: (b, 0, 0, 0)),
        scratch_shapes=[pltpu.VMEM((7, 448), jnp.float32)],
        compiler_params=pltpu.CompilerParams(dimension_semantics=("parallel",)),
    )(z3, kp["fcw"], kp["fcb"], kp["s1"], kp["w1r"], kp["b1"],
      kp["s2"], kp["w2r"], kp["b2"])


# ----------------------- host-side constant construction ---------------------

def _subpixel_matrices(w_pt, n_in):
    """ConvTranspose2d(k=4, s=2, p=1) as  out2d = sum_t S[t] @ x2d @ WR[t],
    x2d: (n_in, n_in*Ci) laid out rows=H, cols=(W, Cin);
    out2d: (2*n_in, 2*n_in*Co) laid out rows=H_out, cols=(W_out, Cout)."""
    w = np.transpose(np.asarray(w_pt), (2, 3, 0, 1))       # (Ci,Co,kh,kw) -> (kh,kw,Ci,Co)
    ci, co = w.shape[2], w.shape[3]
    n_out = 2 * n_in
    s = np.zeros((4, n_out, n_in), np.float32)
    wr = np.zeros((4, n_in * ci, n_out * co), np.float32)
    for ph in range(2):
        for dh in range(2):
            t = 2 * ph + dh
            kh = 3 - ph - 2 * dh
            for m in range(n_in):                           # height tap: out row 2m+ph <- in row r
                r = m + ph + dh - 1
                if 0 <= r < n_in:
                    s[t, 2 * m + ph, r] = 1.0
            for ox in range(n_out):                         # width taps live in the Toeplitz weight
                pw = ox % 2
                n = (ox - pw) // 2
                for dw in range(2):
                    kw = 3 - pw - 2 * dw
                    vv = n + pw + dw - 1
                    if 0 <= vv < n_in:
                        wr[t, vv * ci:(vv + 1) * ci, ox * co:(ox + 1) * co] += w[kh, kw]
    return jnp.asarray(s), jnp.asarray(wr)


def prepare_params(p):
    """One-time repack of PyTorch-layout parameters into the kernel's constant operands."""
    # fc: weight (3136,16) rows ordered c*49+u*7+v (the .view(-1,64,7,7) CHW order).
    # Kernel wants, per spatial row u, a (16, 448) block with columns ordered (v, c).
    fcw = np.asarray(p["fc_w"]).reshape(64, 7, 7, LATENT_DIM)        # [c,u,v,k]
    fcw3 = fcw.transpose(1, 3, 2, 0).reshape(7, LATENT_DIM, 7 * 64)  # [u,k,(v,c)]
    fcb = np.asarray(p["fc_b"]).reshape(64, 7, 7)                    # [c,u,v]
    fcb3 = fcb.transpose(1, 2, 0).reshape(7, 1, 7 * 64)              # [u,1,(v,c)]

    s1, w1r = _subpixel_matrices(p["deconv1_w"], 7)    # (4,14,7), (4,448,448)
    s2, w2r = _subpixel_matrices(p["deconv2_w"], 14)   # (4,28,14), (4,448,28)

    b1 = np.tile(np.asarray(p["deconv1_b"]), 14).reshape(1, 448)     # (1, W_out*Cout)
    b2 = np.asarray(p["deconv2_b"]).reshape(1, 1)

    return {"fcw": jnp.asarray(fcw3), "fcb": jnp.asarray(fcb3),
            "s1": s1, "w1r": w1r, "b1": jnp.asarray(b1),
            "s2": s2, "w2r": w2r, "b2": jnp.asarray(b2)}


# ------------------------------ params / reference ---------------------------

def init_params(key):
    """Parameters in the exact PyTorch layouts of the reference nn.Module."""
    ks = jax.random.split(key, 6)
    w = lambda k, s: 0.05 * jax.random.normal(k, s, dtype=jnp.float32)
    return {
        "fc_w": w(ks[0], (64 * 7 * 7, LATENT_DIM)),    # nn.Linear.weight (out, in)
        "fc_b": w(ks[1], (64 * 7 * 7,)),
        "deconv1_w": w(ks[2], (64, 32, 4, 4)),         # ConvTranspose2d.weight (Cin, Cout, kH, kW)
        "deconv1_b": w(ks[3], (32,)),
        "deconv2_w": w(ks[4], (32, 1, 4, 4)),
        "deconv2_b": w(ks[5], (1,)),
    }


def ref_forward(z, p):
    """Pure-JAX reference mirroring the PyTorch module (PyTorch weight layouts)."""
    dn = ("NHWC", "HWIO", "NHWC")

    def deconv(x, w_pt, b, stride, pad):
        w = jnp.transpose(w_pt, (2, 3, 0, 1))          # (Ci,Co,kh,kw) -> HWIO
        k = w.shape[0]
        pp = k - 1 - pad
        return lax.conv_general_dilated(x, w[::-1, ::-1, :, :], (1, 1),
                                        ((pp, pp), (pp, pp)),
                                        lhs_dilation=(stride, stride),
                                        dimension_numbers=dn) + b

    h = jax.nn.relu(z @ p["fc_w"].T + p["fc_b"])
    x = h.reshape(-1, 64, 7, 7).transpose(0, 2, 3, 1)              # NCHW view -> NHWC
    y1 = jax.nn.relu(deconv(x, p["deconv1_w"], p["deconv1_b"], 2, 1))
    y2 = jax.nn.sigmoid(deconv(y1, p["deconv2_w"], p["deconv2_b"], 2, 1))
    return jnp.transpose(y2, (0, 3, 1, 2))                         # NHWC -> NCHW (B,1,28,28)


# ----------------------------------- main ------------------------------------

if __name__ == "__main__":
    key = jax.random.PRNGKey(0)
    pkey, zkey = jax.random.split(key)
    params = init_params(pkey)
    kparams = prepare_params(params)
    z = jax.random.normal(zkey, (2, LATENT_DIM), dtype=jnp.float32)

    recon = jax.jit(decoder_forward)(z, kparams)
    jax.block_until_ready(recon)

    assert recon.shape == (2, 1, 28, 28)

    ref = ref_forward(z, params)
    err = float(jnp.max(jnp.abs(recon - ref)))
    assert jnp.allclose(recon, ref, atol=2e-3, rtol=2e-3), f"max abs err {err}"

    print("KERNEL_OK")
</pallas_src>

<mosaic_0001>
module attributes {stable_mosaic.version = 11 : i64} {
  func.func @_decoder_kernel(%arg0: i32, %arg1: memref<1x1x16xf32, #tpu.memory_space<vmem>>, %arg2: memref<7x16x448xf32, #tpu.memory_space<vmem>>, %arg3: memref<7x1x448xf32, #tpu.memory_space<vmem>>, %arg4: memref<4x14x7xf32, #tpu.memory_space<vmem>>, %arg5: memref<4x448x448xf32, #tpu.memory_space<vmem>>, %arg6: memref<1x448xf32, #tpu.memory_space<vmem>>, %arg7: memref<4x28x14xf32, #tpu.memory_space<vmem>>, %arg8: memref<4x448x28xf32, #tpu.memory_space<vmem>>, %arg9: memref<1x1xf32, #tpu.memory_space<vmem>>, %arg10: memref<1x1x28x28xf32, #tpu.memory_space<vmem>>, %arg11: memref<7x448xf32, #tpu.memory_space<vmem>>) attributes {dimension_semantics = [#tpu.dimension_semantics<parallel>], iteration_bounds = array<i64: 2>, scalar_prefetch = 0 : i64, scratch_operands = 1 : i64, tpu.core_type = #tpu.core_type<tc>, window_params = [{transform_indices = @transform_0, window_bounds = array<i64: 1, 1, 16>}, {pipeline_mode = #tpu.pipeline_mode<synchronous>, transform_indices = @transform_1, window_bounds = array<i64: 7, 16, 448>}, {pipeline_mode = #tpu.pipeline_mode<synchronous>, transform_indices = @transform_2, window_bounds = array<i64: 7, 1, 448>}, {pipeline_mode = #tpu.pipeline_mode<synchronous>, transform_indices = @transform_3, window_bounds = array<i64: 4, 14, 7>}, {pipeline_mode = #tpu.pipeline_mode<synchronous>, transform_indices = @transform_4, window_bounds = array<i64: 4, 448, 448>}, {pipeline_mode = #tpu.pipeline_mode<synchronous>, transform_indices = @transform_5, window_bounds = array<i64: 1, 448>}, {pipeline_mode = #tpu.pipeline_mode<synchronous>, transform_indices = @transform_6, window_bounds = array<i64: 4, 28, 14>}, {pipeline_mode = #tpu.pipeline_mode<synchronous>, transform_indices = @transform_7, window_bounds = array<i64: 4, 448, 28>}, {pipeline_mode = #tpu.pipeline_mode<synchronous>, transform_indices = @transform_8, window_bounds = array<i64: 1, 1>}, {transform_indices = @transform_9, window_bounds = array<i64: 1, 1, 28, 28>}]} {
    %c0 = arith.constant 0 : index
    %c0_0 = arith.constant 0 : index
    %c0_1 = arith.constant 0 : index
    %0 = vector.load %arg1[%c0, %c0_0, %c0_1] : memref<1x1x16xf32, #tpu.memory_space<vmem>>, vector<1x1x16xf32>
    %1 = vector.shape_cast %0 : vector<1x1x16xf32> to vector<1x16xf32>
    %c0_2 = arith.constant 0 : index
    %c0_3 = arith.constant 0 : index
    %c0_4 = arith.constant 0 : index
    %2 = vector.load %arg2[%c0_2, %c0_3, %c0_4] : memref<7x16x448xf32, #tpu.memory_space<vmem>>, vector<1x16x448xf32>
    %3 = vector.shape_cast %2 : vector<1x16x448xf32> to vector<16x448xf32>
    %cst = arith.constant dense<0.000000e+00> : vector<1x448xf32>
    %4 = tpu.matmul %1, %3, %cst {dimension_numbers = #tpu.dot_dimension_numbers<[1], [0], [0], [1], [0, 0, 1, 1], [], []>} : vector<1x16xf32>, vector<16x448xf32>, vector<1x448xf32> -> vector<1x448xf32>
    %c0_5 = arith.constant 0 : index
    %c0_6 = arith.constant 0 : index
    %c0_7 = arith.constant 0 : index
    %5 = vector.load %arg3[%c0_5, %c0_6, %c0_7] : memref<7x1x448xf32, #tpu.memory_space<vmem>>, vector<1x1x448xf32>
    %6 = vector.shape_cast %5 : vector<1x1x448xf32> to vector<1x448xf32>
    %7 = arith.addf %4, %6 : vector<1x448xf32>
    %cst_8 = arith.constant 0.000000e+00 : f32
    %8 = vector.broadcast %cst_8 : f32 to vector<1x448xf32>
    %9 = arith.maximumf %7, %8 : vector<1x448xf32>
    %c0_9 = arith.constant 0 : index
    %c0_10 = arith.constant 0 : index
    %10 = vector.load %arg11[%c0_9, %c0_10] : memref<7x448xf32, #tpu.memory_space<vmem>>, vector<1x448xf32>
    tpu.vector_store %arg11[%c0_9, %c0_10], %9 {strides = array<i32>} : memref<7x448xf32, #tpu.memory_space<vmem>>, vector<1x448xf32>,
    %c1 = arith.constant 1 : index
    %c0_11 = arith.constant 0 : index
    %c0_12 = arith.constant 0 : index
    %11 = vector.load %arg2[%c1, %c0_11, %c0_12] : memref<7x16x448xf32, #tpu.memory_space<vmem>>, vector<1x16x448xf32>
    %12 = vector.shape_cast %11 : vector<1x16x448xf32> to vector<16x448xf32>
    %cst_13 = arith.constant dense<0.000000e+00> : vector<1x448xf32>
    %13 = tpu.matmul %1, %12, %cst_13 {dimension_numbers = #tpu.dot_dimension_numbers<[1], [0], [0], [1], [0, 0, 1, 1], [], []>} : vector<1x16xf32>, vector<16x448xf32>, vector<1x448xf32> -> vector<1x448xf32>
    %c1_14 = arith.constant 1 : index
    %c0_15 = arith.constant 0 : index
    %c0_16 = arith.constant 0 : index
    %14 = vector.load %arg3[%c1_14, %c0_15, %c0_16] : memref<7x1x448xf32, #tpu.memory_space<vmem>>, vector<1x1x448xf32>
    %15 = vector.shape_cast %14 : vector<1x1x448xf32> to vector<1x448xf32>
    %16 = arith.addf %13, %15 : vector<1x448xf32>
    %cst_17 = arith.constant 0.000000e+00 : f32
    %17 = vector.broadcast %cst_17 : f32 to vector<1x448xf32>
    %18 = arith.maximumf %16, %17 : vector<1x448xf32>
    %c1_18 = arith.constant 1 : index
    %c0_19 = arith.constant 0 : index
    %19 = vector.load %arg11[%c1_18, %c0_19] : memref<7x448xf32, #tpu.memory_space<vmem>>, vector<1x448xf32>
    tpu.vector_store %arg11[%c1_18, %c0_19], %18 {strides = array<i32>} : memref<7x448xf32, #tpu.memory_space<vmem>>, vector<1x448xf32>,
    %c2 = arith.constant 2 : index
    %c0_20 = arith.constant 0 : index
    %c0_21 = arith.constant 0 : index
    %20 = vector.load %arg2[%c2, %c0_20, %c0_21] : memref<7x16x448xf32, #tpu.memory_space<vmem>>, vector<1x16x448xf32>
    %21 = vector.shape_cast %20 : vector<1x16x448xf32> to vector<16x448xf32>
    %cst_22 = arith.constant dense<0.000000e+00> : vector<1x448xf32>
    %22 = tpu.matmul %1, %21, %cst_22 {dimension_numbers = #tpu.dot_dimension_numbers<[1], [0], [0], [1], [0, 0, 1, 1], [], []>} : vector<1x16xf32>, vector<16x448xf32>, vector<1x448xf32> -> vector<1x448xf32>
    %c2_23 = arith.constant 2 : index
    %c0_24 = arith.constant 0 : index
    %c0_25 = arith.constant 0 : index
    %23 = vector.load %arg3[%c2_23, %c0_24, %c0_25] : memref<7x1x448xf32, #tpu.memory_space<vmem>>, vector<1x1x448xf32>
    %24 = vector.shape_cast %23 : vector<1x1x448xf32> to vector<1x448xf32>
    %25 = arith.addf %22, %24 : vector<1x448xf32>
    %cst_26 = arith.constant 0.000000e+00 : f32
    %26 = vector.broadcast %cst_26 : f32 to vector<1x448xf32>
    %27 = arith.maximumf %25, %26 : vector<1x448xf32>
    %c2_27 = arith.constant 2 : index
    %c0_28 = arith.constant 0 : index
    %28 = vector.load %arg11[%c2_27, %c0_28] : memref<7x448xf32, #tpu.memory_space<vmem>>, vector<1x448xf32>
    tpu.vector_store %arg11[%c2_27, %c0_28], %27 {strides = array<i32>} : memref<7x448xf32, #tpu.memory_space<vmem>>, vector<1x448xf32>,
    %c3 = arith.constant 3 : index
    %c0_29 = arith.constant 0 : index
    %c0_30 = arith.constant 0 : index
    %29 = vector.load %arg2[%c3, %c0_29, %c0_30] : memref<7x16x448xf32, #tpu.memory_space<vmem>>, vector<1x16x448xf32>
    %30 = vector.shape_cast %29 : vector<1x16x448xf32> to vector<16x448xf32>
    %cst_31 = arith.constant dense<0.000000e+00> : vector<1x448xf32>
    %31 = tpu.matmul %1, %30, %cst_31 {dimension_numbers = #tpu.dot_dimension_numbers<[1], [0], [0], [1], [0, 0, 1, 1], [], []>} : vector<1x16xf32>, vector<16x448xf32>, vector<1x448xf32> -> vector<1x448xf32>
    %c3_32 = arith.constant 3 : index
    %c0_33 = arith.constant 0 : index
    %c0_34 = arith.constant 0 : index
    %32 = vector.load %arg3[%c3_32, %c0_33, %c0_34] : memref<7x1x448xf32, #tpu.memory_space<vmem>>, vector<1x1x448xf32>
    %33 = vector.shape_cast %32 : vector<1x1x448xf32> to vector<1x448xf32>
    %34 = arith.addf %31, %33 : vector<1x448xf32>
    %cst_35 = arith.constant 0.000000e+00 : f32
    %35 = vector.broadcast %cst_35 : f32 to vector<1x448xf32>
    %36 = arith.maximumf %34, %35 : vector<1x448xf32>
    %c3_36 = arith.constant 3 : index
    %c0_37 = arith.constant 0 : index
    %37 = vector.load %arg11[%c3_36, %c0_37] : memref<7x448xf32, #tpu.memory_space<vmem>>, vector<1x448xf32>
    tpu.vector_store %arg11[%c3_36, %c0_37], %36 {strides = array<i32>} : memref<7x448xf32, #tpu.memory_space<vmem>>, vector<1x448xf32>,
    %c4 = arith.constant 4 : index
    %c0_38 = arith.constant 0 : index
    %c0_39 = arith.constant 0 : index
    %38 = vector.load %arg2[%c4, %c0_38, %c0_39] : memref<7x16x448xf32, #tpu.memory_space<vmem>>, vector<1x16x448xf32>
    %39 = vector.shape_cast %38 : vector<1x16x448xf32> to vector<16x448xf32>
    %cst_40 = arith.constant dense<0.000000e+00> : vector<1x448xf32>
    %40 = tpu.matmul %1, %39, %cst_40 {dimension_numbers = #tpu.dot_dimension_numbers<[1], [0], [0], [1], [0, 0, 1, 1], [], []>} : vector<1x16xf32>, vector<16x448xf32>, vector<1x448xf32> -> vector<1x448xf32>
    %c4_41 = arith.constant 4 : index
    %c0_42 = arith.constant 0 : index
    %c0_43 = arith.constant 0 : index
    %41 = vector.load %arg3[%c4_41, %c0_42, %c0_43] : memref<7x1x448xf32, #tpu.memory_space<vmem>>, vector<1x1x448xf32>
    %42 = vector.shape_cast %41 : vector<1x1x448xf32> to vector<1x448xf32>
    %43 = arith.addf %40, %42 : vector<1x448xf32>
    %cst_44 = arith.constant 0.000000e+00 : f32
    %44 = vector.broadcast %cst_44 : f32 to vector<1x448xf32>
    %45 = arith.maximumf %43, %44 : vector<1x448xf32>
    %c4_45 = arith.constant 4 : index
    %c0_46 = arith.constant 0 : index
    %46 = vector.load %arg11[%c4_45, %c0_46] : memref<7x448xf32, #tpu.memory_space<vmem>>, vector<1x448xf32>
    tpu.vector_store %arg11[%c4_45, %c0_46], %45 {strides = array<i32>} : memref<7x448xf32, #tpu.memory_space<vmem>>, vector<1x448xf32>,
    %c5 = arith.constant 5 : index
    %c0_47 = arith.constant 0 : index
    %c0_48 = arith.constant 0 : index
    %47 = vector.load %arg2[%c5, %c0_47, %c0_48] : memref<7x16x448xf32, #tpu.memory_space<vmem>>, vector<1x16x448xf32>
    %48 = vector.shape_cast %47 : vector<1x16x448xf32> to vector<16x448xf32>
    %cst_49 = arith.constant dense<0.000000e+00> : vector<1x448xf32>
    %49 = tpu.matmul %1, %48, %cst_49 {dimension_numbers = #tpu.dot_dimension_numbers<[1], [0], [0], [1], [0, 0, 1, 1], [], []>} : vector<1x16xf32>, vector<16x448xf32>, vector<1x448xf32> -> vector<1x448xf32>
    %c5_50 = arith.constant 5 : index
    %c0_51 = arith.constant 0 : index
    %c0_52 = arith.constant 0 : index
    %50 = vector.load %arg3[%c5_50, %c0_51, %c0_52] : memref<7x1x448xf32, #tpu.memory_space<vmem>>, vector<1x1x448xf32>
    %51 = vector.shape_cast %50 : vector<1x1x448xf32> to vector<1x448xf32>
    %52 = arith.addf %49, %51 : vector<1x448xf32>
    %cst_53 = arith.constant 0.000000e+00 : f32
    %53 = vector.broadcast %cst_53 : f32 to vector<1x448xf32>
    %54 = arith.maximumf %52, %53 : vector<1x448xf32>
    %c5_54 = arith.constant 5 : index
    %c0_55 = arith.constant 0 : index
    %55 = vector.load %arg11[%c5_54, %c0_55] : memref<7x448xf32, #tpu.memory_space<vmem>>, vector<1x448xf32>
    tpu.vector_store %arg11[%c5_54, %c0_55], %54 {strides = array<i32>} : memref<7x448xf32, #tpu.memory_space<vmem>>, vector<1x448xf32>,
    %c6 = arith.constant 6 : index
    %c0_56 = arith.constant 0 : index
    %c0_57 = arith.constant 0 : index
    %56 = vector.load %arg2[%c6, %c0_56, %c0_57] : memref<7x16x448xf32, #tpu.memory_space<vmem>>, vector<1x16x448xf32>
    %57 = vector.shape_cast %56 : vector<1x16x448xf32> to vector<16x448xf32>
    %cst_58 = arith.constant dense<0.000000e+00> : vector<1x448xf32>
    %58 = tpu.matmul %1, %57, %cst_58 {dimension_numbers = #tpu.dot_dimension_numbers<[1], [0], [0], [1], [0, 0, 1, 1], [], []>} : vector<1x16xf32>, vector<16x448xf32>, vector<1x448xf32> -> vector<1x448xf32>
    %c6_59 = arith.constant 6 : index
    %c0_60 = arith.constant 0 : index
    %c0_61 = arith.constant 0 : index
    %59 = vector.load %arg3[%c6_59, %c0_60, %c0_61] : memref<7x1x448xf32, #tpu.memory_space<vmem>>, vector<1x1x448xf32>
    %60 = vector.shape_cast %59 : vector<1x1x448xf32> to vector<1x448xf32>
    %61 = arith.addf %58, %60 : vector<1x448xf32>
    %cst_62 = arith.constant 0.000000e+00 : f32
    %62 = vector.broadcast %cst_62 : f32 to vector<1x448xf32>
    %63 = arith.maximumf %61, %62 : vector<1x448xf32>
    %c6_63 = arith.constant 6 : index
    %c0_64 = arith.constant 0 : index
    %64 = vector.load %arg11[%c6_63, %c0_64] : memref<7x448xf32, #tpu.memory_space<vmem>>, vector<1x448xf32>
    tpu.vector_store %arg11[%c6_63, %c0_64], %63 {strides = array<i32>} : memref<7x448xf32, #tpu.memory_space<vmem>>, vector<1x448xf32>,
    %c0_65 = arith.constant 0 : index
    %c0_66 = arith.constant 0 : index
    %65 = vector.load %arg11[%c0_65, %c0_66] : memref<7x448xf32, #tpu.memory_space<vmem>>, vector<7x448xf32>
    %cst_67 = arith.constant 0.000000e+00 : f32
    %66 = vector.broadcast %cst_67 : f32 to vector<14x448xf32>
    %c0_68 = arith.constant 0 : index
    %c0_69 = arith.constant 0 : index
    %c0_70 = arith.constant 0 : index
    %67 = vector.load %arg5[%c0_68, %c0_69, %c0_70] : memref<4x448x448xf32, #tpu.memory_space<vmem>>, vector<1x448x448xf32>
    %68 = vector.shape_cast %67 : vector<1x448x448xf32> to vector<448x448xf32>
    %cst_71 = arith.constant dense<0.000000e+00> : vector<7x448xf32>
    %69 = tpu.matmul %65, %68, %cst_71 {dimension_numbers = #tpu.dot_dimension_numbers<[1], [0], [0], [1], [0, 0, 1, 1], [], []>} : vector<7x448xf32>, vector<448x448xf32>, vector<7x448xf32> -> vector<7x448xf32>
    %c0_72 = arith.constant 0 : index
    %c0_73 = arith.constant 0 : index
    %c0_74 = arith.constant 0 : index
    %70 = vector.load %arg4[%c0_72, %c0_73, %c0_74] : memref<4x14x7xf32, #tpu.memory_space<vmem>>, vector<1x14x7xf32>
    %71 = vector.shape_cast %70 : vector<1x14x7xf32> to vector<14x7xf32>
    %cst_75 = arith.constant dense<0.000000e+00> : vector<14x448xf32>
    %72 = tpu.matmul %71, %69, %cst_75 {dimension_numbers = #tpu.dot_dimension_numbers<[1], [0], [0], [1], [0, 0, 1, 1], [], []>} : vector<14x7xf32>, vector<7x448xf32>, vector<14x448xf32> -> vector<14x448xf32>
    %73 = arith.addf %66, %72 : vector<14x448xf32>
    %c1_76 = arith.constant 1 : index
    %c0_77 = arith.constant 0 : index
    %c0_78 = arith.constant 0 : index
    %74 = vector.load %arg5[%c1_76, %c0_77, %c0_78] : memref<4x448x448xf32, #tpu.memory_space<vmem>>, vector<1x448x448xf32>
    %75 = vector.shape_cast %74 : vector<1x448x448xf32> to vector<448x448xf32>
    %cst_79 = arith.constant dense<0.000000e+00> : vector<7x448xf32>
    %76 = tpu.matmul %65, %75, %cst_79 {dimension_numbers = #tpu.dot_dimension_numbers<[1], [0], [0], [1], [0, 0, 1, 1], [], []>} : vector<7x448xf32>, vector<448x448xf32>, vector<7x448xf32> -> vector<7x448xf32>
    %c1_80 = arith.constant 1 : index
    %c0_81 = arith.constant 0 : index
    %c0_82 = arith.constant 0 : index
    %77 = vector.load %arg4[%c1_80, %c0_81, %c0_82] : memref<4x14x7xf32, #tpu.memory_space<vmem>>, vector<1x14x7xf32>
    %78 = vector.shape_cast %77 : vector<1x14x7xf32> to vector<14x7xf32>
    %cst_83 = arith.constant dense<0.000000e+00> : vector<14x448xf32>
    %79 = tpu.matmul %78, %76, %cst_83 {dimension_numbers = #tpu.dot_dimension_numbers<[1], [0], [0], [1], [0, 0, 1, 1], [], []>} : vector<14x7xf32>, vector<7x448xf32>, vector<14x448xf32> -> vector<14x448xf32>
    %80 = arith.addf %73, %79 : vector<14x448xf32>
    %c2_84 = arith.constant 2 : index
    %c0_85 = arith.constant 0 : index
    %c0_86 = arith.constant 0 : index
    %81 = vector.load %arg5[%c2_84, %c0_85, %c0_86] : memref<4x448x448xf32, #tpu.memory_space<vmem>>, vector<1x448x448xf32>
    %82 = vector.shape_cast %81 : vector<1x448x448xf32> to vector<448x448xf32>
    %cst_87 = arith.constant dense<0.000000e+00> : vector<7x448xf32>
    %83 = tpu.matmul %65, %82, %cst_87 {dimension_numbers = #tpu.dot_dimension_numbers<[1], [0], [0], [1], [0, 0, 1, 1], [], []>} : vector<7x448xf32>, vector<448x448xf32>, vector<7x448xf32> -> vector<7x448xf32>
    %c2_88 = arith.constant 2 : index
    %c0_89 = arith.constant 0 : index
    %c0_90 = arith.constant 0 : index
    %84 = vector.load %arg4[%c2_88, %c0_89, %c0_90] : memref<4x14x7xf32, #tpu.memory_space<vmem>>, vector<1x14x7xf32>
    %85 = vector.shape_cast %84 : vector<1x14x7xf32> to vector<14x7xf32>
    %cst_91 = arith.constant dense<0.000000e+00> : vector<14x448xf32>
    %86 = tpu.matmul %85, %83, %cst_91 {dimension_numbers = #tpu.dot_dimension_numbers<[1], [0], [0], [1], [0, 0, 1, 1], [], []>} : vector<14x7xf32>, vector<7x448xf32>, vector<14x448xf32> -> vector<14x448xf32>
    %87 = arith.addf %80, %86 : vector<14x448xf32>
    %c3_92 = arith.constant 3 : index
    %c0_93 = arith.constant 0 : index
    %c0_94 = arith.constant 0 : index
    %88 = vector.load %arg5[%c3_92, %c0_93, %c0_94] : memref<4x448x448xf32, #tpu.memory_space<vmem>>, vector<1x448x448xf32>
    %89 = vector.shape_cast %88 : vector<1x448x448xf32> to vector<448x448xf32>
    %cst_95 = arith.constant dense<0.000000e+00> : vector<7x448xf32>
    %90 = tpu.matmul %65, %89, %cst_95 {dimension_numbers = #tpu.dot_dimension_numbers<[1], [0], [0], [1], [0, 0, 1, 1], [], []>} : vector<7x448xf32>, vector<448x448xf32>, vector<7x448xf32> -> vector<7x448xf32>
    %c3_96 = arith.constant 3 : index
    %c0_97 = arith.constant 0 : index
    %c0_98 = arith.constant 0 : index
    %91 = vector.load %arg4[%c3_96, %c0_97, %c0_98] : memref<4x14x7xf32, #tpu.memory_space<vmem>>, vector<1x14x7xf32>
    %92 = vector.shape_cast %91 : vector<1x14x7xf32> to vector<14x7xf32>
    %cst_99 = arith.constant dense<0.000000e+00> : vector<14x448xf32>
    %93 = tpu.matmul %92, %90, %cst_99 {dimension_numbers = #tpu.dot_dimension_numbers<[1], [0], [0], [1], [0, 0, 1, 1], [], []>} : vector<14x7xf32>, vector<7x448xf32>, vector<14x448xf32> -> vector<14x448xf32>
    %94 = arith.addf %87, %93 : vector<14x448xf32>
    %c0_100 = arith.constant 0 : index
    %c0_101 = arith.constant 0 : index
    %95 = vector.load %arg6[%c0_100, %c0_101] : memref<1x448xf32, #tpu.memory_space<vmem>>, vector<1x448xf32>
    %96 = vector.broadcast %95 : vector<1x448xf32> to vector<14x448xf32>
    %97 = arith.addf %94, %96 : vector<14x448xf32>
    %cst_102 = arith.constant 0.000000e+00 : f32
    %98 = vector.broadcast %cst_102 : f32 to vector<14x448xf32>
    %99 = arith.maximumf %97, %98 : vector<14x448xf32>
    %cst_103 = arith.constant 0.000000e+00 : f32
    %100 = vector.broadcast %cst_103 : f32 to vector<28x28xf32>
    %c0_104 = arith.constant 0 : index
    %c0_105 = arith.constant 0 : index
    %c0_106 = arith.constant 0 : index
    %101 = vector.load %arg8[%c0_104, %c0_105, %c0_106] : memref<4x448x28xf32, #tpu.memory_space<vmem>>, vector<1x448x28xf32>
    %102 = vector.shape_cast %101 : vector<1x448x28xf32> to vector<448x28xf32>
    %cst_107 = arith.constant dense<0.000000e+00> : vector<14x28xf32>
    %103 = tpu.matmul %99, %102, %cst_107 {dimension_numbers = #tpu.dot_dimension_numbers<[1], [0], [0], [1], [0, 0, 1, 1], [], []>} : vector<14x448xf32>, vector<448x28xf32>, vector<14x28xf32> -> vector<14x28xf32>
    %c0_108 = arith.constant 0 : index
    %c0_109 = arith.constant 0 : index
    %c0_110 = arith.constant 0 : index
    %104 = vector.load %arg7[%c0_108, %c0_109, %c0_110] : memref<4x28x14xf32, #tpu.memory_space<vmem>>, vector<1x28x14xf32>
    %105 = vector.shape_cast %104 : vector<1x28x14xf32> to vector<28x14xf32>
    %cst_111 = arith.constant dense<0.000000e+00> : vector<28x28xf32>
    %106 = tpu.matmul %105, %103, %cst_111 {dimension_numbers = #tpu.dot_dimension_numbers<[1], [0], [0], [1], [0, 0, 1, 1], [], []>} : vector<28x14xf32>, vector<14x28xf32>, vector<28x28xf32> -> vector<28x28xf32>
    %107 = arith.addf %100, %106 : vector<28x28xf32>
    %c1_112 = arith.constant 1 : index
    %c0_113 = arith.constant 0 : index
    %c0_114 = arith.constant 0 : index
    %108 = vector.load %arg8[%c1_112, %c0_113, %c0_114] : memref<4x448x28xf32, #tpu.memory_space<vmem>>, vector<1x448x28xf32>
    %109 = vector.shape_cast %108 : vector<1x448x28xf32> to vector<448x28xf32>
    %cst_115 = arith.constant dense<0.000000e+00> : vector<14x28xf32>
    %110 = tpu.matmul %99, %109, %cst_115 {dimension_numbers = #tpu.dot_dimension_numbers<[1], [0], [0], [1], [0, 0, 1, 1], [], []>} : vector<14x448xf32>, vector<448x28xf32>, vector<14x28xf32> -> vector<14x28xf32>
    %c1_116 = arith.constant 1 : index
    %c0_117 = arith.constant 0 : index
    %c0_118 = arith.constant 0 : index
    %111 = vector.load %arg7[%c1_116, %c0_117, %c0_118] : memref<4x28x14xf32, #tpu.memory_space<vmem>>, vector<1x28x14xf32>
    %112 = vector.shape_cast %111 : vector<1x28x14xf32> to vector<28x14xf32>
    %cst_119 = arith.constant dense<0.000000e+00> : vector<28x28xf32>
    %113 = tpu.matmul %112, %110, %cst_119 {dimension_numbers = #tpu.dot_dimension_numbers<[1], [0], [0], [1], [0, 0, 1, 1], [], []>} : vector<28x14xf32>, vector<14x28xf32>, vector<28x28xf32> -> vector<28x28xf32>
    %114 = arith.addf %107, %113 : vector<28x28xf32>
    %c2_120 = arith.constant 2 : index
    %c0_121 = arith.constant 0 : index
    %c0_122 = arith.constant 0 : index
    %115 = vector.load %arg8[%c2_120, %c0_121, %c0_122] : memref<4x448x28xf32, #tpu.memory_space<vmem>>, vector<1x448x28xf32>
    %116 = vector.shape_cast %115 : vector<1x448x28xf32> to vector<448x28xf32>
    %cst_123 = arith.constant dense<0.000000e+00> : vector<14x28xf32>
    %117 = tpu.matmul %99, %116, %cst_123 {dimension_numbers = #tpu.dot_dimension_numbers<[1], [0], [0], [1], [0, 0, 1, 1], [], []>} : vector<14x448xf32>, vector<448x28xf32>, vector<14x28xf32> -> vector<14x28xf32>
    %c2_124 = arith.constant 2 : index
    %c0_125 = arith.constant 0 : index
    %c0_126 = arith.constant 0 : index
    %118 = vector.load %arg7[%c2_124, %c0_125, %c0_126] : memref<4x28x14xf32, #tpu.memory_space<vmem>>, vector<1x28x14xf32>
    %119 = vector.shape_cast %118 : vector<1x28x14xf32> to vector<28x14xf32>
    %cst_127 = arith.constant dense<0.000000e+00> : vector<28x28xf32>
    %120 = tpu.matmul %119, %117, %cst_127 {dimension_numbers = #tpu.dot_dimension_numbers<[1], [0], [0], [1], [0, 0, 1, 1], [], []>} : vector<28x14xf32>, vector<14x28xf32>, vector<28x28xf32> -> vector<28x28xf32>
    %121 = arith.addf %114, %120 : vector<28x28xf32>
    %c3_128 = arith.constant 3 : index
    %c0_129 = arith.constant 0 : index
    %c0_130 = arith.constant 0 : index
    %122 = vector.load %arg8[%c3_128, %c0_129, %c0_130] : memref<4x448x28xf32, #tpu.memory_space<vmem>>, vector<1x448x28xf32>
    %123 = vector.shape_cast %122 : vector<1x448x28xf32> to vector<448x28xf32>
    %cst_131 = arith.constant dense<0.000000e+00> : vector<14x28xf32>
    %124 = tpu.matmul %99, %123, %cst_131 {dimension_numbers = #tpu.dot_dimension_numbers<[1], [0], [0], [1], [0, 0, 1, 1], [], []>} : vector<14x448xf32>, vector<448x28xf32>, vector<14x28xf32> -> vector<14x28xf32>
    %c3_132 = arith.constant 3 : index
    %c0_133 = arith.constant 0 : index
    %c0_134 = arith.constant 0 : index
    %125 = vector.load %arg7[%c3_132, %c0_133, %c0_134] : memref<4x28x14xf32, #tpu.memory_space<vmem>>, vector<1x28x14xf32>
    %126 = vector.shape_cast %125 : vector<1x28x14xf32> to vector<28x14xf32>
    %cst_135 = arith.constant dense<0.000000e+00> : vector<28x28xf32>
    %127 = tpu.matmul %126, %124, %cst_135 {dimension_numbers = #tpu.dot_dimension_numbers<[1], [0], [0], [1], [0, 0, 1, 1], [], []>} : vector<28x14xf32>, vector<14x28xf32>, vector<28x28xf32> -> vector<28x28xf32>
    %128 = arith.addf %121, %127 : vector<28x28xf32>
    %c0_136 = arith.constant 0 : index
    %c0_137 = arith.constant 0 : index
    %129 = vector.load %arg9[%c0_136, %c0_137] : memref<1x1xf32, #tpu.memory_space<vmem>>, vector<1x1xf32>
    %130 = vector.extract %129[0, 0] : f32 from vector<1x1xf32>
    %131 = vector.broadcast %130 : f32 to vector<28x28xf32>
    %132 = arith.addf %128, %131 : vector<28x28xf32>
    %133 = arith.negf %132 : vector<28x28xf32>
    %134 = math.exp %133 : vector<28x28xf32>
    %cst_138 = arith.constant 1.000000e+00 : f32
    %135 = vector.broadcast %cst_138 : f32 to vector<28x28xf32>
    %136 = arith.addf %135, %134 : vector<28x28xf32>
    %137 = arith.divf %135, %136 : vector<28x28xf32>
    %c0_139 = arith.constant 0 : index
    %c0_140 = arith.constant 0 : index
    %c0_141 = arith.constant 0 : index
    %c0_142 = arith.constant 0 : index
    %138 = vector.load %arg10[%c0_139, %c0_140, %c0_141, %c0_142] : memref<1x1x28x28xf32, #tpu.memory_space<vmem>>, vector<1x1x28x28xf32>
    %139 = vector.shape_cast %138 : vector<1x1x28x28xf32> to vector<28x28xf32>
    %140 = vector.shape_cast %137 : vector<28x28xf32> to vector<1x1x28x28xf32>
    tpu.vector_store %arg10[%c0_139, %c0_140, %c0_141, %c0_142], %140 {strides = array<i32>} : memref<1x1x28x28xf32, #tpu.memory_space<vmem>>, vector<1x1x28x28xf32>,
    return
  }
  func.func @transform_0(%arg0: i32) -> (i32, i32, i32) {
    %c0_i32 = arith.constant 0 : i32
    %c0_i32_0 = arith.constant 0 : i32
    %c0_i32_1 = arith.constant 0 : i32
    return %arg0, %c0_i32, %c0_i32_0 : i32, i32, i32
  }
  func.func @transform_1(%arg0: i32) -> (i32, i32, i32) {
    %c0_i32 = arith.constant 0 : i32
    %c0_i32_0 = arith.constant 0 : i32
    %c0_i32_1 = arith.constant 0 : i32
    %c0_i32_2 = arith.constant 0 : i32
    return %c0_i32, %c0_i32_0, %c0_i32_1 : i32, i32, i32
  }
  func.func @transform_2(%arg0: i32) -> (i32, i32, i32) {
    %c0_i32 = arith.constant 0 : i32
    %c0_i32_0 = arith.constant 0 : i32
    %c0_i32_1 = arith.constant 0 : i32
    %c0_i32_2 = arith.constant 0 : i32
    return %c0_i32, %c0_i32_0, %c0_i32_1 : i32, i32, i32
  }
  func.func @transform_3(%arg0: i32) -> (i32, i32, i32) {
    %c0_i32 = arith.constant 0 : i32
    %c0_i32_0 = arith.constant 0 : i32
    %c0_i32_1 = arith.constant 0 : i32
    %c0_i32_2 = arith.constant 0 : i32
    return %c0_i32, %c0_i32_0, %c0_i32_1 : i32, i32, i32
  }
  func.func @transform_4(%arg0: i32) -> (i32, i32, i32) {
    %c0_i32 = arith.constant 0 : i32
    %c0_i32_0 = arith.constant 0 : i32
    %c0_i32_1 = arith.constant 0 : i32
    %c0_i32_2 = arith.constant 0 : i32
    return %c0_i32, %c0_i32_0, %c0_i32_1 : i32, i32, i32
  }
  func.func @transform_5(%arg0: i32) -> (i32, i32) {
    %c0_i32 = arith.constant 0 : i32
    %c0_i32_0 = arith.constant 0 : i32
    %c0_i32_1 = arith.constant 0 : i32
    return %c0_i32, %c0_i32_0 : i32, i32
  }
  func.func @transform_6(%arg0: i32) -> (i32, i32, i32) {
    %c0_i32 = arith.constant 0 : i32
    %c0_i32_0 = arith.constant 0 : i32
    %c0_i32_1 = arith.constant 0 : i32
    %c0_i32_2 = arith.constant 0 : i32
    return %c0_i32, %c0_i32_0, %c0_i32_1 : i32, i32, i32
  }
  func.func @transform_7(%arg0: i32) -> (i32, i32, i32) {
    %c0_i32 = arith.constant 0 : i32
    %c0_i32_0 = arith.constant 0 : i32
    %c0_i32_1 = arith.constant 0 : i32
    %c0_i32_2 = arith.constant 0 : i32
    return %c0_i32, %c0_i32_0, %c0_i32_1 : i32, i32, i32
  }
  func.func @transform_8(%arg0: i32) -> (i32, i32) {
    %c0_i32 = arith.constant 0 : i32
    %c0_i32_0 = arith.constant 0 : i32
    %c0_i32_1 = arith.constant 0 : i32
    return %c0_i32, %c0_i32_0 : i32, i32
  }
  func.func @transform_9(%arg0: i32) -> (i32, i32, i32, i32) {
    %c0_i32 = arith.constant 0 : i32
    %c0_i32_0 = arith.constant 0 : i32
    %c0_i32_1 = arith.constant 0 : i32
    %c0_i32_2 = arith.constant 0 : i32
    return %arg0, %c0_i32, %c0_i32_0, %c0_i32_1 : i32, i32, i32, i32
  }
}

</mosaic_0001>

<bundles_post_ra>
// kernel: decoder_forward.1
= control target key start
LH: loop header
LB: loop body
LE: loop exit
PB: predicated region body
PF: predicated region fallthrough
CT: control target
= control target key end

     0   :  { %s7029_s0 = inlined_call_operand.hbm [shape: f32[2,1,16], index: 0, kind: input, shape index: {}]   ;;  %s7030_s1 = inlined_call_operand.hbm [shape: f32[7,16,448], index: 1, kind: input, shape index: {}]   ;;  %s7031_s2 = inlined_call_operand.hbm [shape: f32[7,1,448], index: 2, kind: input, shape index: {}]   ;;  %s7032_s3 = inlined_call_operand.vmem [shape: f32[4,14,7], index: 3, kind: input, shape index: {}]   ;;  %s7033_s4 = inlined_call_operand.hbm [shape: f32[4,448,448], index: 4, kind: input, shape index: {}]   ;;  %s7034_s5 = inlined_call_operand.hbm [shape: f32[1,448], index: 5, kind: input, shape index: {}]   ;;  %s7035_s6 = inlined_call_operand.vmem [shape: f32[4,28,14], index: 6, kind: input, shape index: {}]   ;;  %s7036_s7 = inlined_call_operand.vmem [shape: f32[4,448,28], index: 7, kind: input, shape index: {}]   ;;  %s7037_s8 = inlined_call_operand.<no memory space> [shape: f32[1,1], index: 8, kind: input, shape index: {}]   ;;  %s7038_s9 = inlined_call_operand.vmem [shape: f32[2,1,28,28], index: 9, kind: output, shape index: {}]  }
   0x1   :  { %v14_v0 = vstv %s7037_s8 }
   0x2   :  { %15 = vst [vmem:[#allocation3] sm:$0x1] %v14_v0 }
   0x3   :  { %16 = vsyncpa [#allocation5], 0 }
   0x4   :  { %18 = vsyncpa [#allocation5 + $0x1], 0 }
   0x5   :  { %19 = vsyncpa [#allocation7], 0 }
   0x6   :  { %20 = vsyncpa [#allocation10], 0  ;;  %s5623_s11 = smov 0   ;;  %s5625_s12 = smov 0  }
   0x7   :  { %s5627_s13 = smov 0   ;;  %s5629_s14 = smov 0  }
   0x8 LB: > { %s262_s16 = sshll.u32 %s7030_s1, 4  ;;  %s5647_s17 = sadd.s32 4294967295, %s5560_s14   ;;  %s5560_s14 = sphi %s5629_s14, %s7048_s14   ;;  %s5556_s13 = sphi %s5627_s13, %s7047_s13   ;;  %s5552_s12 = sphi %s5625_s12, %s7046_s12   ;;  %s5548_s11 = sphi %s5623_s11, %s7045_s11   ;;  %s263_s16 = int_to_ptr.hbm [resolvable:$true] %s262_s16 }
   0x9   : > { %p4928_p0 = scmp.ge.s32.totalorder %s5560_s14, 1  ;;  %p47_p1 = scmp.eq.s32.totalorder %s5647_s17, 0 }
   0xa   : > { %p251_p2 = scmp.lt.s32.totalorder %s5560_s14, 3  ;;  %s5562_s19 = smov [#allocation6]  }
   0xb   : > { %s264_s20 = sshll.u32 %s5562_s19, 4  ;;  %s293_s23 = sshll.u32 %s7033_s4, 4  ;;  %s265_s20 = int_to_ptr.vmem [resolvable:$true] %s264_s20  ;;  %s294_s23 = int_to_ptr.hbm [resolvable:$true] %s293_s23 }
   0xc   : > { %p5652_p3 = pnand %p4928_p0, %p251_p2  ;;  %s276_s27 = sshll.u32 %s7031_s2, 4  ;;  %s277_s27 = int_to_ptr.hbm [resolvable:$true] %s276_s27 }
   0xd   : > { %s5563_s28 = smov [#allocation9]   ;;  %s5564_s30 = smov 512  }
   0xe   : > { %p5274_p4 = pneg %p5652_p3  ;;  %s295_s29 = sshll.u32 %s5563_s28, 4  ;;  %s296_s29 = int_to_ptr.vmem [resolvable:$true] %s295_s29 }
   0xf   : > { %s5565_s10 = smov 32   ;;  %s5566_s8 = smov [#allocation8]  }
  0x10   : > { %p5663_p5 = pnand %p5274_p4, %p47_p1  ;;  %s278_s15 = sshll.u32 %s5566_s8, 4  ;;  %s279_s15 = int_to_ptr.vmem [resolvable:$true] %s278_s15 }
  0x11   : > { %s308_s22 = sshll.u32 %s7034_s5, 4  ;;  %s5682_s26 = sadd.s32 1, %s5560_s14   ;;  %s309_s22 = int_to_ptr.hbm [resolvable:$true] %s308_s22 }
  0x12   : > { %5277 = dma.hbm_to_vmem [thread:$0]  (!%p5663_p5), %s263_s16, 7168, %s265_s20, [#allocation7], %s5564_s30, %s5564_s30, %s5565_s10  }
  0x13   : > { %5283 = dma.hbm_to_vmem [thread:$0]  (!%p5663_p5), %s294_s23, 114688, %s296_s29, [#allocation10], %s5564_s30, %s5564_s30, %s5565_s10  }
  0x14   : > { %s5567_s16 = smov 64   ;;  %s5568_s20 = smov 4  }
  0x15   : > { %5280 = dma.hbm_to_vmem [thread:$0]  (!%p5663_p5), %s277_s27, 448, %s279_s15, [#allocation7], %s5567_s16, %s5567_s16, %s5568_s20  }
  0x16   : > { %s5569_s23 = smov [#allocation11]   ;;  %s33_s28 = sadd.s32 1, %s5556_s13 }
  0x17   : > { %s310_s25 = sshll.u32 %s5569_s23, 4  ;;  %s30_s29 = ssub.s32 %s5560_s14, %s5682_s26  ;;  %s311_s25 = int_to_ptr.vmem [resolvable:$true] %s310_s25 }
  0x18   : > { %5286 = dma.hbm_to_vmem [thread:$0]  (!%p5663_p5), %s309_s22, 64, %s311_s25, [#allocation10]  }
  0x19   : > { %p40_p6 = scmp.ne.s32.totalorder %s5556_s13, %s5552_s12  ;;  %p31_p7 = scmp.eq.s32.totalorder %s30_s29, 0 }
  0x1a   : > { %p41_p8 = scmp.eq.s32.totalorder %s5560_s14, 0  ;;  %p46_p9 = scmp.ne.s32.totalorder %s5552_s12, %s5548_s11 }
  0x1b   : > { %p5295_p10 = scmp.lt.s32.totalorder %s5560_s14, 2  ;;  %s330_s24 = sand.u32 1, %s5556_s13  }
  0x1c   : > { %s5694_s27 = scalar_select %p31_p7, %s5556_s13, %s33_s28  }
  0x1d   : > { %p42_p11 = por %p41_p8, %p40_p6  ;;  %p5698_p12 = por %p47_p1, %p46_p9 }
  0x1e   : > { %s336_s15 = scalar_lea.hbm %s7029_s0, %s5560_s14  ;;  %s333_s21 = scalar_lea.vmem [#allocation4], %s330_s24 }
  0x1f   : > { %s338_s19 = sshll.u32 %s336_s15, 4  ;;  %s340_s22 = sshll.u32 %s333_s21, 4  ;;  %s339_s19 = int_to_ptr.hbm [resolvable:$true] %s338_s19  ;;  %s341_s22 = int_to_ptr.vmem [resolvable:$true] %s340_s22 }
  0x20   : > { %p5707_p13 = pnand %p5295_p10, %p42_p11  ;;  %s331_s16 = scalar_lea.sflag [#allocation5], %s330_s24 }
  0x21   : > { %s5488_s20 = sshra.s32 %s339_s19, 4  ;;  %s5495_s28 = scalar_lea.hbm %s7029_s0, 2  ;;  %s5489_s20 = int_to_ptr.hbm [resolvable:$true] %s5488_s20 }
  0x22   : > { %s5490_s23 = scalar_lea.hbm %s5489_s20, 1  ;;  %p5492_p2 = pneg %p5707_p13 }
  0x23   : > { %p5491_p0 = scmp.ne.s32.totalorder %s5489_s20, %s5490_s23  ;;  %p5496_p6 = scmp.lt.s32.totalorder %s5489_s20, %s7029_s0 }
  0x24   : > { %p5497_p7 = scmp.lt.s32.totalorder %s5495_s28, %s5490_s23 }
  0x25   : > { %p5493_p4 = pnand %p5492_p2, %p5491_p0 }
  0x26   : > { %p5498_p8 = por %p5497_p7, %p5496_p6 }
  0x27   : > { %p5494_p5 = pneg %p5493_p4 }
  0x29   : > { %p5499_p9 = pnand %p5498_p8, %p5494_p5 }
  0x2b   : > { %5502 = shalt.err (!%p5499_p9)
}
  0x2c   : > { %5290 = dma.hbm_to_vmem [thread:$0]  (!%p5707_p13), %s339_s19, 16, %s341_s22, %s331_s16  }
  0x2d   : > { %349 = sbr.rel (%p5652_p3) target bundleno = 1951 (0x79f), region = 56  ;;  %s351_s24 = sand.u32 (!%p5652_p3), 1, %s5552_s12  }
  0x2e   : > { %s352_s8 = scalar_lea.sflag (!%p5652_p3), [#allocation5], %s351_s24  ;;  %s354_s15 = scalar_lea.vmem (!%p5652_p3), [#allocation4], %s351_s24 }
  0x32   : > { %5535 = dma.done.wait (%p5698_p12), %s352_s8, 16  }
  0x33   : > { %5537 = vsyncadd (%p5698_p12), %s352_s8, 4294967280 }
  0x34   : > { %5539 = dma.done.wait (%p47_p1), [#allocation7], 7616  }
  0x35   : > { %5541 = vsyncadd (%p47_p1), [#allocation7], 4294959680 }
  0x36   : > { %5543 = dma.done.wait (%p47_p1), [#allocation10], 114752  }
  0x37   : > { %5545 = vsyncadd (%p47_p1), [#allocation10], 4294852544  ;;  %v419_v1 = vld [vmem:[#allocation6 + $0x20] sm:$0xff]  ;;  %v5736_v3 = vld [vmem:[%s354_s15] sm:$0x1]  ;;  %vm433_vm0 = vcmask 130048  }
  0x38   : > { %v415_v2 = vld [vmem:[#allocation6] sm:$0xff]  ;;  %451 = vmatpush.msra.mxu3 %v419_v1  ;;  %v420_v4 = vld [vmem:[#allocation6 + $0x28] sm:$0xff]  ;;  %v421_v6 = vld [vmem:[#allocation6 + $0x30] sm:$0xff]  ;;  %vm528_vm1 = vcmask 1040384   ;;  %vm530_vm2 = vcmask 1042434   ;;  %vm532_vm3 = vcmask 1041408  }
  0x39   : > { %v416_v5 = vld [vmem:[#allocation6 + $0x8] sm:$0xff]  ;;  %471 = vmatpush.msra.mxu1 %v420_v4  ;;  %491 = vmatpush.msra.mxu2 %v421_v6  ;;  %v422_v7 = vld [vmem:[#allocation6 + $0x38] sm:$0xff]  ;;  %v417_v8 = vld [vmem:[#allocation6 + $0x10] sm:$0xff]  ;;  %vm1477_vm5 = vcmask 523264   ;;  %vm2358_vm6 = vcmask 1046528   ;;  %vm2351_vm7 = vcmask 56320  }
  0x3a   : > { %452 = vmatpush.msra.mxu3 %v415_v2  ;;  %v418_v9 = vld [vmem:[#allocation6 + $0x18] sm:$0xff]  ;;  %v547_v10 = vld [vmem:[#allocation6 + $0x68] sm:$0xff]  ;;  %v548_v11 = vld [vmem:[#allocation6 + $0x70] sm:$0xff]  ;;  %vm4256_vm8 = vcmask 1045504   ;;  %vm4243_vm9 = vcmask 113664   ;;  %p409_p1 = scmp.lt.s32.totalorder %s5647_s17, 1 }
  0x3b   : > { %4941 = vmatmul.msk.f32.vlgmr.msra.gmra.mxu3 %vm433_vm0, %v5736_v3  ;;  %472 = vmatpush.msra.mxu1 %v416_v5  ;;  %v549_v12 = vld [vmem:[#allocation6 + $0x78] sm:$0xff]  ;;  %v546_v13 = vld [vmem:[#allocation6 + $0x60] sm:$0xff]  ;;  %v543_v14 = vld [vmem:[#allocation6 + $0x48] sm:$0xff]  ;;  %vm4820_vm13 = vcmask 228352  }
  0x3c   : > { %4942 = vmatmul.msk.f32.vlgmr.msra.gmra.mxu1 %vm433_vm0, %v5736_v3  ;;  %511 = vmatpush.msrb.mxu3 %v422_v7  ;;  %v544_v15 = vld [vmem:[#allocation6 + $0x50] sm:$0xff]  ;;  %v545_v16 = vld [vmem:[#allocation6 + $0x58] sm:$0xff]  ;;  %v542_v18 = vld [vmem:[#allocation6 + $0x40] sm:$0xff]  ;;  %s7050_s17 = smov (!%p409_p1, %s5647_s17), 1 }
  0x3d   : > { %492 = vmatpush.msra.mxu2 %v417_v8  ;;  %595 = vmatpush.msrb.mxu1 %v547_v10  ;;  %v666_v17 = vld [vmem:[#allocation6 + $0xb0] sm:$0xff]  ;;  %v667_v19 = vld [vmem:[#allocation6 + $0xb8] sm:$0xff]  ;;  %v665_v21 = vld [vmem:[#allocation6 + $0xa8] sm:$0xff]  ;;  %s5253_s22 = sshll.u32 %s7050_s17, 5 }
  0x3e   : > { %512 = vmatpush.msrb.mxu3 %v418_v9  ;;  %4943 = vmatmul.msk.f32.vlgmr.msra.gmra.mxu2 %vm433_vm0, %v5736_v3  ;;  %v662_v20 = vld [vmem:[#allocation6 + $0x90] sm:$0xff]  ;;  %v663_v22 = vld [vmem:[#allocation6 + $0x98] sm:$0xff]  ;;  %v664_v23 = vld [vmem:[#allocation6 + $0xa0] sm:$0xff]  ;;  %s7007_s20 = scalar_lea.vmem %s7038_s9, %s5253_s22 }
  0x3f   : > { %615 = vmatpush.msrb.mxu2 %v548_v11  ;;  %575 = vmatpush.msra.mxu0 %v546_v13  ;;  %v661_v24 = vld [vmem:[#allocation6 + $0x88] sm:$0xff]  ;;  %v784_v25 = vld [vmem:[#allocation6 + $0xf0] sm:$0xff]  ;;  %v660_v27 = vld [vmem:[#allocation6 + $0x80] sm:$0xff] }
  0x40   : > { %635 = vmatpush.msra.mxu3 %v549_v12  ;;  %596 = vmatpush.msrb.mxu1 %v543_v14  ;;  %v783_v26 = vld [vmem:[#allocation6 + $0xe8] sm:$0xff]  ;;  %v780_v28 = vld [vmem:[#allocation6 + $0xd0] sm:$0xff]  ;;  %v782_v29 = vld [vmem:[#allocation6 + $0xe0] sm:$0xff] }
  0x41   : > { %616 = vmatpush.msrb.mxu2 %v544_v15  ;;  %576 = vmatpush.msra.mxu0 %v542_v18  ;;  %v785_v30 = vld [vmem:[#allocation6 + $0xf8] sm:$0xff]  ;;  %v779_v31 = vld [vmem:[#allocation6 + $0xc8] sm:$0xff]  ;;  %v778_v32 = vld [vmem:[#allocation6 + $0xc0] sm:$0xff] }
  0x42   : > { %636 = vmatpush.msra.mxu3 %v545_v16  ;;  %4945 = vmatmul.msk.f32.vlgmr.msra.gmra.mxu0 %vm433_vm0, %v5736_v3  ;;  %v781_v33 = vld [vmem:[#allocation6 + $0xd8] sm:$0xff]  ;;  %v902_v34 = vld [vmem:[#allocation6 + $0x130] sm:$0xff]  ;;  %v901_v35 = vld [vmem:[#allocation6 + $0x128] sm:$0xff] }
  0x43   : > { %733 = vmatpush.msra.mxu2 %v666_v17  ;;  %4944 = vmatmul.msk.f32.vlgmr.msrb.gmra.mxu3 %vm433_vm0, %v5736_v3  ;;  %v900_v36 = vld [vmem:[#allocation6 + $0x120] sm:$0xff]  ;;  %v898_v37 = vld [vmem:[#allocation6 + $0x110] sm:$0xff]  ;;  %v897_v38 = vld [vmem:[#allocation6 + $0x108] sm:$0xff] }
  0x44   : > { %753 = vmatpush.msrb.mxu3 %v667_v19  ;;  %4946 = vmatmul.msk.f32.vlgmr.msrb.gmra.mxu1 %vm433_vm0, %v5736_v3  ;;  %v896_v39 = vld [vmem:[#allocation6 + $0x100] sm:$0xff]  ;;  %v903_v40 = vld [vmem:[#allocation6 + $0x138] sm:$0xff]  ;;  %v1019_v41 = vld [vmem:[#allocation6 + $0x168] sm:$0xff] }
  0x45   : > { %734 = vmatpush.msra.mxu2 %v662_v20  ;;  %713 = vmatpush.msra.mxu1 %v665_v21  ;;  %v1018_v42 = vld [vmem:[#allocation6 + $0x160] sm:$0xff]  ;;  %v899_v43 = vld [vmem:[#allocation6 + $0x118] sm:$0xff]  ;;  %v1020_v44 = vld [vmem:[#allocation6 + $0x170] sm:$0xff] }
  0x46   : > { %4947 = vmatmul.msk.f32.vlgmr.msrb.gmra.mxu2 %vm433_vm0, %v5736_v3  ;;  %754 = vmatpush.msrb.mxu3 %v663_v22  ;;  %v1015_v45 = vld [vmem:[#allocation6 + $0x148] sm:$0xff]  ;;  %v1014_v46 = vld [vmem:[#allocation6 + $0x140] sm:$0xff]  ;;  %v1016_v47 = vld [vmem:[#allocation6 + $0x150] sm:$0xff] }
  0x47   : > { %693 = vmatpush.msrb.mxu0 %v664_v23  ;;  %714 = vmatpush.msra.mxu1 %v661_v24  ;;  %v1021_v48 = vld [vmem:[#allocation6 + $0x178] sm:$0xff]  ;;  %v1137_v49 = vld [vmem:[#allocation6 + $0x1a8] sm:$0xff]  ;;  %v1136_v50 = vld [vmem:[#allocation6 + $0x1a0] sm:$0xff] }
  0x48   : > { %851 = vmatpush.msrb.mxu2 %v784_v25  ;;  %v1017_v51 = vld [vmem:[#allocation6 + $0x158] sm:$0xff]  ;;  %v1138_v52 = vld [vmem:[#allocation6 + $0x1b0] sm:$0xff]  ;;  %v1133_v53 = vld [vmem:[#allocation6 + $0x188] sm:$0xff] }
  0x49   : > { %831 = vmatpush.msrb.mxu1 %v783_v26  ;;  %694 = vmatpush.msrb.mxu0 %v660_v27  ;;  %v1132_v54 = vld [vmem:[#allocation6 + $0x180] sm:$0xff]  ;;  %v1134_v55 = vld [vmem:[#allocation6 + $0x190] sm:$0xff]  ;;  %v1139_v56 = vld [vmem:[#allocation6 + $0x1b8] sm:$0xff] }
  0x4a   : > { %852 = vmatpush.msrb.mxu2 %v780_v28  ;;  %4949 = vmatmul.msk.f32.vlgmr.msrb.gmra.mxu0 %vm433_vm0, %v5736_v3  ;;  %v1135_v57 = vld [vmem:[#allocation6 + $0x198] sm:$0xff]  ;;  %v5794_v13 = vld [vmem:[#allocation8] sm:$0xf] }
  0x4b   : > { %811 = vmatpush.msra.mxu0 %v782_v29  ;;  %4948 = vmatmul.msk.f32.vlgmr.msra.gmra.mxu3 %vm433_vm0, %v5736_v3  ;;  %v1313_v58 = vld [vmem:[#allocation9 + $0x1e0] sm:$0xff]  ;;  %v426_v20 = vperm.slane %v5794_v13, 1  ;;  %v427_v26 = vperm.slane %v5794_v13, 2  ;;  %v5798_v29 = vld [vmem:[#allocation8 + $0x4] sm:$0xf] }
  0x4c   : > { %871 = vmatpush.msra.mxu3 %v785_v30  ;;  %4950 = vmatmul.msk.f32.vlgmr.msra.gmra.mxu1 %vm433_vm0, %v5736_v3  ;;  %v1377_v59 = vld [vmem:[#allocation9 + $0x3e0] sm:$0xff] }
  0x4d   : > { %832 = vmatpush.msrb.mxu1 %v779_v31  ;;  %812 = vmatpush.msra.mxu0 %v778_v32  ;;  %v1309_v60 = vld [vmem:[#allocation9 + $0x1c0] sm:$0xff] }
  0x4e   : > { %4951 = vmatmul.msk.f32.vlgmr.msra.gmra.mxu2 %vm433_vm0, %v5736_v3  ;;  %872 = vmatpush.msra.mxu3 %v781_v33  ;;  %v1373_v61 = vld [vmem:[#allocation9 + $0x3c0] sm:$0xff] }
  0x4f   : > { %969 = vmatpush.msra.mxu2 %v902_v34  ;;  %949 = vmatpush.msra.mxu1 %v901_v35  ;;  %v1305_v62 = vld [vmem:[#allocation9 + $0x1a0] sm:$0xff] }
  0x50   : > { %929 = vmatpush.msrb.mxu0 %v900_v36  ;;  %v1369_v63 = vld [vmem:[#allocation9 + $0x3a0] sm:$0xff] }
  0x51   : > { %970 = vmatpush.msra.mxu2 %v898_v37  ;;  %950 = vmatpush.msra.mxu1 %v897_v38  ;;  %v1301_v0 = vld [vmem:[#allocation9 + $0x180] sm:$0xff]  ;;  %v425_v37 = vperm.slane %v5794_v13, 0 }
  0x52   : > { %930 = vmatpush.msrb.mxu0 %v896_v39  ;;  %v1365_v1 = vld [vmem:[#allocation9 + $0x380] sm:$0xff] }
  0x53   : > { %4952 = vmatmul.msk.f32.vlgmr.msrb.gmra.mxu3 %vm433_vm0, %v5736_v3  ;;  %4953 = vmatmul.msk.f32.vlgmr.msra.gmra.mxu0 %vm433_vm0, %v5736_v3  ;;  %v1297_v2 = vld [vmem:[#allocation9 + $0x160] sm:$0xff] }
  0x54   : > { %989 = vmatpush.msrb.mxu3 %v903_v40  ;;  %4954 = vmatmul.msk.f32.vlgmr.msrb.gmra.mxu1 %vm433_vm0, %v5736_v3  ;;  %v1361_v4 = vld [vmem:[#allocation9 + $0x360] sm:$0xff] }
  0x55   : > { %1067 = vmatpush.msrb.mxu1 %v1019_v41  ;;  %1047 = vmatpush.msra.mxu0 %v1018_v42  ;;  %v1357_v5 = vld [vmem:[#allocation9 + $0x340] sm:$0xff] }
  0x56   : > { %4955 = vmatmul.msk.f32.vlgmr.msrb.gmra.mxu2 %vm433_vm0, %v5736_v3  ;;  %990 = vmatpush.msrb.mxu3 %v899_v43  ;;  %v1289_v6 = vld [vmem:[#allocation9 + $0x120] sm:$0xff] }
  0x57   : > { %1087 = vmatpush.msrb.mxu2 %v1020_v44  ;;  %1068 = vmatpush.msrb.mxu1 %v1015_v45  ;;  %v1353_v7 = vld [vmem:[#allocation9 + $0x320] sm:$0xff]  ;;  %v428_v45 = vperm.slane %v5794_v13, 3  ;;  %v1310_v13 = vld [vmem:[#allocation9 + $0x1c8] sm:$0xff] }
  0x58   : > { %1048 = vmatpush.msra.mxu0 %v1014_v46  ;;  %v1285_v8 = vld [vmem:[#allocation9 + $0x100] sm:$0xff]  ;;  %v554_v46 = vperm.slane %v5798_v29, 1 }
  0x59   : > { %1088 = vmatpush.msrb.mxu2 %v1016_v47  ;;  %v1349_v9 = vld [vmem:[#allocation9 + $0x300] sm:$0xff] }
  0x5a   : > { %v1281_v10 = vld [vmem:[#allocation9 + $0xe0] sm:$0xff] }
  0x5b   : > { %4956 = vmatmul.msk.f32.vlgmr.msra.gmra.mxu3 %vm433_vm0, %v5736_v3  ;;  %4957 = vmatmul.msk.f32.vlgmr.msrb.gmra.mxu0 %vm433_vm0, %v5736_v3  ;;  %v1345_v11 = vld [vmem:[#allocation9 + $0x2e0] sm:$0xff] }
  0x5c   : > { %1107 = vmatpush.msra.mxu3 %v1021_v48  ;;  %4958 = vmatmul.msk.f32.vlgmr.msra.gmra.mxu1 %vm433_vm0, %v5736_v3  ;;  %v1441_v12 = vld [vmem:[#allocation9 + $0x5e0] sm:$0xff] }
  0x5d   : > { %1185 = vmatpush.msra.mxu1 %v1137_v49  ;;  %1165 = vmatpush.msrb.mxu0 %v1136_v50  ;;  %v1473_v15 = vld [vmem:[#allocation9 + $0x6e0] sm:$0xff] }
  0x5e   : > { %4959 = vmatmul.msk.f32.vlgmr.msra.gmra.mxu2 %vm433_vm0, %v5736_v3  ;;  %1108 = vmatpush.msra.mxu3 %v1017_v51  ;;  %v1277_v16 = vld [vmem:[#allocation9 + $0xc0] sm:$0xff] }
  0x5f   : > { %1205 = vmatpush.msra.mxu2 %v1138_v52  ;;  %1186 = vmatpush.msra.mxu1 %v1133_v53  ;;  %v1341_v17 = vld [vmem:[#allocation9 + $0x2c0] sm:$0xff] }
  0x60   : > { %1166 = vmatpush.msrb.mxu0 %v1132_v54  ;;  %v1437_v18 = vld [vmem:[#allocation9 + $0x5c0] sm:$0xff] }
  0x61   : > { %1206 = vmatpush.msra.mxu2 %v1134_v55  ;;  %v1469_v19 = vld [vmem:[#allocation9 + $0x6c0] sm:$0xff] }
  0x62   : > { %v1273_v21 = vld [vmem:[#allocation9 + $0xa0] sm:$0xff] }
  0x63   : > { %4960 = vmatmul.msk.f32.vlgmr.msrb.gmra.mxu3 %vm433_vm0, %v5736_v3  ;;  %4961 = vmatmul.msk.f32.vlgmr.msra.gmra.mxu0 %vm433_vm0, %v5736_v3  ;;  %v1337_v22 = vld [vmem:[#allocation9 + $0x2a0] sm:$0xff] }
  0x64   : > { %1225 = vmatpush.msrb.mxu3 %v1139_v56  ;;  %4962 = vmatmul.msk.f32.vlgmr.msrb.gmra.mxu1 %vm433_vm0, %v5736_v3  ;;  %v1433_v23 = vld [vmem:[#allocation9 + $0x5a0] sm:$0xff]  ;;  %v555_v56 = vperm.slane %v5798_v29, 2 }
  0x65   : > { %1481 = vmatpush.msra.mxu0 %v1313_v58  ;;  %1501 = vmatpush.msrb.mxu1 %v1377_v59  ;;  %v1465_v24 = vld [vmem:[#allocation9 + $0x6a0] sm:$0xff]  ;;  %v5807_v58 = vld [vmem:[#allocation8 + $0x8] sm:$0xf] }
  0x66   : > { %4963 = vmatmul.msk.f32.vlgmr.msrb.gmra.mxu2 %vm433_vm0, %v5736_v3  ;;  %1226 = vmatpush.msrb.mxu3 %v1135_v57  ;;  %v1269_v27 = vld [vmem:[#allocation9 + $0x80] sm:$0xff]  ;;  %v553_v57 = vperm.slane %v5798_v29, 0 }
  0x67   : > { %1482 = vmatpush.msra.mxu0 %v1309_v60  ;;  %1502 = vmatpush.msrb.mxu1 %v1373_v61  ;;  %v1333_v28 = vld [vmem:[#allocation9 + $0x280] sm:$0xff] }
  0x68   : > { %1521 = vmatpush.msrb.mxu2 %v1441_v12  ;;  %v1429_v30 = vld [vmem:[#allocation9 + $0x580] sm:$0xff] }
  0x69   : > { %1483 = vmatpush.msra.mxu0 %v1305_v62  ;;  %1503 = vmatpush.msrb.mxu1 %v1369_v63  ;;  %v1461_v31 = vld [vmem:[#allocation9 + $0x680] sm:$0xff] }
  0x6a   : > { %1522 = vmatpush.msrb.mxu2 %v1437_v18  ;;  %v1265_v34 = vld [vmem:[#allocation9 + $0x60] sm:$0xff] }
  0x6b   : > { %4964 = vmatmul.msk.f32.vlgmr.msra.gmra.mxu3 %vm433_vm0, %v5736_v3  ;;  %4965 = vmatmul.msk.f32.vlgmr.msrb.gmra.mxu0 %vm433_vm0, %v5736_v3  ;;  %v1329_v35 = vld [vmem:[#allocation9 + $0x260] sm:$0xff] }
  0x6c   : > { %4966 = vmatmul.msk.f32.vlgmr.msra.gmra.mxu1 %vm433_vm0, %v5736_v3  ;;  %1484 = vmatpush.msra.mxu0 %v1301_v0  ;;  %v1425_v36 = vld [vmem:[#allocation9 + $0x560] sm:$0xff] }
  0x6d   : > { %1504 = vmatpush.msrb.mxu1 %v1365_v1  ;;  %1549 = vmatpush.msra.mxu3 %v1473_v15  ;;  %v1457_v40 = vld [vmem:[#allocation9 + $0x660] sm:$0xff]  ;;  %v1314_v1 = vld [vmem:[#allocation9 + $0x1e8] sm:$0xff] }
  0x6e   : > { %4967 = vmatmul.msk.f32.vlgmr.msra.gmra.mxu2 %vm433_vm0, %v5736_v3  ;;  %1485 = vmatpush.msra.mxu0 %v1297_v2  ;;  %v1261_v42 = vld [vmem:[#allocation9 + $0x40] sm:$0xff]  ;;  %v1438_v15 = vld [vmem:[#allocation9 + $0x5c8] sm:$0xff] }
  0x6f   : > { %1505 = vmatpush.msrb.mxu1 %v1361_v4  ;;  %1550 = vmatpush.msra.mxu3 %v1469_v19  ;;  %v1325_v43 = vld [vmem:[#allocation9 + $0x240] sm:$0xff]  ;;  %v535_v4 = vlaneseq }
  0x70   : > { %1523 = vmatpush.msrb.mxu2 %v1433_v23  ;;  %v1421_v44 = vld [vmem:[#allocation9 + $0x540] sm:$0xff]  ;;  %v1306_v23 = vld [vmem:[#allocation9 + $0x1a8] sm:$0xff] }
  0x71   : > { %1506 = vmatpush.msrb.mxu1 %v1357_v5  ;;  %1551 = vmatpush.msra.mxu3 %v1465_v24  ;;  %v1453_v47 = vld [vmem:[#allocation9 + $0x640] sm:$0xff]  ;;  %v1378_v5 = vld [vmem:[#allocation9 + $0x3e8] sm:$0xff]  ;;  %vm5819_vm4 = vcmp.lt.s32.totalorder %v535_v4, 448 }
  0x72   : > { %1524 = vmatpush.msrb.mxu2 %v1429_v30  ;;  %v1257_v49 = vld [vmem:[#allocation9 + $0x20] sm:$0xff]  ;;  %v1370_v24 = vld [vmem:[#allocation9 + $0x3a8] sm:$0xff] }
  0x73   : > { %4968 = vmatmul.msk.f32.vlgmr.msrb.gmra.mxu3 %vm433_vm0, %v5736_v3  ;;  %v1293_v3 = vld [vmem:[#allocation9 + $0x140] sm:$0xff]  ;;  %1507 = vmatpush.msrb.mxu1 %v1353_v7  ;;  %v1418_v4 = vld [vmem:[#allocation9 + $0x528] sm:$0xff] }
  0x74   : > { %1486 = vmatpush.msra.mxu0 %v1293_v3  ;;  %1552 = vmatpush.msra.mxu3 %v1461_v31  ;;  %v1321_v50 = vld [vmem:[#allocation9 + $0x220] sm:$0xff]  ;;  %v1302_v31 = vld [vmem:[#allocation9 + $0x188] sm:$0xff] }
  0x75   : > { %1508 = vmatpush.msrb.mxu1 %v1349_v9  ;;  %1525 = vmatpush.msrb.mxu2 %v1425_v36  ;;  %v1417_v51 = vld [vmem:[#allocation9 + $0x520] sm:$0xff] }
  0x76   : > { %1487 = vmatpush.msra.mxu0 %v1289_v6  ;;  %1553 = vmatpush.msra.mxu3 %v1457_v40  ;;  %v1449_v54 = vld [vmem:[#allocation9 + $0x620] sm:$0xff]  ;;  %v1442_v6 = vld [vmem:[#allocation9 + $0x5e8] sm:$0xff] }
  0x77   : > { %1509 = vmatpush.msrb.mxu1 %v1345_v11  ;;  %1526 = vmatpush.msrb.mxu2 %v1421_v44  ;;  %v1253_v59 = vld [vmem:[#allocation9] sm:$0xff]  ;;  %v1298_v44 = vld [vmem:[#allocation9 + $0x168] sm:$0xff] }
  0x78   : > { %1488 = vmatpush.msra.mxu0 %v1285_v8  ;;  %1554 = vmatpush.msra.mxu3 %v1453_v47  ;;  %v1317_v60 = vld [vmem:[#allocation9 + $0x200] sm:$0xff] }
  0x79   : > { %1510 = vmatpush.msrb.mxu1 %v1341_v17  ;;  %1527 = vmatpush.msrb.mxu2 %v1417_v51  ;;  %v1413_v63 = vld [vmem:[#allocation9 + $0x500] sm:$0xff]  ;;  %v556_v17 = vperm.slane %v5798_v29, 3 }
  0x7a   : > { %1489 = vmatpush.msra.mxu0 %v1281_v10  ;;  %1555 = vmatpush.msra.mxu3 %v1449_v54  ;;  %v1445_v0 = vld [vmem:[#allocation9 + $0x600] sm:$0xff]  ;;  %v1422_v54 = vld [vmem:[#allocation9 + $0x548] sm:$0xff] }
  0x7b   : > { %1511 = vmatpush.msrb.mxu1 %v1337_v22  ;;  %1528 = vmatpush.msrb.mxu2 %v1413_v63  ;;  %v1409_v7 = vld [vmem:[#allocation9 + $0x4e0] sm:$0xff]  ;;  %v672_v22 = vperm.slane %v5807_v58, 1 }
  0x7c   : > { %1490 = vmatpush.msra.mxu0 %v1277_v16  ;;  %1556 = vmatpush.msra.mxu3 %v1445_v0  ;;  %v1405_v19 = vld [vmem:[#allocation9 + $0x4c0] sm:$0xff] }
  0x7d   : > { %1512 = vmatpush.msrb.mxu1 %v1333_v28  ;;  %1529 = vmatpush.msrb.mxu2 %v1409_v7  ;;  %v1397_v40 = vld [vmem:[#allocation9 + $0x480] sm:$0xff]  ;;  %v1286_v7 = vld [vmem:[#allocation9 + $0x108] sm:$0xff] }
  0x7e   : > { %1491 = vmatpush.msra.mxu0 %v1273_v21  ;;  %1561 = vmatpush.msrb.mxu3 %v1314_v1  ;;  %v1393_v47 = vld [vmem:[#allocation9 + $0x460] sm:$0xff]  ;;  %v1290_v1 = vld [vmem:[#allocation9 + $0x128] sm:$0xff] }
  0x7f   : > { %1513 = vmatpush.msrb.mxu1 %v1329_v35  ;;  %1530 = vmatpush.msrb.mxu2 %v1405_v19  ;;  %v1282_v19 = vld [vmem:[#allocation9 + $0xe8] sm:$0xff] }
  0x80   : > { %1492 = vmatpush.msra.mxu0 %v1269_v27  ;;  %1562 = vmatpush.msrb.mxu3 %v1310_v13  ;;  %v1401_v27 = vld [vmem:[#allocation9 + $0x4a0] sm:$0xff]  ;;  %v5841_v13 = vld [vmem:[#allocation8 + $0x10] sm:$0xf] }
  0x81   : > { %1514 = vmatpush.msrb.mxu1 %v1325_v43  ;;  %1531 = vmatpush.msrb.mxu2 %v1401_v27  ;;  %v1474_v27 = vld [vmem:[#allocation9 + $0x6e8] sm:$0xff] }
  0x82   : > { %1493 = vmatpush.msra.mxu0 %v1265_v34  ;;  %1563 = vmatpush.msrb.mxu3 %v1306_v23 }
  0x83   : > { %1515 = vmatpush.msrb.mxu1 %v1321_v50  ;;  %1532 = vmatpush.msrb.mxu2 %v1397_v40 }
  0x84   : > { %1494 = vmatpush.msra.mxu0 %v1261_v42  ;;  %1564 = vmatpush.msrb.mxu3 %v1302_v31  ;;  %v1278_v31 = vld [vmem:[#allocation9 + $0xc8] sm:$0xff] }
  0x85   : > { %1516 = vmatpush.msrb.mxu1 %v1317_v60  ;;  %1533 = vmatpush.msrb.mxu2 %v1393_v47  ;;  %v1389_v60 = vld [vmem:[#allocation9 + $0x440] sm:$0xff] }
  0x86   : > { %1495 = vmatpush.msra.mxu0 %v1257_v49  ;;  %1565 = vmatpush.msrb.mxu3 %v1298_v44 }
  0x87   : > { %1601 = vmatpush.msra.mxu1 %v1442_v6  ;;  %1534 = vmatpush.msrb.mxu2 %v1389_v60  ;;  %v1266_v60 = vld [vmem:[#allocation9 + $0x68] sm:$0xff] }
  0x88   : > { %1496 = vmatpush.msra.mxu0 %v1253_v59 }
  0x89   : > { %1602 = vmatpush.msra.mxu1 %v1438_v15 }
  0x8a   : > { %1581 = vmatpush.msrb.mxu0 %v1378_v5 }
  0xb9   : > { %v474_v14 = vpop.f32.mrf.mxu1 }
  0xba   : > { %v475_v32 = vadd.f32 %v474_v14, %v426_v20  ;;  %v1374_v14 = vld [vmem:[#allocation9 + $0x3c8] sm:$0xff] }
  0xbb   : > { %1582 = vmatpush.msrb.mxu0 %v1374_v14  ;;  %v1381_v14 = vld [vmem:[#allocation9 + $0x400] sm:$0xff] }
  0xbc   : > { %v518_v48 = vmax.f32 %v475_v32, 0.0  ;;  %v1366_v32 = vld [vmem:[#allocation9 + $0x388] sm:$0xff] }
  0xbd   : > { %1583 = vmatpush.msrb.mxu0 %v1370_v24 }
  0xbe   : > { %v454_v25 = vpop.f32.mrf.mxu3  ;;  %v525_v2 = vrot.slane %v518_v48, 7 }
  0xbf   : > { %v5800_v33 = vpop.f32.mrf.mxu0  ;;  %v455_v52 = vadd.f32 %v454_v25, %v425_v37  ;;  %v1434_v25 = vld [vmem:[#allocation9 + $0x5a8] sm:$0xff]  ;;  %v673_v37 = vperm.slane %v5807_v58, 2  ;;  %1584 = vmatpush.msrb.mxu0 %v1366_v32 }
  0xc0   : > { %v5815_v18 = vadd.f32 %v5800_v33, %v553_v57  ;;  %v1430_v33 = vld [vmem:[#allocation9 + $0x588] sm:$0xff]  ;;  %1603 = vmatpush.msra.mxu1 %v1434_v25 }
  0xc1   : > { %v494_v38 = vpop.f32.mrf.mxu2  ;;  %v598_v39 = vpop.f32.mrf.mxu1  ;;  %v517_v8 = vmax.f32 %v455_v52, 0.0  ;;  %v1294_v52 = vld [vmem:[#allocation9 + $0x148] sm:$0xff] }
  0xc2   : > { %v495_v41 = vadd.f32 %v494_v38, %v427_v26  ;;  %v5809_v62 = vadd.f32 %v598_v39, %v554_v46  ;;  %v641_v36 = vmax.f32 %v5815_v18, 0.0  ;;  %v671_v38 = vperm.slane %v5807_v58, 0  ;;  %v5829_v39 = vld [vmem:[#allocation8 + $0xc] sm:$0xf]  ;;  %1604 = vmatpush.msra.mxu1 %v1430_v33  ;;  %v1426_v46 = vld [vmem:[#allocation9 + $0x568] sm:$0xff]  ;;  %1566 = vmatpush.msrb.mxu3 %v1294_v52 }
  0xc3   : > { %v529_v28 = vsel %vm528_vm1, %v517_v8, %v525_v2  ;;  %v790_v57 = vperm.slane %v5829_v39, 1  ;;  %v1354_v2 = vld [vmem:[#allocation9 + $0x328] sm:$0xff]  ;;  %v1311_v26 = vld [vmem:[#allocation9 + $0x1d0] sm:$0xff] }
  0xc4   : > { %v519_v53 = vmax.f32 %v495_v41, 0.0  ;;  %v642_v21 = vmax.f32 %v5809_v62, 0.0  ;;  %1605 = vmatpush.msra.mxu1 %v1426_v46  ;;  %1567 = vmatpush.msrb.mxu3 %v1290_v1  ;;  %v1350_v8 = vld [vmem:[#allocation9 + $0x308] sm:$0xff] }
  0xc5   : > { %v1342_v32 = vld [vmem:[#allocation9 + $0x2c8] sm:$0xff] }
  0xc6   : > { %v514_v55 = vpop.f32.mrf.mxu3  ;;  %v526_v9 = vrot.slane %v519_v53, 6  ;;  %v649_v41 = vrot.slane %v642_v21, 7  ;;  %v1358_v53 = vld [vmem:[#allocation9 + $0x348] sm:$0xff]  ;;  %1606 = vmatpush.msra.mxu1 %v1422_v54  ;;  %1568 = vmatpush.msrb.mxu3 %v1286_v7 }
  0xc7   : > { %v515_v61 = vadd.f32 %v514_v55, %v428_v45  ;;  %v5811_v3 = vpop.f32.mrf.mxu0  ;;  %v1362_v45 = vld [vmem:[#allocation9 + $0x368] sm:$0xff] }
  0xc8   : > { %1585 = vmatpush.msrb.mxu0 %v1362_v45  ;;  %v652_v62 = vsel %vm528_vm1, %v641_v36, %v649_v41  ;;  %v697_v0 = vadd.f32 %v5811_v3, %v671_v38  ;;  %v791_v3 = vperm.slane %v5829_v39, 2  ;;  %1607 = vmatpush.msra.mxu1 %v1418_v4  ;;  %v1410_v21 = vld [vmem:[#allocation9 + $0x4e8] sm:$0xff]  ;;  %v5849_v45 = vld [vmem:[#allocation8 + $0x14] sm:$0xf] }
  0xc9   : > { %v520_v10 = vmax.f32 %v515_v61, 0.0  ;;  %v618_v11 = vpop.f32.mrf.mxu2  ;;  %v716_v12 = vpop.f32.mrf.mxu1  ;;  %1569 = vmatpush.msrb.mxu3 %v1282_v19  ;;  %v1406_v33 = vld [vmem:[#allocation9 + $0x4c8] sm:$0xff]  ;;  %v5860_v19 = vld [vmem:[#allocation8 + $0x18] sm:$0xf] }
  0xca   : > { %v619_v16 = vadd.f32 %v618_v11, %v555_v56  ;;  %v717_v43 = vadd.f32 %v716_v12, %v672_v22  ;;  %v674_v56 = vperm.slane %v5807_v58, 3  ;;  %1586 = vmatpush.msrb.mxu0 %v1358_v53  ;;  %v1385_v58 = vld [vmem:[#allocation9 + $0x420] sm:$0xff]  ;;  %v789_v12 = vperm.slane %v5829_v39, 0  ;;  %v1470_v38 = vld [vmem:[#allocation9 + $0x6c8] sm:$0xff] }
  0xcb   : > { %v527_v20 = vrot.slane %v520_v10, 5  ;;  %1535 = vmatpush.msrb.mxu2 %v1385_v58  ;;  %1570 = vmatpush.msrb.mxu3 %v1278_v31  ;;  %v1274_v41 = vld [vmem:[#allocation9 + $0xa8] sm:$0xff]  ;;  %v910_v58 = vperm.slane %v5841_v13, 3 }
  0xcc   : > { %v643_v30 = vmax.f32 %v619_v16, 0.0  ;;  %v760_v63 = vmax.f32 %v717_v43, 0.0  ;;  %1587 = vmatpush.msrb.mxu0 %v1354_v2  ;;  %v1466_v46 = vld [vmem:[#allocation9 + $0x6a8] sm:$0xff] }
  0xcd   : > { %v531_v29 = vsel %vm530_vm2, %v526_v9, %v527_v20  ;;  %v1414_v9 = vld [vmem:[#allocation9 + $0x508] sm:$0xff]  ;;  %1536 = vmatpush.msrb.mxu2 %v1381_v14  ;;  %1571 = vmatpush.msrb.mxu3 %v1274_v41  ;;  %v1144_v41 = vperm.slane %v5860_v19, 1 }
  0xce   : > { %v533_v34 = vsel %vm532_vm3, %v529_v28, %v531_v29  ;;  %v638_v35 = vpop.f32.mrf.mxu3  ;;  %v650_v48 = vrot.slane %v643_v30, 6  ;;  %v767_v15 = vrot.slane %v760_v63, 7  ;;  %1588 = vmatpush.msrb.mxu0 %v1350_v8  ;;  %1608 = vmatpush.msra.mxu1 %v1414_v9  ;;  %v1346_v20 = vld [vmem:[#allocation9 + $0x2e8] sm:$0xff]  ;;  %v792_v29 = vperm.slane %v5829_v39, 3 }
  0xcf   : > { %539 = vst.msk [vmem:[#allocation2] ss:$8 sm:$0xf] %vm5819_vm4, %v533_v34  ;;  %v639_v42 = vadd.f32 %v638_v35, %v556_v17  ;;  %v759_v17 = vmax.f32 %v697_v0, 0.0  ;;  %v908_v30 = vperm.slane %v5841_v13, 1  ;;  %1629 = vmatpush.msra.mxu2 %v1474_v27  ;;  %v1338_v39 = vld [vmem:[#allocation9 + $0x2a8] sm:$0xff] }
  0xd0   : > { %v814_v59 = vpop.f32.mrf.mxu0  ;;  %1589 = vmatpush.msrb.mxu0 %v1346_v20  ;;  %1609 = vmatpush.msra.mxu1 %v1410_v21  ;;  %v1334_v52 = vld [vmem:[#allocation9 + $0x288] sm:$0xff] }
  0xd1   : > { %v644_v49 = vmax.f32 %v639_v42, 0.0  ;;  %v736_v50 = vpop.f32.mrf.mxu2  ;;  %v834_v51 = vpop.f32.mrf.mxu1  ;;  %v770_v35 = vsel %vm528_vm1, %v759_v17, %v767_v15  ;;  %1630 = vmatpush.msra.mxu2 %v1470_v38  ;;  %v1402_v42 = vld [vmem:[#allocation9 + $0x4a8] sm:$0xff] }
  0xd2   : > { %v737_v55 = vadd.f32 %v736_v50, %v673_v37  ;;  %v835_v18 = vadd.f32 %v834_v51, %v790_v57  ;;  %v815_v37 = vadd.f32 %v814_v59, %v789_v12  ;;  %1590 = vmatpush.msrb.mxu0 %v1342_v32  ;;  %1610 = vmatpush.msra.mxu1 %v1406_v33  ;;  %v907_v50 = vperm.slane %v5841_v13, 0  ;;  %v1270_v51 = vld [vmem:[#allocation9 + $0x88] sm:$0xff] }
  0xd3   : > { %v651_v61 = vrot.slane %v644_v49, 5  ;;  %v909_v49 = vperm.slane %v5841_v13, 2  ;;  %1631 = vmatpush.msra.mxu2 %v1466_v46  ;;  %v1398_v53 = vld [vmem:[#allocation9 + $0x488] sm:$0xff]  ;;  %1572 = vmatpush.msrb.mxu3 %v1270_v51  ;;  %v1145_v51 = vperm.slane %v5860_v19, 2 }
  0xd4   : > { %v761_v6 = vmax.f32 %v737_v55, 0.0  ;;  %v878_v36 = vmax.f32 %v835_v18, 0.0  ;;  %1591 = vmatpush.msrb.mxu0 %v1338_v39  ;;  %1611 = vmatpush.msra.mxu1 %v1402_v42  ;;  %v1462_v59 = vld [vmem:[#allocation9 + $0x688] sm:$0xff] }
  0xd5   : > { %v653_v5 = vsel %vm530_vm2, %v650_v48, %v651_v61  ;;  %1632 = vmatpush.msra.mxu2 %v1462_v59  ;;  %v1330_v61 = vld [vmem:[#allocation9 + $0x268] sm:$0xff]  ;;  %1573 = vmatpush.msrb.mxu3 %v1266_v60 }
  0xd6   : > { %v654_v10 = vsel %vm532_vm3, %v652_v62, %v653_v5  ;;  %v756_v11 = vpop.f32.mrf.mxu3  ;;  %v768_v22 = vrot.slane %v761_v6, 6  ;;  %v885_v54 = vrot.slane %v878_v36, 7  ;;  %1592 = vmatpush.msrb.mxu0 %v1334_v52  ;;  %1612 = vmatpush.msra.mxu1 %v1398_v53  ;;  %v1394_v62 = vld [vmem:[#allocation9 + $0x468] sm:$0xff]  ;;  %v1026_v5 = vperm.slane %v5849_v45, 1 }
  0xd7   : > { %657 = vst.msk [vmem:[#allocation2 + $0x1] ss:$8 sm:$0xf] %vm5819_vm4, %v654_v10  ;;  %v757_v16 = vadd.f32 %v756_v11, %v674_v56  ;;  %v877_v56 = vmax.f32 %v815_v37, 0.0  ;;  %v1458_v2 = vld [vmem:[#allocation9 + $0x668] sm:$0xff]  ;;  %v1143_v52 = vperm.slane %v5860_v19, 0 }
  0xd8   : > { %v932_v40 = vpop.f32.mrf.mxu0  ;;  %1593 = vmatpush.msrb.mxu0 %v1330_v61  ;;  %1613 = vmatpush.msra.mxu1 %v1394_v62  ;;  %v1262_v7 = vld [vmem:[#allocation9 + $0x48] sm:$0xff]  ;;  %v1146_v62 = vperm.slane %v5860_v19, 3 }
  0xd9   : > { %v762_v23 = vmax.f32 %v757_v16, 0.0  ;;  %v854_v24 = vpop.f32.mrf.mxu2  ;;  %v952_v25 = vpop.f32.mrf.mxu1  ;;  %1633 = vmatpush.msra.mxu2 %v1458_v2  ;;  %v1326_v8 = vld [vmem:[#allocation9 + $0x248] sm:$0xff]  ;;  %v888_v11 = vsel %vm528_vm1, %v877_v56, %v885_v54  ;;  %v933_v12 = vadd.f32 %v932_v40, %v907_v50  ;;  %1574 = vmatpush.msrb.mxu3 %v1262_v7  ;;  %v1028_v40 = vperm.slane %v5849_v45, 3 }
  0xda   : > { %v855_v28 = vadd.f32 %v854_v24, %v791_v3  ;;  %v953_v57 = vadd.f32 %v952_v25, %v908_v30  ;;  %v1390_v9 = vld [vmem:[#allocation9 + $0x448] sm:$0xff]  ;;  %1594 = vmatpush.msrb.mxu0 %v1326_v8  ;;  %v1025_v24 = vperm.slane %v5849_v45, 0 }
  0xdb   : > { %v769_v34 = vrot.slane %v762_v23, 5  ;;  %v1454_v14 = vld [vmem:[#allocation9 + $0x648] sm:$0xff]  ;;  %1614 = vmatpush.msra.mxu1 %v1390_v9  ;;  %v1027_v23 = vperm.slane %v5849_v45, 2  ;;  %v995_v32 = vmax.f32 %v933_v12, 0.0 }
  0xdc   : > { %v879_v44 = vmax.f32 %v855_v28, 0.0  ;;  %v996_v3 = vmax.f32 %v953_v57, 0.0  ;;  %1634 = vmatpush.msra.mxu2 %v1454_v14  ;;  %v1258_v15 = vld [vmem:[#allocation9 + $0x28] sm:$0xff] }
  0xdd   : > { %v771_v43 = vsel %vm530_vm2, %v768_v22, %v769_v34  ;;  %v1322_v13 = vld [vmem:[#allocation9 + $0x228] sm:$0xff]  ;;  %1575 = vmatpush.msrb.mxu3 %v1258_v15 }
  0xde   : > { %v772_v47 = vsel %vm532_vm3, %v770_v35, %v771_v43  ;;  %v874_v48 = vpop.f32.mrf.mxu3  ;;  %v886_v63 = vrot.slane %v879_v44, 6  ;;  %v1386_v16 = vld [vmem:[#allocation9 + $0x428] sm:$0xff]  ;;  %1595 = vmatpush.msrb.mxu0 %v1322_v13  ;;  %v1003_v30 = vrot.slane %v996_v3, 7  ;;  %v1315_v13 = vld [vmem:[#allocation9 + $0x1f0] sm:$0xff] }
  0xdf   : > { %775 = vst.msk [vmem:[#allocation2 + $0x2] ss:$8 sm:$0xf] %vm5819_vm4, %v772_v47  ;;  %v875_v55 = vadd.f32 %v874_v48, %v792_v29  ;;  %v1450_v20 = vld [vmem:[#allocation9 + $0x628] sm:$0xff]  ;;  %1615 = vmatpush.msra.mxu1 %v1386_v16  ;;  %v1379_v16 = vld [vmem:[#allocation9 + $0x3f0] sm:$0xff] }
  0xe0   : > { %v1050_v25 = vpop.f32.mrf.mxu0  ;;  %1635 = vmatpush.msra.mxu2 %v1450_v20  ;;  %v1254_v27 = vld [vmem:[#allocation9 + $0x8] sm:$0xff]  ;;  %v1006_v42 = vsel %vm528_vm1, %v995_v32, %v1003_v30  ;;  %v1308_v30 = vld [vmem:[#allocation9 + $0x1b8] sm:$0xff]  ;;  %v1367_v32 = vld [vmem:[#allocation9 + $0x390] sm:$0xff] }
  0xe1   : > { %v880_v0 = vmax.f32 %v875_v55, 0.0  ;;  %v972_v1 = vpop.f32.mrf.mxu2  ;;  %v1070_v6 = vpop.f32.mrf.mxu1  ;;  %v1318_v28 = vld [vmem:[#allocation9 + $0x208] sm:$0xff]  ;;  %1576 = vmatpush.msrb.mxu3 %v1254_v27  ;;  %v1051_v44 = vadd.f32 %v1050_v25, %v1025_v24  ;;  %v1439_v24 = vld [vmem:[#allocation9 + $0x5d0] sm:$0xff]  ;;  %v1312_v25 = vld [vmem:[#allocation9 + $0x1d8] sm:$0xff] }
  0xe2   : > { %v973_v4 = vadd.f32 %v972_v1, %v909_v49  ;;  %v1382_v29 = vld [vmem:[#allocation9 + $0x408] sm:$0xff]  ;;  %v1071_v33 = vadd.f32 %v1070_v6, %v1026_v5  ;;  %1596 = vmatpush.msrb.mxu0 %v1318_v28  ;;  %v1307_v27 = vld [vmem:[#allocation9 + $0x1b0] sm:$0xff] }
  0xe3   : > { %v887_v10 = vrot.slane %v880_v0, 5  ;;  %v1446_v34 = vld [vmem:[#allocation9 + $0x608] sm:$0xff]  ;;  %1616 = vmatpush.msra.mxu1 %v1382_v29  ;;  %v1113_v54 = vmax.f32 %v1051_v44, 0.0  ;;  %v1371_v28 = vld [vmem:[#allocation9 + $0x3b0] sm:$0xff] }
  0xe4   : > { %v997_v18 = vmax.f32 %v973_v4, 0.0  ;;  %1636 = vmatpush.msra.mxu2 %v1446_v34  ;;  %v1114_v43 = vmax.f32 %v1071_v33, 0.0  ;;  %v1435_v29 = vld [vmem:[#allocation9 + $0x5b0] sm:$0xff]  ;;  %v1304_v34 = vld [vmem:[#allocation9 + $0x198] sm:$0xff] }
  0xe5   : > { %v889_v17 = vsel %vm530_vm2, %v886_v63, %v887_v10  ;;  %v1431_v33 = vld [vmem:[#allocation9 + $0x590] sm:$0xff] }
  0xe6   : > { %v890_v21 = vsel %vm532_vm3, %v888_v11, %v889_v17  ;;  %v992_v22 = vpop.f32.mrf.mxu3  ;;  %v1004_v35 = vrot.slane %v997_v18, 6  ;;  %v1121_v45 = vrot.slane %v1114_v43, 7  ;;  %v1291_v43 = vld [vmem:[#allocation9 + $0x130] sm:$0xff] }
  0xe7   : > { %893 = vst.msk [vmem:[#allocation2 + $0x3] ss:$8 sm:$0xf] %vm5819_vm4, %v890_v21  ;;  %v993_v31 = vadd.f32 %v992_v22, %v910_v58  ;;  %v1443_v21 = vld [vmem:[#allocation9 + $0x5f0] sm:$0xff]  ;;  %v1316_v22 = vld [vmem:[#allocation9 + $0x1f8] sm:$0xff] }
  0xe8   : > { %v1168_v56 = vpop.f32.mrf.mxu0  ;;  %v1124_v0 = vsel %vm528_vm1, %v1113_v54, %v1121_v45  ;;  %v1355_v44 = vld [vmem:[#allocation9 + $0x330] sm:$0xff]  ;;  %v1284_v54 = vld [vmem:[#allocation9 + $0xf8] sm:$0xff] }
  0xe9   : > { %v998_v36 = vmax.f32 %v993_v31, 0.0  ;;  %v1090_v37 = vpop.f32.mrf.mxu2  ;;  %v1188_v46 = vpop.f32.mrf.mxu1  ;;  %v1169_v2 = vadd.f32 %v1168_v56, %v1143_v52  ;;  %v1303_v31 = vld [vmem:[#allocation9 + $0x190] sm:$0xff] }
  0xea   : > { %v1091_v38 = vadd.f32 %v1090_v37, %v1027_v23  ;;  %v1189_v55 = vadd.f32 %v1188_v46, %v1144_v41  ;;  %v1375_v23 = vld [vmem:[#allocation9 + $0x3d0] sm:$0xff] }
  0xeb   : > { %v1005_v39 = vrot.slane %v998_v36, 5  ;;  %v1231_v9 = vmax.f32 %v1169_v2, 0.0  ;;  %v1363_v36 = vld [vmem:[#allocation9 + $0x370] sm:$0xff] }
  0xec   : > { %v1115_v48 = vmax.f32 %v1091_v38, 0.0  ;;  %v1232_v1 = vmax.f32 %v1189_v55, 0.0  ;;  %v1427_v37 = vld [vmem:[#allocation9 + $0x570] sm:$0xff]  ;;  %v1300_v38 = vld [vmem:[#allocation9 + $0x178] sm:$0xff] }
  0xed   : > { %v1007_v47 = vsel %vm530_vm2, %v1004_v35, %v1005_v39  ;;  %v1299_v35 = vld [vmem:[#allocation9 + $0x170] sm:$0xff] }
  0xee   : > { %v1008_v49 = vsel %vm532_vm3, %v1006_v42, %v1007_v47  ;;  %v1110_v50 = vpop.f32.mrf.mxu3  ;;  %v1122_v57 = vrot.slane %v1115_v48, 6  ;;  %v1239_v7 = vrot.slane %v1232_v1, 7  ;;  %v1359_v41 = vld [vmem:[#allocation9 + $0x350] sm:$0xff]  ;;  %v1296_v42 = vld [vmem:[#allocation9 + $0x158] sm:$0xff] }
  0xef   : > { %1011 = vst.msk [vmem:[#allocation2 + $0x4] ss:$8 sm:$0xf] %vm5819_vm4, %v1008_v49  ;;  %v1111_v53 = vadd.f32 %v1110_v50, %v1028_v40  ;;  %v1295_v40 = vld [vmem:[#allocation9 + $0x150] sm:$0xff]  ;;  %v1292_v47 = vld [vmem:[#allocation9 + $0x138] sm:$0xff] }
  0xf0   : > { %v1242_v12 = vsel %vm528_vm1, %v1231_v9, %v1239_v7  ;;  %v1423_v39 = vld [vmem:[#allocation9 + $0x550] sm:$0xff]  ;;  %v1268_v7 = vld [vmem:[#allocation9 + $0x78] sm:$0xff] }
  0xf1   : > { %v1116_v59 = vmax.f32 %v1111_v53, 0.0  ;;  %v1208_v60 = vpop.f32.mrf.mxu2  ;;  %v1419_v46 = vld [vmem:[#allocation9 + $0x530] sm:$0xff] }
  0xf2   : > { %v1209_v61 = vadd.f32 %v1208_v60, %v1145_v51  ;;  %v1287_v48 = vld [vmem:[#allocation9 + $0x110] sm:$0xff]  ;;  %v1288_v51 = vld [vmem:[#allocation9 + $0x118] sm:$0xff] }
  0xf3   : > { %v1123_v63 = vrot.slane %v1116_v59, 5  ;;  %v1351_v49 = vld [vmem:[#allocation9 + $0x310] sm:$0xff]  ;;  %v1280_v59 = vld [vmem:[#allocation9 + $0xd8] sm:$0xff] }
  0xf4   : > { %v1233_v58 = vmax.f32 %v1209_v61, 0.0  ;;  %v1415_v50 = vld [vmem:[#allocation9 + $0x510] sm:$0xff] }
  0xf5   : > { %v1125_v4 = vsel %vm530_vm2, %v1122_v57, %v1123_v63  ;;  %v1283_v52 = vld [vmem:[#allocation9 + $0xf0] sm:$0xff]  ;;  %v1276_v63 = vld [vmem:[#allocation9 + $0xb8] sm:$0xff] }
  0xf6   : > { %v1126_v5 = vsel %vm532_vm3, %v1124_v0, %v1125_v4  ;;  %v1228_v6 = vpop.f32.mrf.mxu3  ;;  %v1240_v10 = vrot.slane %v1233_v58, 6  ;;  %v1347_v45 = vld [vmem:[#allocation9 + $0x2f0] sm:$0xff]  ;;  %v1272_v4 = vld [vmem:[#allocation9 + $0x98] sm:$0xff] }
  0xf7   : > { %1129 = vst.msk [vmem:[#allocation2 + $0x5] ss:$8 sm:$0xf] %vm5819_vm4, %v1126_v5  ;;  %v1229_v8 = vadd.f32 %v1228_v6, %v1146_v62  ;;  %v1411_v53 = vld [vmem:[#allocation9 + $0x4f0] sm:$0xff] }
  0xf8   : > { %v1279_v55 = vld [vmem:[#allocation9 + $0xd0] sm:$0xff] }
  0xf9   : > { %v1234_v11 = vmax.f32 %v1229_v8, 0.0  ;;  %v1343_v56 = vld [vmem:[#allocation9 + $0x2d0] sm:$0xff] }
  0xfa   : > { %v1407_v57 = vld [vmem:[#allocation9 + $0x4d0] sm:$0xff] }
  0xfb   : > { %v1241_v3 = vrot.slane %v1234_v11, 5  ;;  %v1275_v60 = vld [vmem:[#allocation9 + $0xb0] sm:$0xff]  ;;  %v1264_v11 = vld [vmem:[#allocation9 + $0x58] sm:$0xff] }
  0xfc   : > { %v1339_v61 = vld [vmem:[#allocation9 + $0x2b0] sm:$0xff] }
  0xfd   : > { %v1243_v14 = vsel %vm530_vm2, %v1240_v10, %v1241_v3  ;;  %v1403_v62 = vld [vmem:[#allocation9 + $0x4b0] sm:$0xff] }
  0xfe   : > { %v1244_v15 = vsel %vm532_vm3, %v1242_v12, %v1243_v14  ;;  %v1271_v0 = vld [vmem:[#allocation9 + $0x90] sm:$0xff] }
  0xff   : > { %1247 = vst.msk [vmem:[#allocation2 + $0x6] ss:$8 sm:$0xf] %vm5819_vm4, %v1244_v15  ;;  %v1335_v1 = vld [vmem:[#allocation9 + $0x290] sm:$0xff]  ;;  %v1260_v15 = vld [vmem:[#allocation9 + $0x38] sm:$0xff] }
 0x100   : > { %v1399_v2 = vld [vmem:[#allocation9 + $0x490] sm:$0xff] }
 0x101   : > { %v1267_v58 = vld [vmem:[#allocation9 + $0x70] sm:$0xff] }
 0x102   : > { %v1331_v5 = vld [vmem:[#allocation9 + $0x270] sm:$0xff] }
 0x103   : > { %v1395_v6 = vld [vmem:[#allocation9 + $0x470] sm:$0xff] }
 0x104   : > { %v1263_v8 = vld [vmem:[#allocation9 + $0x50] sm:$0xff] }
 0x105   : > { %v1327_v9 = vld [vmem:[#allocation9 + $0x250] sm:$0xff] }
 0x106   : > { %v5887_v17 = vld [vmem:[#allocation2] sm:$0x7f]  ;;  %v5889_v18 = vld [vmem:[#allocation2 + $0x8] sm:$0x7f]  ;;  %v5891_v19 = vld [vmem:[#allocation2 + $0x10] sm:$0x7f] }
 0x107   : > { %v5893_v20 = vld [vmem:[#allocation2 + $0x18] sm:$0x7f]  ;;  %1497 = vmatmul.f32.vlgmr.msra.gmra.mxu0 %v5887_v17  ;;  %1517 = vmatmul.f32.vlgmr.msrb.gmra.mxu1 %v5889_v18  ;;  %v1391_v10 = vld [vmem:[#allocation9 + $0x450] sm:$0xff] }
 0x108   : > { %1537 = vmatmul.f32.vlgmr.msrb.gmra.mxu2 %v5891_v19  ;;  %4969 = vmatmul.msk.f32.vlgmr.msra.gmra.mxu3 %vm1477_vm5, %v5893_v20  ;;  %v1259_v3 = vld [vmem:[#allocation9 + $0x30] sm:$0xff] }
 0x109   : > { %1641 = vmatpush.msrb.mxu2 %v1315_v13  ;;  %1661 = vmatpush.msra.mxu3 %v1379_v16  ;;  %v1323_v12 = vld [vmem:[#allocation9 + $0x230] sm:$0xff] }
 0x10a   : > { %1681 = vmatpush.msra.mxu0 %v1443_v21  ;;  %1721 = vmatpush.msrb.mxu1 %v1316_v22  ;;  %v1387_v14 = vld [vmem:[#allocation9 + $0x430] sm:$0xff]  ;;  %v1256_v22 = vld [vmem:[#allocation9 + $0x18] sm:$0xff] }
 0x10b   : > { %1642 = vmatpush.msrb.mxu2 %v1311_v26  ;;  %1662 = vmatpush.msra.mxu3 %v1375_v23  ;;  %v1255_v13 = vld [vmem:[#allocation9 + $0x10] sm:$0xff]  ;;  %v1444_v23 = vld [vmem:[#allocation9 + $0x5f8] sm:$0xff] }
 0x10c   : > { %1682 = vmatpush.msra.mxu0 %v1439_v24  ;;  %1722 = vmatpush.msrb.mxu1 %v1312_v25  ;;  %v1319_v16 = vld [vmem:[#allocation9 + $0x210] sm:$0xff]  ;;  %v1476_v24 = vld [vmem:[#allocation9 + $0x6f8] sm:$0xff]  ;;  %v1928_v25 = vld [vmem:[#allocation9 + $0xae0] sm:$0xff] }
 0x10d   : > { %1643 = vmatpush.msrb.mxu2 %v1307_v27  ;;  %1663 = vmatpush.msra.mxu3 %v1371_v28  ;;  %v1383_v21 = vld [vmem:[#allocation9 + $0x410] sm:$0xff]  ;;  %v1440_v28 = vld [vmem:[#allocation9 + $0x5d8] sm:$0xff] }
 0x10e   : > { %1683 = vmatpush.msra.mxu0 %v1435_v29  ;;  %1723 = vmatpush.msrb.mxu1 %v1308_v30  ;;  %v1475_v26 = vld [vmem:[#allocation9 + $0x6f0] sm:$0xff]  ;;  %v1472_v29 = vld [vmem:[#allocation9 + $0x6d8] sm:$0xff]  ;;  %v1924_v30 = vld [vmem:[#allocation9 + $0xac0] sm:$0xff] }
 0x10f   : > { %1644 = vmatpush.msrb.mxu2 %v1303_v31  ;;  %1664 = vmatpush.msra.mxu3 %v1367_v32  ;;  %v1471_v27 = vld [vmem:[#allocation9 + $0x6d0] sm:$0xff]  ;;  %v1436_v32 = vld [vmem:[#allocation9 + $0x5b8] sm:$0xff] }
 0x110   : > { %1684 = vmatpush.msra.mxu0 %v1431_v33  ;;  %1724 = vmatpush.msrb.mxu1 %v1304_v34  ;;  %v1467_v31 = vld [vmem:[#allocation9 + $0x6b0] sm:$0xff]  ;;  %v1468_v33 = vld [vmem:[#allocation9 + $0x6b8] sm:$0xff]  ;;  %v1920_v34 = vld [vmem:[#allocation9 + $0xaa0] sm:$0xff] }
 0x111   : > { %1577 = vmatmul.f32.vlgmr.msrb.gmra.mxu3 %v5887_v17  ;;  %1597 = vmatmul.f32.vlgmr.msrb.gmra.mxu0 %v5889_v18 }
 0x112   : > { %1617 = vmatmul.f32.vlgmr.msra.gmra.mxu1 %v5891_v19  ;;  %4970 = vmatmul.msk.f32.vlgmr.msra.gmra.mxu2 %vm1477_vm5, %v5893_v20 }
 0x113   : > { %1645 = vmatpush.msrb.mxu2 %v1299_v35  ;;  %1665 = vmatpush.msra.mxu3 %v1363_v36  ;;  %v1463_v35 = vld [vmem:[#allocation9 + $0x690] sm:$0xff]  ;;  %v1432_v36 = vld [vmem:[#allocation9 + $0x598] sm:$0xff] }
 0x114   : > { %1685 = vmatpush.msra.mxu0 %v1427_v37  ;;  %1725 = vmatpush.msrb.mxu1 %v1300_v38  ;;  %v1464_v37 = vld [vmem:[#allocation9 + $0x698] sm:$0xff]  ;;  %v1916_v38 = vld [vmem:[#allocation9 + $0xa80] sm:$0xff] }
 0x115   : > { %1646 = vmatpush.msrb.mxu2 %v1295_v40  ;;  %1666 = vmatpush.msra.mxu3 %v1359_v41  ;;  %v1459_v40 = vld [vmem:[#allocation9 + $0x670] sm:$0xff]  ;;  %v1428_v41 = vld [vmem:[#allocation9 + $0x578] sm:$0xff] }
 0x116   : > { %1686 = vmatpush.msra.mxu0 %v1423_v39  ;;  %1726 = vmatpush.msrb.mxu1 %v1296_v42  ;;  %v1460_v39 = vld [vmem:[#allocation9 + $0x678] sm:$0xff]  ;;  %v1912_v42 = vld [vmem:[#allocation9 + $0xa60] sm:$0xff] }
 0x117   : > { %1647 = vmatpush.msrb.mxu2 %v1291_v43  ;;  %1667 = vmatpush.msra.mxu3 %v1355_v44  ;;  %v1455_v43 = vld [vmem:[#allocation9 + $0x650] sm:$0xff]  ;;  %v1424_v44 = vld [vmem:[#allocation9 + $0x558] sm:$0xff] }
 0x118   : > { %1687 = vmatpush.msra.mxu0 %v1419_v46  ;;  %1727 = vmatpush.msrb.mxu1 %v1292_v47  ;;  %v1456_v46 = vld [vmem:[#allocation9 + $0x658] sm:$0xff]  ;;  %v1908_v47 = vld [vmem:[#allocation9 + $0xa40] sm:$0xff] }
 0x119   : > { %1648 = vmatpush.msrb.mxu2 %v1287_v48  ;;  %1668 = vmatpush.msra.mxu3 %v1351_v49  ;;  %v1451_v48 = vld [vmem:[#allocation9 + $0x630] sm:$0xff]  ;;  %v1420_v49 = vld [vmem:[#allocation9 + $0x538] sm:$0xff] }
 0x11a   : > { %1688 = vmatpush.msra.mxu0 %v1415_v50  ;;  %1728 = vmatpush.msrb.mxu1 %v1288_v51  ;;  %v1452_v50 = vld [vmem:[#allocation9 + $0x638] sm:$0xff]  ;;  %v1904_v51 = vld [vmem:[#allocation9 + $0xa20] sm:$0xff] }
 0x11b   : > { %1649 = vmatpush.msrb.mxu2 %v1283_v52  ;;  %1669 = vmatpush.msra.mxu3 %v1347_v45  ;;  %v1447_v52 = vld [vmem:[#allocation9 + $0x610] sm:$0xff]  ;;  %v1416_v45 = vld [vmem:[#allocation9 + $0x518] sm:$0xff] }
 0x11c   : > { %1689 = vmatpush.msra.mxu0 %v1411_v53  ;;  %1729 = vmatpush.msrb.mxu1 %v1284_v54  ;;  %v1448_v53 = vld [vmem:[#allocation9 + $0x618] sm:$0xff]  ;;  %v1900_v54 = vld [vmem:[#allocation9 + $0xa00] sm:$0xff] }
 0x11d   : > { %1650 = vmatpush.msrb.mxu2 %v1279_v55  ;;  %1670 = vmatpush.msra.mxu3 %v1343_v56  ;;  %v1380_v55 = vld [vmem:[#allocation9 + $0x3f8] sm:$0xff]  ;;  %v1864_v56 = vld [vmem:[#allocation9 + $0x8e0] sm:$0xff] }
 0x11e   : > { %1690 = vmatpush.msra.mxu0 %v1407_v57  ;;  %1730 = vmatpush.msrb.mxu1 %v1280_v59  ;;  %v1412_v57 = vld [vmem:[#allocation9 + $0x4f8] sm:$0xff]  ;;  %v1896_v59 = vld [vmem:[#allocation9 + $0x9e0] sm:$0xff] }
 0x11f   : > { %1651 = vmatpush.msrb.mxu2 %v1275_v60  ;;  %1671 = vmatpush.msra.mxu3 %v1339_v61  ;;  %v1376_v60 = vld [vmem:[#allocation9 + $0x3d8] sm:$0xff]  ;;  %v1860_v61 = vld [vmem:[#allocation9 + $0x8c0] sm:$0xff] }
 0x120   : > { %1691 = vmatpush.msra.mxu0 %v1403_v62  ;;  %1731 = vmatpush.msrb.mxu1 %v1276_v63  ;;  %v1408_v62 = vld [vmem:[#allocation9 + $0x4d8] sm:$0xff]  ;;  %v1892_v63 = vld [vmem:[#allocation9 + $0x9c0] sm:$0xff] }
 0x121   : > { %1652 = vmatpush.msrb.mxu2 %v1271_v0  ;;  %1672 = vmatpush.msra.mxu3 %v1335_v1  ;;  %v1372_v0 = vld [vmem:[#allocation9 + $0x3b8] sm:$0xff]  ;;  %v1856_v1 = vld [vmem:[#allocation9 + $0x8a0] sm:$0xff] }
 0x122   : > { %1692 = vmatpush.msra.mxu0 %v1399_v2  ;;  %1732 = vmatpush.msrb.mxu1 %v1272_v4  ;;  %v1404_v2 = vld [vmem:[#allocation9 + $0x4b8] sm:$0xff]  ;;  %v1888_v4 = vld [vmem:[#allocation9 + $0x9a0] sm:$0xff] }
 0x123   : > { %1653 = vmatpush.msrb.mxu2 %v1267_v58  ;;  %1673 = vmatpush.msra.mxu3 %v1331_v5  ;;  %v1368_v58 = vld [vmem:[#allocation9 + $0x398] sm:$0xff]  ;;  %v1852_v5 = vld [vmem:[#allocation9 + $0x880] sm:$0xff] }
 0x124   : > { %1693 = vmatpush.msra.mxu0 %v1395_v6  ;;  %1733 = vmatpush.msrb.mxu1 %v1268_v7  ;;  %v1400_v6 = vld [vmem:[#allocation9 + $0x498] sm:$0xff]  ;;  %v1884_v7 = vld [vmem:[#allocation9 + $0x980] sm:$0xff] }
 0x125   : > { %1654 = vmatpush.msrb.mxu2 %v1263_v8  ;;  %1674 = vmatpush.msra.mxu3 %v1327_v9  ;;  %v1364_v8 = vld [vmem:[#allocation9 + $0x378] sm:$0xff]  ;;  %v1848_v9 = vld [vmem:[#allocation9 + $0x860] sm:$0xff] }
 0x126   : > { %1694 = vmatpush.msra.mxu0 %v1391_v10  ;;  %1734 = vmatpush.msrb.mxu1 %v1264_v11  ;;  %v1396_v10 = vld [vmem:[#allocation9 + $0x478] sm:$0xff]  ;;  %v1880_v11 = vld [vmem:[#allocation9 + $0x960] sm:$0xff] }
 0x127   : > { %1655 = vmatpush.msrb.mxu2 %v1259_v3  ;;  %1675 = vmatpush.msra.mxu3 %v1323_v12  ;;  %v1360_v3 = vld [vmem:[#allocation9 + $0x358] sm:$0xff]  ;;  %v1844_v12 = vld [vmem:[#allocation9 + $0x840] sm:$0xff] }
 0x128   : > { %1695 = vmatpush.msra.mxu0 %v1387_v14  ;;  %1735 = vmatpush.msrb.mxu1 %v1260_v15  ;;  %v1392_v14 = vld [vmem:[#allocation9 + $0x458] sm:$0xff]  ;;  %v1876_v15 = vld [vmem:[#allocation9 + $0x940] sm:$0xff] }
 0x129   : > { %1656 = vmatpush.msrb.mxu2 %v1255_v13  ;;  %1676 = vmatpush.msra.mxu3 %v1319_v16  ;;  %v1356_v13 = vld [vmem:[#allocation9 + $0x338] sm:$0xff]  ;;  %v1840_v16 = vld [vmem:[#allocation9 + $0x820] sm:$0xff] }
 0x12a   : > { %1696 = vmatpush.msra.mxu0 %v1383_v21  ;;  %1736 = vmatpush.msrb.mxu1 %v1256_v22  ;;  %v1388_v21 = vld [vmem:[#allocation9 + $0x438] sm:$0xff]  ;;  %v1872_v22 = vld [vmem:[#allocation9 + $0x920] sm:$0xff] }
 0x12b   : > { %1657 = vmatmul.f32.vlgmr.msrb.gmra.mxu2 %v5887_v17  ;;  %1677 = vmatmul.f32.vlgmr.msra.gmra.mxu3 %v5889_v18 }
 0x12c   : > { %1697 = vmatmul.f32.vlgmr.msra.gmra.mxu0 %v5891_v19  ;;  %1709 = vmatpush.msra.mxu2 %v1475_v26  ;;  %v1352_v26 = vld [vmem:[#allocation9 + $0x318] sm:$0xff] }
 0x12d   : > { %1737 = vmatmul.f32.vlgmr.msrb.gmra.mxu1 %v5887_v17  ;;  %1761 = vmatpush.msrb.mxu3 %v1444_v23  ;;  %v1836_v23 = vld [vmem:[#allocation9 + $0x800] sm:$0xff] }
 0x12e   : > { %1789 = vmatpush.msrb.mxu0 %v1476_v24  ;;  %2048 = vmatpush.msra.mxu1 %v1928_v25  ;;  %v1384_v24 = vld [vmem:[#allocation9 + $0x418] sm:$0xff]  ;;  %v1868_v25 = vld [vmem:[#allocation9 + $0x900] sm:$0xff] }
 0x12f   : > { %1710 = vmatpush.msra.mxu2 %v1471_v27  ;;  %1762 = vmatpush.msrb.mxu3 %v1440_v28  ;;  %v1348_v27 = vld [vmem:[#allocation9 + $0x2f8] sm:$0xff]  ;;  %v1832_v28 = vld [vmem:[#allocation9 + $0x7e0] sm:$0xff] }
 0x130   : > { %1790 = vmatpush.msrb.mxu0 %v1472_v29  ;;  %2049 = vmatpush.msra.mxu1 %v1924_v30  ;;  %v2024_v29 = vld [vmem:[#allocation9 + $0xde0] sm:$0xff]  ;;  %v1993_v30 = vld [vmem:[#allocation9 + $0xce8] sm:$0xff] }
 0x131   : > { %1711 = vmatpush.msra.mxu2 %v1467_v31  ;;  %1763 = vmatpush.msrb.mxu3 %v1436_v32  ;;  %v1344_v31 = vld [vmem:[#allocation9 + $0x2d8] sm:$0xff]  ;;  %v1828_v32 = vld [vmem:[#allocation9 + $0x7c0] sm:$0xff] }
 0x132   : > { %1791 = vmatpush.msrb.mxu0 %v1468_v33  ;;  %2050 = vmatpush.msra.mxu1 %v1920_v34  ;;  %v2020_v33 = vld [vmem:[#allocation9 + $0xdc0] sm:$0xff]  ;;  %v1989_v34 = vld [vmem:[#allocation9 + $0xcc8] sm:$0xff] }
 0x133   : > { %1712 = vmatpush.msra.mxu2 %v1463_v35  ;;  %1764 = vmatpush.msrb.mxu3 %v1432_v36  ;;  %v1340_v35 = vld [vmem:[#allocation9 + $0x2b8] sm:$0xff]  ;;  %v1824_v36 = vld [vmem:[#allocation9 + $0x7a0] sm:$0xff] }
 0x134   : > { %1792 = vmatpush.msrb.mxu0 %v1464_v37  ;;  %2051 = vmatpush.msra.mxu1 %v1916_v38  ;;  %v2016_v37 = vld [vmem:[#allocation9 + $0xda0] sm:$0xff]  ;;  %v1985_v38 = vld [vmem:[#allocation9 + $0xca8] sm:$0xff] }
 0x135   : > { %1713 = vmatpush.msra.mxu2 %v1459_v40  ;;  %1765 = vmatpush.msrb.mxu3 %v1428_v41  ;;  %v1336_v40 = vld [vmem:[#allocation9 + $0x298] sm:$0xff]  ;;  %v1820_v41 = vld [vmem:[#allocation9 + $0x780] sm:$0xff] }
 0x136   : > { %1793 = vmatpush.msrb.mxu0 %v1460_v39  ;;  %2052 = vmatpush.msra.mxu1 %v1912_v42  ;;  %v2012_v39 = vld [vmem:[#allocation9 + $0xd80] sm:$0xff]  ;;  %v1981_v42 = vld [vmem:[#allocation9 + $0xc88] sm:$0xff] }
 0x137   : > { %1714 = vmatpush.msra.mxu2 %v1455_v43  ;;  %1766 = vmatpush.msrb.mxu3 %v1424_v44  ;;  %v1332_v43 = vld [vmem:[#allocation9 + $0x278] sm:$0xff]  ;;  %v1816_v44 = vld [vmem:[#allocation9 + $0x760] sm:$0xff] }
 0x138   : > { %1794 = vmatpush.msrb.mxu0 %v1456_v46  ;;  %2053 = vmatpush.msra.mxu1 %v1908_v47  ;;  %v2008_v46 = vld [vmem:[#allocation9 + $0xd60] sm:$0xff]  ;;  %v1977_v47 = vld [vmem:[#allocation9 + $0xc68] sm:$0xff] }
 0x139   : > { %1715 = vmatpush.msra.mxu2 %v1451_v48  ;;  %1767 = vmatpush.msrb.mxu3 %v1420_v49  ;;  %v1328_v48 = vld [vmem:[#allocation9 + $0x258] sm:$0xff]  ;;  %v1812_v49 = vld [vmem:[#allocation9 + $0x740] sm:$0xff] }
 0x13a   : > { %1795 = vmatpush.msrb.mxu0 %v1452_v50  ;;  %2054 = vmatpush.msra.mxu1 %v1904_v51  ;;  %v2004_v50 = vld [vmem:[#allocation9 + $0xd40] sm:$0xff]  ;;  %v1973_v51 = vld [vmem:[#allocation9 + $0xc48] sm:$0xff] }
 0x13b   : > { %1716 = vmatpush.msra.mxu2 %v1447_v52  ;;  %1768 = vmatpush.msrb.mxu3 %v1416_v45  ;;  %v1324_v52 = vld [vmem:[#allocation9 + $0x238] sm:$0xff]  ;;  %v1808_v45 = vld [vmem:[#allocation9 + $0x720] sm:$0xff] }
 0x13c   : > { %1796 = vmatpush.msrb.mxu0 %v1448_v53  ;;  %2055 = vmatpush.msra.mxu1 %v1900_v54  ;;  %v2000_v53 = vld [vmem:[#allocation9 + $0xd20] sm:$0xff]  ;;  %v1969_v54 = vld [vmem:[#allocation9 + $0xc28] sm:$0xff] }
 0x13d   : > { %4971 = vmatmul.msk.f32.vlgmr.msra.gmra.mxu2 %vm1477_vm5, %v5893_v20  ;;  %4972 = vmatmul.msk.f32.vlgmr.msrb.gmra.mxu0 %vm1477_vm5, %v5893_v20 }
 0x13e   : > { %1741 = vmatpush.msrb.mxu2 %v1380_v55  ;;  %2028 = vmatpush.msra.mxu0 %v1864_v56  ;;  %v1320_v55 = vld [vmem:[#allocation9 + $0x218] sm:$0xff]  ;;  %v1804_v56 = vld [vmem:[#allocation9 + $0x700] sm:$0xff] }
 0x13f   : > { %1769 = vmatpush.msrb.mxu3 %v1412_v57  ;;  %2056 = vmatpush.msra.mxu1 %v1896_v59  ;;  %v1996_v57 = vld [vmem:[#allocation9 + $0xd00] sm:$0xff]  ;;  %v1965_v59 = vld [vmem:[#allocation9 + $0xc08] sm:$0xff] }
 0x140   : > { %1742 = vmatpush.msrb.mxu2 %v1376_v60  ;;  %2029 = vmatpush.msra.mxu0 %v1860_v61  ;;  %v1992_v60 = vld [vmem:[#allocation9 + $0xce0] sm:$0xff]  ;;  %v1865_v61 = vld [vmem:[#allocation9 + $0x8e8] sm:$0xff] }
 0x141   : > { %1770 = vmatpush.msrb.mxu3 %v1408_v62  ;;  %2057 = vmatpush.msra.mxu1 %v1892_v63  ;;  %v1929_v62 = vld [vmem:[#allocation9 + $0xae8] sm:$0xff] }
 0x142   : > { %1743 = vmatpush.msrb.mxu2 %v1372_v0  ;;  %2030 = vmatpush.msra.mxu0 %v1856_v1  ;;  %v1961_v63 = vld [vmem:[#allocation9 + $0xbe8] sm:$0xff]  ;;  %v1988_v0 = vld [vmem:[#allocation9 + $0xcc0] sm:$0xff] }
 0x143   : > { %1771 = vmatpush.msrb.mxu3 %v1404_v2  ;;  %2058 = vmatpush.msra.mxu1 %v1888_v4  ;;  %v1861_v1 = vld [vmem:[#allocation9 + $0x8c8] sm:$0xff] }
 0x144   : > { %1744 = vmatpush.msrb.mxu2 %v1368_v58  ;;  %2031 = vmatpush.msra.mxu0 %v1852_v5  ;;  %v1925_v2 = vld [vmem:[#allocation9 + $0xac8] sm:$0xff]  ;;  %v1984_v58 = vld [vmem:[#allocation9 + $0xca0] sm:$0xff] }
 0x145   : > { %1772 = vmatpush.msrb.mxu3 %v1400_v6  ;;  %2059 = vmatpush.msra.mxu1 %v1884_v7  ;;  %v1957_v4 = vld [vmem:[#allocation9 + $0xbc8] sm:$0xff] }
 0x146   : > { %1745 = vmatpush.msrb.mxu2 %v1364_v8  ;;  %2032 = vmatpush.msra.mxu0 %v1848_v9  ;;  %v1857_v5 = vld [vmem:[#allocation9 + $0x8a8] sm:$0xff]  ;;  %v1980_v8 = vld [vmem:[#allocation9 + $0xc80] sm:$0xff] }
 0x147   : > { %1773 = vmatpush.msrb.mxu3 %v1396_v10  ;;  %2060 = vmatpush.msra.mxu1 %v1880_v11  ;;  %v1921_v6 = vld [vmem:[#allocation9 + $0xaa8] sm:$0xff] }
 0x148   : > { %1746 = vmatpush.msrb.mxu2 %v1360_v3  ;;  %2033 = vmatpush.msra.mxu0 %v1844_v12  ;;  %v1953_v7 = vld [vmem:[#allocation9 + $0xba8] sm:$0xff]  ;;  %v1976_v3 = vld [vmem:[#allocation9 + $0xc60] sm:$0xff] }
 0x149   : > { %1774 = vmatpush.msrb.mxu3 %v1392_v14  ;;  %2061 = vmatpush.msra.mxu1 %v1876_v15  ;;  %v1853_v9 = vld [vmem:[#allocation9 + $0x888] sm:$0xff] }
 0x14a   : > { %1747 = vmatpush.msrb.mxu2 %v1356_v13  ;;  %2034 = vmatpush.msra.mxu0 %v1840_v16  ;;  %v1917_v10 = vld [vmem:[#allocation9 + $0xa88] sm:$0xff]  ;;  %v1972_v13 = vld [vmem:[#allocation9 + $0xc40] sm:$0xff] }
 0x14b   : > { %1775 = vmatpush.msrb.mxu3 %v1388_v21  ;;  %2062 = vmatpush.msra.mxu1 %v1872_v22  ;;  %v1949_v11 = vld [vmem:[#allocation9 + $0xb88] sm:$0xff] }
 0x14c   : > { %1748 = vmatpush.msrb.mxu2 %v1352_v26  ;;  %2035 = vmatpush.msra.mxu0 %v1836_v23  ;;  %v1849_v12 = vld [vmem:[#allocation9 + $0x868] sm:$0xff]  ;;  %v1968_v26 = vld [vmem:[#allocation9 + $0xc20] sm:$0xff] }
 0x14d   : > { %1776 = vmatpush.msrb.mxu3 %v1384_v24  ;;  %2063 = vmatpush.msra.mxu1 %v1868_v25  ;;  %v1913_v14 = vld [vmem:[#allocation9 + $0xa68] sm:$0xff] }
 0x14e   : > { %1749 = vmatpush.msrb.mxu2 %v1348_v27  ;;  %1777 = vmatmul.f32.vlgmr.msrb.gmra.mxu3 %v5891_v19  ;;  %v1945_v15 = vld [vmem:[#allocation9 + $0xb68] sm:$0xff]  ;;  %v1964_v27 = vld [vmem:[#allocation9 + $0xc00] sm:$0xff] }
 0x14f   : > { %2036 = vmatpush.msra.mxu0 %v1832_v28  ;;  %2064 = vmatmul.f32.vlgmr.msra.gmra.mxu1 %v5889_v18  ;;  %v1845_v16 = vld [vmem:[#allocation9 + $0x848] sm:$0xff] }
 0x150   : > { %2096 = vmatpush.msra.mxu3 %v2024_v29  ;;  %2148 = vmatpush.msrb.mxu1 %v1993_v30  ;;  %v1909_v21 = vld [vmem:[#allocation9 + $0xa48] sm:$0xff] }
 0x151   : > { %1750 = vmatpush.msrb.mxu2 %v1344_v31  ;;  %2037 = vmatpush.msra.mxu0 %v1828_v32  ;;  %v1941_v22 = vld [vmem:[#allocation9 + $0xb48] sm:$0xff]  ;;  %v1960_v31 = vld [vmem:[#allocation9 + $0xbe0] sm:$0xff] }
 0x152   : > { %2097 = vmatpush.msra.mxu3 %v2020_v33  ;;  %2149 = vmatpush.msrb.mxu1 %v1989_v34  ;;  %v1841_v23 = vld [vmem:[#allocation9 + $0x828] sm:$0xff]  ;;  %v1956_v34 = vld [vmem:[#allocation9 + $0xbc0] sm:$0xff] }
 0x153   : > { %1751 = vmatpush.msrb.mxu2 %v1340_v35  ;;  %2038 = vmatpush.msra.mxu0 %v1824_v36  ;;  %v1905_v24 = vld [vmem:[#allocation9 + $0xa28] sm:$0xff]  ;;  %v2026_v35 = vld [vmem:[#allocation9 + $0xdf0] sm:$0xff] }
 0x154   : > { %2098 = vmatpush.msra.mxu3 %v2016_v37  ;;  %2150 = vmatpush.msrb.mxu1 %v1985_v38  ;;  %v1937_v25 = vld [vmem:[#allocation9 + $0xb28] sm:$0xff]  ;;  %v1952_v38 = vld [vmem:[#allocation9 + $0xba0] sm:$0xff] }
 0x155   : > { %1752 = vmatpush.msrb.mxu2 %v1336_v40  ;;  %2039 = vmatpush.msra.mxu0 %v1820_v41  ;;  %v1837_v28 = vld [vmem:[#allocation9 + $0x808] sm:$0xff]  ;;  %v2022_v40 = vld [vmem:[#allocation9 + $0xdd0] sm:$0xff] }
 0x156   : > { %2099 = vmatpush.msra.mxu3 %v2012_v39  ;;  %2151 = vmatpush.msrb.mxu1 %v1981_v42  ;;  %v1901_v29 = vld [vmem:[#allocation9 + $0xa08] sm:$0xff]  ;;  %v1948_v42 = vld [vmem:[#allocation9 + $0xb80] sm:$0xff] }
 0x157   : > { %1753 = vmatpush.msrb.mxu2 %v1332_v43  ;;  %2040 = vmatpush.msra.mxu0 %v1816_v44  ;;  %v1933_v30 = vld [vmem:[#allocation9 + $0xb08] sm:$0xff]  ;;  %v2018_v43 = vld [vmem:[#allocation9 + $0xdb0] sm:$0xff] }
 0x158   : > { %2100 = vmatpush.msra.mxu3 %v2008_v46  ;;  %2152 = vmatpush.msrb.mxu1 %v1977_v47  ;;  %v1833_v32 = vld [vmem:[#allocation9 + $0x7e8] sm:$0xff]  ;;  %v1944_v47 = vld [vmem:[#allocation9 + $0xb60] sm:$0xff] }
 0x159   : > { %1754 = vmatpush.msrb.mxu2 %v1328_v48  ;;  %2041 = vmatpush.msra.mxu0 %v1812_v49  ;;  %v1897_v33 = vld [vmem:[#allocation9 + $0x9e8] sm:$0xff]  ;;  %v2014_v48 = vld [vmem:[#allocation9 + $0xd90] sm:$0xff] }
 0x15a   : > { %2101 = vmatpush.msra.mxu3 %v2004_v50  ;;  %2153 = vmatpush.msrb.mxu1 %v1973_v51  ;;  %v1829_v36 = vld [vmem:[#allocation9 + $0x7c8] sm:$0xff]  ;;  %v1940_v51 = vld [vmem:[#allocation9 + $0xb40] sm:$0xff] }
 0x15b   : > { %1755 = vmatpush.msrb.mxu2 %v1324_v52  ;;  %2042 = vmatpush.msra.mxu0 %v1808_v45  ;;  %v1893_v37 = vld [vmem:[#allocation9 + $0x9c8] sm:$0xff]  ;;  %v2010_v52 = vld [vmem:[#allocation9 + $0xd70] sm:$0xff] }
 0x15c   : > { %2102 = vmatpush.msra.mxu3 %v2000_v53  ;;  %2154 = vmatpush.msrb.mxu1 %v1969_v54  ;;  %v1825_v41 = vld [vmem:[#allocation9 + $0x7a8] sm:$0xff]  ;;  %v1936_v54 = vld [vmem:[#allocation9 + $0xb20] sm:$0xff] }
 0x15d   : > { %1756 = vmatpush.msrb.mxu2 %v1320_v55  ;;  %2043 = vmatpush.msra.mxu0 %v1804_v56  ;;  %v1889_v39 = vld [vmem:[#allocation9 + $0x9a8] sm:$0xff]  ;;  %v2006_v55 = vld [vmem:[#allocation9 + $0xd50] sm:$0xff] }
 0x15e   : > { %2103 = vmatpush.msra.mxu3 %v1996_v57  ;;  %2155 = vmatpush.msrb.mxu1 %v1965_v59  ;;  %v1821_v44 = vld [vmem:[#allocation9 + $0x788] sm:$0xff]  ;;  %v1932_v59 = vld [vmem:[#allocation9 + $0xb00] sm:$0xff] }
 0x15f   : > { %1757 = vmatmul.f32.vlgmr.msrb.gmra.mxu2 %v5889_v18  ;;  %2044 = vmatmul.f32.vlgmr.msra.gmra.mxu0 %v5887_v17  ;;  %v1885_v46 = vld [vmem:[#allocation9 + $0x988] sm:$0xff] }
 0x160   : > { %2068 = vmatpush.msra.mxu2 %v1992_v60  ;;  %4973 = vmatmul.msk.f32.vlgmr.msra.gmra.mxu3 %vm1477_vm5, %v5893_v20  ;;  %v1817_v49 = vld [vmem:[#allocation9 + $0x768] sm:$0xff]  ;;  %v2002_v60 = vld [vmem:[#allocation9 + $0xd30] sm:$0xff] }
 0x161   : > { %2108 = vmatpush.msrb.mxu3 %v1865_v61  ;;  %2128 = vmatpush.msrb.mxu0 %v1929_v62  ;;  %v1881_v50 = vld [vmem:[#allocation9 + $0x968] sm:$0xff] }
 0x162   : > { %2156 = vmatpush.msrb.mxu1 %v1961_v63  ;;  %2069 = vmatpush.msra.mxu2 %v1988_v0  ;;  %v1813_v45 = vld [vmem:[#allocation9 + $0x748] sm:$0xff]  ;;  %v1998_v63 = vld [vmem:[#allocation9 + $0xd10] sm:$0xff] }
 0x163   : > { %2109 = vmatpush.msrb.mxu3 %v1861_v1  ;;  %2129 = vmatpush.msrb.mxu0 %v1925_v2  ;;  %v1877_v53 = vld [vmem:[#allocation9 + $0x948] sm:$0xff]  ;;  %v1930_v1 = vld [vmem:[#allocation9 + $0xaf0] sm:$0xff] }
 0x164   : > { %2157 = vmatpush.msrb.mxu1 %v1957_v4  ;;  %2070 = vmatpush.msra.mxu2 %v1984_v58  ;;  %v1809_v56 = vld [vmem:[#allocation9 + $0x728] sm:$0xff]  ;;  %v1994_v2 = vld [vmem:[#allocation9 + $0xcf0] sm:$0xff]  ;;  %v1867_v58 = vld [vmem:[#allocation9 + $0x8f8] sm:$0xff] }
 0x165   : > { %2110 = vmatpush.msrb.mxu3 %v1857_v5  ;;  %2130 = vmatpush.msrb.mxu0 %v1921_v6  ;;  %v1873_v57 = vld [vmem:[#allocation9 + $0x928] sm:$0xff]  ;;  %v1926_v5 = vld [vmem:[#allocation9 + $0xad0] sm:$0xff] }
 0x166   : > { %2158 = vmatpush.msrb.mxu1 %v1953_v7  ;;  %2071 = vmatpush.msra.mxu2 %v1980_v8  ;;  %v1805_v61 = vld [vmem:[#allocation9 + $0x708] sm:$0xff]  ;;  %v1990_v6 = vld [vmem:[#allocation9 + $0xcd0] sm:$0xff] }
 0x167   : > { %2111 = vmatpush.msrb.mxu3 %v1853_v9  ;;  %2131 = vmatpush.msrb.mxu0 %v1917_v10  ;;  %v1869_v62 = vld [vmem:[#allocation9 + $0x908] sm:$0xff]  ;;  %v1922_v8 = vld [vmem:[#allocation9 + $0xab0] sm:$0xff] }
 0x168   : > { %2159 = vmatpush.msrb.mxu1 %v1949_v11  ;;  %2072 = vmatpush.msra.mxu2 %v1976_v3  ;;  %v2025_v0 = vld [vmem:[#allocation9 + $0xde8] sm:$0xff]  ;;  %v1986_v9 = vld [vmem:[#allocation9 + $0xcb0] sm:$0xff] }
 0x169   : > { %2112 = vmatpush.msrb.mxu3 %v1849_v12  ;;  %2132 = vmatpush.msrb.mxu0 %v1913_v14  ;;  %v2021_v4 = vld [vmem:[#allocation9 + $0xdc8] sm:$0xff]  ;;  %v1918_v10 = vld [vmem:[#allocation9 + $0xa90] sm:$0xff]  ;;  %v1855_v12 = vld [vmem:[#allocation9 + $0x898] sm:$0xff] }
 0x16a   : > { %2160 = vmatpush.msrb.mxu1 %v1945_v15  ;;  %2073 = vmatpush.msra.mxu2 %v1972_v13  ;;  %v2017_v7 = vld [vmem:[#allocation9 + $0xda8] sm:$0xff]  ;;  %v1982_v11 = vld [vmem:[#allocation9 + $0xc90] sm:$0xff]  ;;  %v1851_v13 = vld [vmem:[#allocation9 + $0x878] sm:$0xff] }
 0x16b   : > { %2113 = vmatpush.msrb.mxu3 %v1845_v16  ;;  %2133 = vmatpush.msrb.mxu0 %v1909_v21  ;;  %v2009_v3 = vld [vmem:[#allocation9 + $0xd68] sm:$0xff]  ;;  %v1914_v14 = vld [vmem:[#allocation9 + $0xa70] sm:$0xff] }
 0x16c   : > { %2161 = vmatpush.msrb.mxu1 %v1941_v22  ;;  %2074 = vmatpush.msra.mxu2 %v1968_v26  ;;  %v2005_v15 = vld [vmem:[#allocation9 + $0xd48] sm:$0xff]  ;;  %v1910_v16 = vld [vmem:[#allocation9 + $0xa50] sm:$0xff]  ;;  %v1847_v26 = vld [vmem:[#allocation9 + $0x858] sm:$0xff] }
 0x16d   : > { %2114 = vmatpush.msrb.mxu3 %v1841_v23  ;;  %2134 = vmatpush.msrb.mxu0 %v1905_v24  ;;  %v1974_v21 = vld [vmem:[#allocation9 + $0xc50] sm:$0xff]  ;;  %v2001_v22 = vld [vmem:[#allocation9 + $0xd28] sm:$0xff] }
 0x16e   : > { %2162 = vmatpush.msrb.mxu1 %v1937_v25  ;;  %2075 = vmatpush.msra.mxu2 %v1964_v27  ;;  %v1906_v23 = vld [vmem:[#allocation9 + $0xa30] sm:$0xff]  ;;  %v1997_v25 = vld [vmem:[#allocation9 + $0xd08] sm:$0xff]  ;;  %v1843_v27 = vld [vmem:[#allocation9 + $0x838] sm:$0xff] }
 0x16f   : > { %2115 = vmatpush.msrb.mxu3 %v1837_v28  ;;  %2135 = vmatpush.msrb.mxu0 %v1901_v29  ;;  %v1970_v24 = vld [vmem:[#allocation9 + $0xc30] sm:$0xff] }
 0x170   : > { %2163 = vmatpush.msrb.mxu1 %v1933_v30  ;;  %2076 = vmatpush.msra.mxu2 %v1960_v31  ;;  %v1902_v28 = vld [vmem:[#allocation9 + $0xa10] sm:$0xff]  ;;  %v1839_v30 = vld [vmem:[#allocation9 + $0x818] sm:$0xff] }
 0x171   : > { %2116 = vmatpush.msrb.mxu3 %v1833_v32  ;;  %2136 = vmatpush.msrb.mxu0 %v1897_v33  ;;  %v1966_v29 = vld [vmem:[#allocation9 + $0xc10] sm:$0xff] }
 0x172   : > { %2164 = vmatmul.f32.vlgmr.msrb.gmra.mxu1 %v5891_v19  ;;  %2077 = vmatpush.msra.mxu2 %v1956_v34  ;;  %v1866_v31 = vld [vmem:[#allocation9 + $0x8f0] sm:$0xff]  ;;  %v5925_v34 = vld [vmem:[#allocation2 + $0x18] sm:$0x7f] }
 0x173   : > { %2256 = vmatpush.msra.mxu1 %v2026_v35  ;;  %2117 = vmatpush.msrb.mxu3 %v1829_v36  ;;  %v1898_v32 = vld [vmem:[#allocation9 + $0x9f0] sm:$0xff]  ;;  %v1835_v35 = vld [vmem:[#allocation9 + $0x7f8] sm:$0xff] }
 0x174   : > { %2137 = vmatpush.msrb.mxu0 %v1893_v37  ;;  %2078 = vmatpush.msra.mxu2 %v1952_v38  ;;  %v1962_v33 = vld [vmem:[#allocation9 + $0xbf0] sm:$0xff] }
 0x175   : > { %2257 = vmatpush.msra.mxu1 %v2022_v40  ;;  %2118 = vmatpush.msrb.mxu3 %v1825_v41  ;;  %v1862_v36 = vld [vmem:[#allocation9 + $0x8d0] sm:$0xff]  ;;  %v1831_v40 = vld [vmem:[#allocation9 + $0x7d8] sm:$0xff] }
 0x176   : > { %2138 = vmatpush.msrb.mxu0 %v1889_v39  ;;  %2079 = vmatpush.msra.mxu2 %v1948_v42  ;;  %v1894_v37 = vld [vmem:[#allocation9 + $0x9d0] sm:$0xff] }
 0x177   : > { %2258 = vmatpush.msra.mxu1 %v2018_v43  ;;  %2119 = vmatpush.msrb.mxu3 %v1821_v44  ;;  %v1958_v38 = vld [vmem:[#allocation9 + $0xbd0] sm:$0xff]  ;;  %v1827_v43 = vld [vmem:[#allocation9 + $0x7b8] sm:$0xff] }
 0x178   : > { %2139 = vmatpush.msrb.mxu0 %v1885_v46  ;;  %2080 = vmatpush.msra.mxu2 %v1944_v47  ;;  %v1858_v41 = vld [vmem:[#allocation9 + $0x8b0] sm:$0xff] }
 0x179   : > { %2259 = vmatpush.msra.mxu1 %v2014_v48  ;;  %2120 = vmatpush.msrb.mxu3 %v1817_v49  ;;  %v1890_v39 = vld [vmem:[#allocation9 + $0x9b0] sm:$0xff]  ;;  %v1823_v48 = vld [vmem:[#allocation9 + $0x798] sm:$0xff] }
 0x17a   : > { %2140 = vmatpush.msrb.mxu0 %v1881_v50  ;;  %2081 = vmatpush.msra.mxu2 %v1940_v51  ;;  %v1954_v42 = vld [vmem:[#allocation9 + $0xbb0] sm:$0xff] }
 0x17b   : > { %2260 = vmatpush.msra.mxu1 %v2010_v52  ;;  %2121 = vmatpush.msrb.mxu3 %v1813_v45  ;;  %v1854_v44 = vld [vmem:[#allocation9 + $0x890] sm:$0xff]  ;;  %v1819_v52 = vld [vmem:[#allocation9 + $0x778] sm:$0xff] }
 0x17c   : > { %2141 = vmatpush.msrb.mxu0 %v1877_v53  ;;  %2082 = vmatpush.msra.mxu2 %v1936_v54  ;;  %v1886_v46 = vld [vmem:[#allocation9 + $0x990] sm:$0xff] }
 0x17d   : > { %2261 = vmatpush.msra.mxu1 %v2006_v55  ;;  %2122 = vmatpush.msrb.mxu3 %v1809_v56  ;;  %v1950_v47 = vld [vmem:[#allocation9 + $0xb90] sm:$0xff]  ;;  %v1815_v55 = vld [vmem:[#allocation9 + $0x758] sm:$0xff] }
 0x17e   : > { %2142 = vmatpush.msrb.mxu0 %v1873_v57  ;;  %2083 = vmatpush.msra.mxu2 %v1932_v59  ;;  %v1850_v49 = vld [vmem:[#allocation9 + $0x870] sm:$0xff] }
 0x17f   : > { %2262 = vmatpush.msra.mxu1 %v2002_v60  ;;  %2123 = vmatpush.msrb.mxu3 %v1805_v61  ;;  %v1882_v50 = vld [vmem:[#allocation9 + $0x970] sm:$0xff]  ;;  %v1811_v60 = vld [vmem:[#allocation9 + $0x738] sm:$0xff] }
 0x180   : > { %2143 = vmatpush.msrb.mxu0 %v1869_v62  ;;  %2084 = vmatmul.f32.vlgmr.msra.gmra.mxu2 %v5891_v19  ;;  %v1863_v19 = vld [vmem:[#allocation9 + $0x8d8] sm:$0xff]  ;;  %v1946_v51 = vld [vmem:[#allocation9 + $0xb70] sm:$0xff] }
 0x181   : > { %2263 = vmatpush.msra.mxu1 %v1998_v63  ;;  %2124 = vmatmul.f32.vlgmr.msrb.gmra.mxu3 %v5887_v17  ;;  %v2013_v17 = vld [vmem:[#allocation9 + $0xd88] sm:$0xff]  ;;  %v1846_v45 = vld [vmem:[#allocation9 + $0x850] sm:$0xff] }
 0x182   : > { %2144 = vmatmul.f32.vlgmr.msrb.gmra.mxu0 %v5889_v18  ;;  %2176 = vmatpush.msrb.mxu2 %v2025_v0  ;;  %v1859_v18 = vld [vmem:[#allocation9 + $0x8b8] sm:$0xff]  ;;  %v1878_v53 = vld [vmem:[#allocation9 + $0x950] sm:$0xff] }
 0x183   : > { %2208 = vmatpush.msra.mxu3 %v1930_v1  ;;  %2228 = vmatpush.msra.mxu0 %v1994_v2  ;;  %v1942_v54 = vld [vmem:[#allocation9 + $0xb50] sm:$0xff]  ;;  %v1807_v0 = vld [vmem:[#allocation9 + $0x718] sm:$0xff] }
 0x184   : > { %4975 = vmatmul.msk.f32.vlgmr.msra.gmra.mxu1 %vm1477_vm5, %v5893_v20  ;;  %2177 = vmatpush.msrb.mxu2 %v2021_v4  ;;  %v1978_v20 = vld [vmem:[#allocation9 + $0xc70] sm:$0xff]  ;;  %v1995_v2 = vld [vmem:[#allocation9 + $0xcf8] sm:$0xff] }
 0x185   : > { %2268 = vmatpush.msrb.mxu1 %v1867_v58  ;;  %2209 = vmatpush.msra.mxu3 %v1926_v5  ;;  %v1842_v56 = vld [vmem:[#allocation9 + $0x830] sm:$0xff]  ;;  %v2027_v4 = vld [vmem:[#allocation9 + $0xdf8] sm:$0xff]  ;;  %v5929_v5 = vld [vmem:[#allocation2 + $0x8] sm:$0x7f] }
 0x186   : > { %2229 = vmatpush.msra.mxu0 %v1990_v6  ;;  %2178 = vmatpush.msrb.mxu2 %v2017_v7  ;;  %v1874_v57 = vld [vmem:[#allocation9 + $0x930] sm:$0xff]  ;;  %v1991_v7 = vld [vmem:[#allocation9 + $0xcd8] sm:$0xff] }
 0x187   : > { %2269 = vmatpush.msrb.mxu1 %v1863_v19  ;;  %2210 = vmatpush.msra.mxu3 %v1922_v8  ;;  %v1938_v59 = vld [vmem:[#allocation9 + $0xb30] sm:$0xff]  ;;  %v5935_v19 = vld [vmem:[#allocation2] sm:$0x7f]  ;;  %v2023_v8 = vld [vmem:[#allocation9 + $0xdd8] sm:$0xff] }
 0x188   : > { %2230 = vmatpush.msra.mxu0 %v1986_v9  ;;  %2179 = vmatpush.msrb.mxu2 %v2013_v17  ;;  %v1838_v61 = vld [vmem:[#allocation9 + $0x810] sm:$0xff]  ;;  %v1987_v17 = vld [vmem:[#allocation9 + $0xcb8] sm:$0xff] }
 0x189   : > { %2270 = vmatpush.msrb.mxu1 %v1859_v18  ;;  %2211 = vmatpush.msra.mxu3 %v1918_v10  ;;  %v1870_v62 = vld [vmem:[#allocation9 + $0x910] sm:$0xff]  ;;  %v2019_v18 = vld [vmem:[#allocation9 + $0xdb8] sm:$0xff] }
 0x18a   : > { %2231 = vmatpush.msra.mxu0 %v1982_v11  ;;  %2180 = vmatpush.msrb.mxu2 %v2009_v3  ;;  %v1934_v63 = vld [vmem:[#allocation9 + $0xb10] sm:$0xff]  ;;  %v1983_v11 = vld [vmem:[#allocation9 + $0xc98] sm:$0xff] }
 0x18b   : > { %2271 = vmatpush.msrb.mxu1 %v1855_v12  ;;  %2212 = vmatpush.msra.mxu3 %v1914_v14  ;;  %v1834_v1 = vld [vmem:[#allocation9 + $0x7f0] sm:$0xff]  ;;  %v2015_v3 = vld [vmem:[#allocation9 + $0xd98] sm:$0xff] }
 0x18c   : > { %2232 = vmatpush.msra.mxu0 %v1978_v20  ;;  %2181 = vmatpush.msrb.mxu2 %v2005_v15  ;;  %v1830_v58 = vld [vmem:[#allocation9 + $0x7d0] sm:$0xff]  ;;  %v1979_v14 = vld [vmem:[#allocation9 + $0xc78] sm:$0xff] }
 0x18d   : > { %2272 = vmatpush.msrb.mxu1 %v1851_v13  ;;  %2213 = vmatpush.msra.mxu3 %v1910_v16  ;;  %v5932_v6 = vld [vmem:[#allocation2 + $0x10] sm:$0x7f]  ;;  %v2011_v20 = vld [vmem:[#allocation9 + $0xd78] sm:$0xff] }
 0x18e   : > { %2233 = vmatpush.msra.mxu0 %v1974_v21  ;;  %2182 = vmatpush.msrb.mxu2 %v2001_v22  ;;  %v1826_v9 = vld [vmem:[#allocation9 + $0x7b0] sm:$0xff]  ;;  %v1975_v13 = vld [vmem:[#allocation9 + $0xc58] sm:$0xff] }
 0x18f   : > { %2273 = vmatpush.msrb.mxu1 %v1847_v26  ;;  %2214 = vmatpush.msra.mxu3 %v1906_v23  ;;  %v1822_v10 = vld [vmem:[#allocation9 + $0x790] sm:$0xff]  ;;  %v2007_v16 = vld [vmem:[#allocation9 + $0xd58] sm:$0xff] }
 0x190   : > { %2234 = vmatpush.msra.mxu0 %v1970_v24  ;;  %2183 = vmatpush.msrb.mxu2 %v1997_v25  ;;  %v1818_v12 = vld [vmem:[#allocation9 + $0x770] sm:$0xff]  ;;  %v1971_v22 = vld [vmem:[#allocation9 + $0xc38] sm:$0xff] }
 0x191   : > { %2274 = vmatpush.msrb.mxu1 %v1843_v27  ;;  %2215 = vmatpush.msra.mxu3 %v1902_v28  ;;  %v1814_v15 = vld [vmem:[#allocation9 + $0x750] sm:$0xff]  ;;  %v2003_v26 = vld [vmem:[#allocation9 + $0xd38] sm:$0xff] }
 0x192   : > { %2235 = vmatpush.msra.mxu0 %v1966_v29  ;;  %4974 = vmatmul.msk.f32.vlgmr.msrb.gmra.mxu2 %vm1477_vm5, %v5925_v34  ;;  %v1810_v21 = vld [vmem:[#allocation9 + $0x730] sm:$0xff]  ;;  %v1967_v24 = vld [vmem:[#allocation9 + $0xc18] sm:$0xff] }
 0x193   : > { %2275 = vmatpush.msrb.mxu1 %v1839_v30  ;;  %2188 = vmatpush.msra.mxu2 %v1866_v31  ;;  %v1806_v23 = vld [vmem:[#allocation9 + $0x710] sm:$0xff]  ;;  %v1999_v25 = vld [vmem:[#allocation9 + $0xd18] sm:$0xff] }
 0x194   : > { %2216 = vmatpush.msra.mxu3 %v1898_v32  ;;  %2236 = vmatpush.msra.mxu0 %v1962_v33  ;;  %v1931_v27 = vld [vmem:[#allocation9 + $0xaf8] sm:$0xff] }
 0x195   : > { %2276 = vmatpush.msrb.mxu1 %v1835_v35  ;;  %2189 = vmatpush.msra.mxu2 %v1862_v36  ;;  %v1963_v28 = vld [vmem:[#allocation9 + $0xbf8] sm:$0xff] }
 0x196   : > { %2217 = vmatpush.msra.mxu3 %v1894_v37  ;;  %2237 = vmatpush.msra.mxu0 %v1958_v38  ;;  %v1927_v29 = vld [vmem:[#allocation9 + $0xad8] sm:$0xff] }
 0x197   : > { %2277 = vmatpush.msrb.mxu1 %v1831_v40  ;;  %2190 = vmatpush.msra.mxu2 %v1858_v41  ;;  %v1959_v30 = vld [vmem:[#allocation9 + $0xbd8] sm:$0xff] }
 0x198   : > { %2218 = vmatpush.msra.mxu3 %v1890_v39  ;;  %2238 = vmatpush.msra.mxu0 %v1954_v42  ;;  %v1923_v31 = vld [vmem:[#allocation9 + $0xab8] sm:$0xff] }
 0x199   : > { %2278 = vmatpush.msrb.mxu1 %v1827_v43  ;;  %2191 = vmatpush.msra.mxu2 %v1854_v44  ;;  %v1955_v32 = vld [vmem:[#allocation9 + $0xbb8] sm:$0xff] }
 0x19a   : > { %2219 = vmatpush.msra.mxu3 %v1886_v46  ;;  %2239 = vmatpush.msra.mxu0 %v1950_v47  ;;  %v1919_v33 = vld [vmem:[#allocation9 + $0xa98] sm:$0xff] }
 0x19b   : > { %2279 = vmatpush.msrb.mxu1 %v1823_v48  ;;  %2192 = vmatpush.msra.mxu2 %v1850_v49  ;;  %v1951_v35 = vld [vmem:[#allocation9 + $0xb98] sm:$0xff] }
 0x19c   : > { %2220 = vmatpush.msra.mxu3 %v1882_v50  ;;  %2240 = vmatpush.msra.mxu0 %v1946_v51  ;;  %v1915_v36 = vld [vmem:[#allocation9 + $0xa78] sm:$0xff] }
 0x19d   : > { %2280 = vmatpush.msrb.mxu1 %v1819_v52  ;;  %2193 = vmatpush.msra.mxu2 %v1846_v45  ;;  %v1947_v37 = vld [vmem:[#allocation9 + $0xb78] sm:$0xff]  ;;  %v1538_v45 = vpop.f32.mrf.mxu2 }
 0x19e   : > { %2221 = vmatpush.msra.mxu3 %v1878_v53  ;;  %2241 = vmatpush.msra.mxu0 %v1942_v54  ;;  %v1911_v38 = vld [vmem:[#allocation9 + $0xa58] sm:$0xff]  ;;  %v1498_v53 = vpop.f32.mrf.mxu0  ;;  %v1558_v54 = vpop.f32.mrf.mxu3 }
 0x19f   : > { %2281 = vmatpush.msrb.mxu1 %v1815_v55  ;;  %2194 = vmatpush.msra.mxu2 %v1842_v56  ;;  %v1943_v40 = vld [vmem:[#allocation9 + $0xb58] sm:$0xff]  ;;  %v1518_v56 = vpop.f32.mrf.mxu1 }
 0x1a0   : > { %2222 = vmatpush.msra.mxu3 %v1874_v57  ;;  %2242 = vmatpush.msra.mxu0 %v1938_v59  ;;  %v1907_v41 = vld [vmem:[#allocation9 + $0xa38] sm:$0xff] }
 0x1a1   : > { %2282 = vmatpush.msrb.mxu1 %v1811_v60  ;;  %2195 = vmatpush.msra.mxu2 %v1838_v61  ;;  %v1939_v39 = vld [vmem:[#allocation9 + $0xb38] sm:$0xff] }
 0x1a2   : > { %2223 = vmatpush.msra.mxu3 %v1870_v62  ;;  %2243 = vmatpush.msra.mxu0 %v1934_v63  ;;  %v1903_v42 = vld [vmem:[#allocation9 + $0xa18] sm:$0xff] }
 0x1a3   : > { %2283 = vmatpush.msrb.mxu1 %v1807_v0  ;;  %2196 = vmatpush.msra.mxu2 %v1834_v1  ;;  %v1935_v43 = vld [vmem:[#allocation9 + $0xb18] sm:$0xff] }
 0x1a4   : > { %2224 = vmatmul.f32.vlgmr.msra.gmra.mxu3 %v5929_v5  ;;  %2244 = vmatmul.f32.vlgmr.msra.gmra.mxu0 %v5932_v6  ;;  %v1899_v44 = vld [vmem:[#allocation9 + $0x9f8] sm:$0xff] }
 0x1a5   : > { %2284 = vmatmul.f32.vlgmr.msrb.gmra.mxu1 %v5935_v19  ;;  %2308 = vmatpush.msrb.mxu3 %v1995_v2  ;;  %v1895_v46 = vld [vmem:[#allocation9 + $0x9d8] sm:$0xff]  ;;  %v1638_v55 = vpop.f32.mrf.mxu2 }
 0x1a6   : > { %2336 = vmatpush.msrb.mxu0 %v2027_v4  ;;  %2197 = vmatpush.msra.mxu2 %v1830_v58  ;;  %v1891_v47 = vld [vmem:[#allocation9 + $0x9b8] sm:$0xff]  ;;  %v1598_v57 = vpop.f32.mrf.mxu0  ;;  %v1578_v60 = vpop.f32.mrf.mxu3 }
 0x1a7   : > { %2309 = vmatpush.msrb.mxu3 %v1991_v7  ;;  %v1887_v48 = vld [vmem:[#allocation9 + $0x998] sm:$0xff]  ;;  %v1618_v62 = vpop.f32.mrf.mxu1 }
 0x1a8   : > { %2337 = vmatpush.msrb.mxu0 %v2023_v8  ;;  %2198 = vmatpush.msra.mxu2 %v1826_v9  ;;  %v1883_v49 = vld [vmem:[#allocation9 + $0x978] sm:$0xff]  ;;  %v1519_v9 = vadd.f32 %v1518_v56, %v1498_v53  ;;  %v2578_v53 = vld [vmem:[#allocation9 + $0xe20] sm:$0xff] }
 0x1a9   : > { %2310 = vmatpush.msrb.mxu3 %v1987_v17  ;;  %v1879_v50 = vld [vmem:[#allocation9 + $0x958] sm:$0xff]  ;;  %v2666_v56 = vld [vmem:[#allocation9 + $0x10e0] sm:$0xff] }
 0x1aa   : > { %2338 = vmatpush.msrb.mxu0 %v2019_v18  ;;  %2199 = vmatpush.msra.mxu2 %v1822_v10  ;;  %v1875_v51 = vld [vmem:[#allocation9 + $0x938] sm:$0xff]  ;;  %v1539_v10 = vadd.f32 %v1538_v45, %v1519_v9  ;;  %v2674_v45 = vld [vmem:[#allocation9 + $0x1120] sm:$0xff] }
 0x1ab   : > { %2311 = vmatpush.msrb.mxu3 %v1983_v11  ;;  %v1871_v52 = vld [vmem:[#allocation9 + $0x918] sm:$0xff]  ;;  %v2654_v9 = vld [vmem:[#allocation9 + $0x1080] sm:$0xff] }
 0x1ac   : > { %2339 = vmatpush.msrb.mxu0 %v2015_v3  ;;  %2200 = vmatpush.msra.mxu2 %v1818_v12 }
 0x1ad   : > { %2312 = vmatpush.msrb.mxu3 %v1979_v14  ;;  %v5962_v14 = vld [vmem:[%s7032_s3 + $0x10] sm:$0xff] }
 0x1ae   : > { %2340 = vmatpush.msrb.mxu0 %v2011_v20  ;;  %2201 = vmatpush.msra.mxu2 %v1814_v15  ;;  %v5943_v59 = vpop.f32.mrf.mxu2  ;;  %v5945_v61 = vpop.f32.mrf.mxu0  ;;  %v1559_v20 = vadd.f32 %v1558_v54, %v1539_v10  ;;  %v2634_v15 = vld [vmem:[#allocation9 + $0xfe0] sm:$0xff]  ;;  %v2683_v10 = vld [vmem:[#allocation9 + $0x1168] sm:$0xff] }
 0x1af   : > { %2313 = vmatpush.msrb.mxu3 %v1975_v13  ;;  %v5949_v0 = vpop.f32.mrf.mxu3  ;;  %v5953_v2 = vpop.f32.mrf.mxu1  ;;  %v2630_v13 = vld [vmem:[#allocation9 + $0xfc0] sm:$0xff] }
 0x1b0   : > { %2341 = vmatpush.msrb.mxu0 %v2007_v16  ;;  %2202 = vmatpush.msra.mxu2 %v1810_v21  ;;  %v2626_v16 = vld [vmem:[#allocation9 + $0xfa0] sm:$0xff] }
 0x1b1   : > { %2314 = vmatpush.msrb.mxu3 %v1971_v22  ;;  %v2622_v22 = vld [vmem:[#allocation9 + $0xf80] sm:$0xff] }
 0x1b2   : > { %2342 = vmatpush.msrb.mxu0 %v2003_v26  ;;  %2203 = vmatpush.msra.mxu2 %v1806_v23  ;;  %v5971_v23 = vld [vmem:[%s7032_s3 + $0x18] sm:$0x3f]  ;;  %v2670_v54 = vld [vmem:[#allocation9 + $0x1100] sm:$0xff] }
 0x1b3   : > { %2315 = vmatpush.msrb.mxu3 %v1967_v24  ;;  %2204 = vmatmul.f32.vlgmr.msra.gmra.mxu2 %v5935_v19  ;;  %v1599_v24 = vadd.f32 %v1598_v57, %v1578_v60  ;;  %v2699_v57 = vld [vmem:[#allocation9 + $0x11e8] sm:$0xff]  ;;  %v2662_v60 = vld [vmem:[#allocation9 + $0x10c0] sm:$0xff] }
 0x1b4   : > { %2343 = vmatpush.msrb.mxu0 %v1999_v25  ;;  %2288 = vmatpush.msrb.mxu2 %v1931_v27  ;;  %v2618_v27 = vld [vmem:[#allocation9 + $0xf60] sm:$0xff] }
 0x1b5   : > { %4976 = vmatmul.msk.f32.vlgmr.msrb.gmra.mxu0 %vm1477_vm5, %v5925_v34  ;;  %2316 = vmatpush.msrb.mxu3 %v1963_v28  ;;  %v2614_v28 = vld [vmem:[#allocation9 + $0xf40] sm:$0xff] }
 0x1b6   : > { %2289 = vmatpush.msrb.mxu2 %v1927_v29 }
 0x1b7   : > { %2317 = vmatpush.msrb.mxu3 %v1959_v30  ;;  %v1619_v30 = vadd.f32 %v1618_v62, %v1599_v24  ;;  %v2695_v62 = vld [vmem:[#allocation9 + $0x11c8] sm:$0xff] }
 0x1b8   : > { %2290 = vmatpush.msrb.mxu2 %v1923_v31  ;;  %v2763_v24 = vld [vmem:[#allocation9 + $0x13e8] sm:$0xff] }
 0x1b9   : > { %2318 = vmatpush.msrb.mxu3 %v1955_v32  ;;  %v2610_v32 = vld [vmem:[#allocation9 + $0xf20] sm:$0xff] }
 0x1ba   : > { %2291 = vmatpush.msrb.mxu2 %v1919_v33  ;;  %v5951_v1 = vpop.f32.mrf.mxu0 }
 0x1bb   : > { %2319 = vmatpush.msrb.mxu3 %v1951_v35 }
 0x1bc   : > { %2292 = vmatpush.msrb.mxu2 %v1915_v36  ;;  %v2606_v36 = vld [vmem:[#allocation9 + $0xf00] sm:$0xff] }
 0x1bd   : > { %2320 = vmatpush.msrb.mxu3 %v1947_v37  ;;  %v5978_v37 = vld [vmem:[%s7032_s3] sm:$0xff] }
 0x1be   : > { %2293 = vmatpush.msrb.mxu2 %v1911_v38  ;;  %v1639_v38 = vadd.f32 %v1638_v55, %v1619_v30  ;;  %v2574_v55 = vld [vmem:[#allocation9 + $0xe00] sm:$0xff] }
 0x1bf   : > { %2321 = vmatpush.msrb.mxu3 %v1943_v40  ;;  %v2698_v40 = vld [vmem:[#allocation9 + $0x11e0] sm:$0xff] }
 0x1c0   : > { %2294 = vmatpush.msrb.mxu2 %v1907_v41  ;;  %v5947_v63 = vpop.f32.mrf.mxu2  ;;  %v2602_v41 = vld [vmem:[#allocation9 + $0xee0] sm:$0xff] }
 0x1c1   : > { %2322 = vmatpush.msrb.mxu3 %v1939_v39  ;;  %v2694_v39 = vld [vmem:[#allocation9 + $0x11c0] sm:$0xff] }
 0x1c2   : > { %2295 = vmatpush.msrb.mxu2 %v1903_v42  ;;  %v2598_v42 = vld [vmem:[#allocation9 + $0xec0] sm:$0xff] }
 0x1c3   : > { %2323 = vmatpush.msrb.mxu3 %v1935_v43  ;;  %v2690_v43 = vld [vmem:[#allocation9 + $0x11a0] sm:$0xff] }
 0x1c4   : > { %2296 = vmatpush.msrb.mxu2 %v1899_v44  ;;  %2324 = vmatmul.f32.vlgmr.msrb.gmra.mxu3 %v5932_v6  ;;  %v2594_v44 = vld [vmem:[#allocation9 + $0xea0] sm:$0xff] }
 0x1c6   : > { %2297 = vmatpush.msrb.mxu2 %v1895_v46  ;;  %v2686_v46 = vld [vmem:[#allocation9 + $0x1180] sm:$0xff] }
 0x1c8   : > { %2298 = vmatpush.msrb.mxu2 %v1891_v47  ;;  %v2590_v47 = vld [vmem:[#allocation9 + $0xe80] sm:$0xff] }
 0x1ca   : > { %2299 = vmatpush.msrb.mxu2 %v1887_v48  ;;  %v5989_v48 = vld [vmem:[%s7032_s3 + $0x8] sm:$0x3f] }
 0x1cc   : > { %2300 = vmatpush.msrb.mxu2 %v1883_v49  ;;  %v2065_v8 = vpop.f32.mrf.mxu1  ;;  %v2682_v49 = vld [vmem:[#allocation9 + $0x1160] sm:$0xff] }
 0x1ce   : > { %2301 = vmatpush.msrb.mxu2 %v1879_v50  ;;  %v2586_v50 = vld [vmem:[#allocation9 + $0xe60] sm:$0xff] }
 0x1d0   : > { %2302 = vmatpush.msrb.mxu2 %v1875_v51  ;;  %v2678_v51 = vld [vmem:[#allocation9 + $0x1140] sm:$0xff] }
 0x1d1   : > { %v5957_v58 = vpop.f32.mrf.mxu3 }
 0x1d2   : > { %2303 = vmatpush.msrb.mxu2 %v1871_v52  ;;  %v2582_v52 = vld [vmem:[#allocation9 + $0xe40] sm:$0xff] }
 0x1d3   : > { %2304 = vmatmul.f32.vlgmr.msrb.gmra.mxu2 %v5929_v5 }
 0x1dc   : > { %v2045_v7 = vpop.f32.mrf.mxu0 }
 0x1dd   : > { %v2066_v17 = vadd.f32 %v2065_v8, %v2045_v7  ;;  %v2658_v7 = vld [vmem:[#allocation9 + $0x10a0] sm:$0xff]  ;;  %v2691_v8 = vld [vmem:[#allocation9 + $0x11a8] sm:$0xff] }
 0x1e2   : > { %v5955_v4 = vpop.f32.mrf.mxu2 }
 0x1e3   : > { %v2105_v3 = vpop.f32.mrf.mxu3 }
 0x1ef   : > { %v2165_v29 = vpop.f32.mrf.mxu1 }
 0x1ff   : > { %v2145_v26 = vpop.f32.mrf.mxu0 }
 0x203   : > { %v2085_v18 = vpop.f32.mrf.mxu2 }
 0x204   : > { %v2086_v11 = vadd.f32 %v2085_v18, %v2066_v17  ;;  %v2125_v21 = vpop.f32.mrf.mxu3  ;;  %v2687_v17 = vld [vmem:[#allocation9 + $0x1188] sm:$0xff]  ;;  %v2650_v18 = vld [vmem:[#allocation9 + $0x1060] sm:$0xff] }
 0x205   : > { %v2146_v25 = vadd.f32 %v2145_v26, %v2125_v21  ;;  %v1679_v21 = vadd.f32 %v5949_v0, %v5943_v59  ;;  %v2755_v59 = vld [vmem:[#allocation9 + $0x13a8] sm:$0xff] }
 0x206   : > { %v2106_v12 = vadd.f32 %v2105_v3, %v2086_v11  ;;  %v2679_v11 = vld [vmem:[#allocation9 + $0x1148] sm:$0xff]  ;;  %v2642_v3 = vld [vmem:[#allocation9 + $0x1020] sm:$0xff] }
 0x207   : > { %v2166_v31 = vadd.f32 %v2165_v29, %v2146_v25  ;;  %v2667_v25 = vld [vmem:[#allocation9 + $0x10e8] sm:$0xff]  ;;  %v1699_v30 = vadd.f32 %v5945_v61, %v1679_v21  ;;  %v2758_v61 = vld [vmem:[#allocation9 + $0x13c0] sm:$0xff] }
 0x208   : > { %4979 = vmatpush.msk.msra.mxu0 %vm2358_vm6, %v2106_v12  ;;  %v2675_v12 = vld [vmem:[#allocation9 + $0x1128] sm:$0xff] }
 0x209   : > { %4980 = vmatmul.msk.f32.vlgmr.msra.gmra.mxu0 %vm2351_vm7, %v5962_v14  ;;  %v2759_v29 = vld [vmem:[#allocation9 + $0x13c8] sm:$0xff]  ;;  %v1719_v0 = vadd.f32 %v5947_v63, %v1699_v30  ;;  %v2754_v63 = vld [vmem:[#allocation9 + $0x13a0] sm:$0xff]  ;;  %v2792_v30 = vld [vmem:[#allocation9 + $0x14d0] sm:$0xff] }
 0x20a   : > { %4991 = vmatpush.msk.msrb.mxu0 %vm2358_vm6, %v1559_v20  ;;  %v2703_v21 = vld [vmem:[#allocation9 + $0x1208] sm:$0xff] }
 0x20c   : > { %2798 = vmatpush.msra.mxu0 %v2634_v15 }
 0x20e   : > { %2799 = vmatpush.msra.mxu0 %v2630_v13  ;;  %v2638_v13 = vld [vmem:[#allocation9 + $0x1000] sm:$0xff] }
 0x210   : > { %2800 = vmatpush.msra.mxu0 %v2626_v16  ;;  %v2671_v16 = vld [vmem:[#allocation9 + $0x1108] sm:$0xff] }
 0x211   : > { %4981 = vmatmul.msk.f32.gmra.mxu0 %vm2351_vm7, %v5971_v23 }
 0x212   : > { %2801 = vmatpush.msra.mxu0 %v2622_v22 }
 0x214   : > { %2802 = vmatpush.msra.mxu0 %v2618_v27 }
 0x215   : > { %v2185_v33 = vpop.f32.mrf.mxu2 }
 0x216   : > { %2803 = vmatpush.msra.mxu0 %v2614_v28  ;;  %v2186_v35 = vadd.f32 %v2185_v33, %v2166_v31  ;;  %v2265_v28 = vpop.f32.mrf.mxu1  ;;  %v2762_v33 = vld [vmem:[#allocation9 + $0x13e0] sm:$0xff] }
 0x218   : > { %2804 = vmatpush.msra.mxu0 %v2610_v32  ;;  %4982 = vmatpush.msk.msra.mxu1 %vm2358_vm6, %v2186_v35  ;;  %v2663_v32 = vld [vmem:[#allocation9 + $0x10c8] sm:$0xff] }
 0x219   : > { %4983 = vmatmul.msk.f32.vlgmr.msra.gmra.mxu1 %vm2351_vm7, %v5962_v14  ;;  %4992 = vmatmul.msk.f32.vlgmr.msrb.gmra.mxu0 %vm2351_vm7, %v5978_v37  ;;  %v2659_v35 = vld [vmem:[#allocation9 + $0x10a8] sm:$0xff] }
 0x21a   : > { %2805 = vmatpush.msra.mxu0 %v2606_v36  ;;  %4994 = vmatpush.msk.msrb.mxu1 %vm2358_vm6, %v1639_v38  ;;  %v2751_v36 = vld [vmem:[#allocation9 + $0x1388] sm:$0xff] }
 0x21b   : > { %v2655_v38 = vld [vmem:[#allocation9 + $0x1088] sm:$0xff] }
 0x21c   : > { %2818 = vmatpush.msra.mxu1 %v2698_v40  ;;  %2806 = vmatpush.msra.mxu0 %v2602_v41  ;;  %v2747_v40 = vld [vmem:[#allocation9 + $0x1368] sm:$0xff] }
 0x21d   : > { %v2651_v41 = vld [vmem:[#allocation9 + $0x1068] sm:$0xff] }
 0x21e   : > { %2819 = vmatpush.msra.mxu1 %v2694_v39  ;;  %2807 = vmatpush.msra.mxu0 %v2598_v42  ;;  %v2743_v39 = vld [vmem:[#allocation9 + $0x1348] sm:$0xff]  ;;  %v2750_v42 = vld [vmem:[#allocation9 + $0x1380] sm:$0xff] }
 0x220   : > { %2820 = vmatpush.msra.mxu1 %v2690_v43  ;;  %2808 = vmatpush.msra.mxu0 %v2594_v44  ;;  %v2647_v43 = vld [vmem:[#allocation9 + $0x1048] sm:$0xff] }
 0x221   : > { %4984 = vmatmul.msk.f32.gmra.mxu1 %vm2351_vm7, %v5971_v23  ;;  %4993 = vmatmul.msk.f32.gmra.mxu0 %vm2351_vm7, %v5989_v48  ;;  %v2245_v26 = vpop.f32.mrf.mxu0  ;;  %v2739_v44 = vld [vmem:[#allocation9 + $0x1328] sm:$0xff] }
 0x222   : > { %2821 = vmatpush.msra.mxu1 %v2686_v46  ;;  %2809 = vmatpush.msra.mxu0 %v2590_v47  ;;  %v2746_v46 = vld [vmem:[#allocation9 + $0x1360] sm:$0xff]  ;;  %v2643_v47 = vld [vmem:[#allocation9 + $0x1028] sm:$0xff] }
 0x224   : > { %2822 = vmatpush.msra.mxu1 %v2682_v49  ;;  %2810 = vmatpush.msra.mxu0 %v2586_v50  ;;  %v2735_v49 = vld [vmem:[#allocation9 + $0x1308] sm:$0xff]  ;;  %v2742_v50 = vld [vmem:[#allocation9 + $0x1340] sm:$0xff] }
 0x226   : > { %2823 = vmatpush.msra.mxu1 %v2678_v51  ;;  %2811 = vmatpush.msra.mxu0 %v2582_v52  ;;  %v2639_v51 = vld [vmem:[#allocation9 + $0x1008] sm:$0xff] }
 0x227   : > { %v2225_v20 = vpop.f32.mrf.mxu3  ;;  %v2731_v52 = vld [vmem:[#allocation9 + $0x12e8] sm:$0xff] }
 0x228   : > { %2824 = vmatpush.msra.mxu1 %v2674_v45  ;;  %2812 = vmatpush.msra.mxu0 %v2578_v53  ;;  %v2738_v45 = vld [vmem:[#allocation9 + $0x1320] sm:$0xff]  ;;  %v2764_v53 = vld [vmem:[#allocation9 + $0x13f0] sm:$0xff] }
 0x229   : > { %4995 = vmatmul.msk.f32.vlgmr.msrb.gmra.mxu1 %vm2351_vm7, %v5978_v37 }
 0x22a   : > { %2825 = vmatpush.msra.mxu1 %v2670_v54  ;;  %2813 = vmatpush.msra.mxu0 %v2574_v55  ;;  %v2727_v54 = vld [vmem:[#allocation9 + $0x12c8] sm:$0xff]  ;;  %v2734_v55 = vld [vmem:[#allocation9 + $0x1300] sm:$0xff] }
 0x22b   : > { %2814 = vmatmul.f32.vlgmr.msra.gmra.mxu0 %v5935_v19  ;;  %v2646_v19 = vld [vmem:[#allocation9 + $0x1040] sm:$0xff] }
 0x22c   : > { %2826 = vmatpush.msra.mxu1 %v2666_v56  ;;  %2898 = vmatpush.msrb.mxu0 %v2699_v57  ;;  %v2760_v56 = vld [vmem:[#allocation9 + $0x13d0] sm:$0xff]  ;;  %v2723_v57 = vld [vmem:[#allocation9 + $0x12a8] sm:$0xff] }
 0x22e   : > { %2827 = vmatpush.msra.mxu1 %v2662_v60  ;;  %2899 = vmatpush.msrb.mxu0 %v2695_v62  ;;  %v2730_v60 = vld [vmem:[#allocation9 + $0x12e0] sm:$0xff]  ;;  %v2756_v62 = vld [vmem:[#allocation9 + $0x13b0] sm:$0xff] }
 0x230   : > { %2828 = vmatpush.msra.mxu1 %v2658_v7  ;;  %2900 = vmatpush.msrb.mxu0 %v2691_v8  ;;  %v2719_v7 = vld [vmem:[#allocation9 + $0x1288] sm:$0xff]  ;;  %v2726_v8 = vld [vmem:[#allocation9 + $0x12c0] sm:$0xff] }
 0x231   : > { %4996 = vmatmul.msk.f32.gmra.mxu1 %vm2351_vm7, %v5989_v48 }
 0x232   : > { %2829 = vmatpush.msra.mxu1 %v2654_v9  ;;  %2901 = vmatpush.msrb.mxu0 %v2687_v17  ;;  %v2752_v9 = vld [vmem:[#allocation9 + $0x1390] sm:$0xff]  ;;  %v2715_v17 = vld [vmem:[#allocation9 + $0x1268] sm:$0xff] }
 0x234   : > { %2830 = vmatpush.msra.mxu1 %v2650_v18  ;;  %2902 = vmatpush.msrb.mxu0 %v2683_v10  ;;  %v2748_v18 = vld [vmem:[#allocation9 + $0x1370] sm:$0xff]  ;;  %v2711_v10 = vld [vmem:[#allocation9 + $0x1248] sm:$0xff] }
 0x236   : > { %2831 = vmatpush.msra.mxu1 %v2646_v19  ;;  %2903 = vmatpush.msrb.mxu0 %v2679_v11  ;;  %v2205_v15 = vpop.f32.mrf.mxu2  ;;  %v2718_v19 = vld [vmem:[#allocation9 + $0x1280] sm:$0xff]  ;;  %v2744_v11 = vld [vmem:[#allocation9 + $0x1350] sm:$0xff] }
 0x237   : > { %v2226_v22 = vadd.f32 %v2225_v20, %v2205_v15  ;;  %v2714_v20 = vld [vmem:[#allocation9 + $0x1260] sm:$0xff]  ;;  %v2740_v15 = vld [vmem:[#allocation9 + $0x1330] sm:$0xff] }
 0x238   : > { %2832 = vmatpush.msra.mxu1 %v2642_v3  ;;  %2904 = vmatpush.msrb.mxu0 %v2675_v12  ;;  %v2707_v3 = vld [vmem:[#allocation9 + $0x1228] sm:$0xff]  ;;  %v1759_v12 = vadd.f32 %v5955_v4, %v5953_v2 }
 0x239   : > { %v2246_v27 = vadd.f32 %v2245_v26, %v2226_v22  ;;  %v2710_v26 = vld [vmem:[#allocation9 + $0x1240] sm:$0xff] }
 0x23a   : > { %2833 = vmatpush.msra.mxu1 %v2638_v13  ;;  %2905 = vmatpush.msrb.mxu0 %v2671_v16  ;;  %v2285_v13 = vpop.f32.mrf.mxu1  ;;  %v1779_v2 = vadd.f32 %v5957_v58, %v1759_v12  ;;  %v2794_v58 = vld [vmem:[#allocation9 + $0x14e0] sm:$0xff]  ;;  %v2627_v12 = vld [vmem:[#allocation9 + $0xfa8] sm:$0xff] }
 0x23b   : > { %2834 = vmatmul.f32.vlgmr.msra.gmra.mxu1 %v5929_v5  ;;  %v2266_v31 = vadd.f32 %v2265_v28, %v2246_v27  ;;  %v2736_v27 = vld [vmem:[#allocation9 + $0x1310] sm:$0xff]  ;;  %v2706_v28 = vld [vmem:[#allocation9 + $0x1220] sm:$0xff] }
 0x23c   : > { %2918 = vmatpush.msrb.mxu1 %v2763_v24  ;;  %2906 = vmatpush.msrb.mxu0 %v2667_v25  ;;  %v2796_v25 = vld [vmem:[#allocation9 + $0x14f0] sm:$0xff] }
 0x23d   : > { %4985 = vmatpush.msk.msra.mxu2 %vm2358_vm6, %v2266_v31 }
 0x23e   : > { %2919 = vmatpush.msrb.mxu1 %v2759_v29  ;;  %4986 = vmatmul.msk.f32.vlgmr.msra.gmra.mxu2 %vm2351_vm7, %v5962_v14  ;;  %v2345_v29 = vpop.f32.mrf.mxu0 }
 0x23f   : > { %2907 = vmatpush.msrb.mxu0 %v2663_v32  ;;  %4997 = vmatpush.msk.msrb.mxu2 %vm2358_vm6, %v1719_v0  ;;  %v2702_v32 = vld [vmem:[#allocation9 + $0x1200] sm:$0xff]  ;;  %v1799_v0 = vadd.f32 %v5951_v1, %v1779_v2  ;;  %v2784_v1 = vld [vmem:[#allocation9 + $0x1490] sm:$0xff] }
 0x240   : > { %2920 = vmatpush.msrb.mxu1 %v2755_v59  ;;  %v2732_v59 = vld [vmem:[#allocation9 + $0x12f0] sm:$0xff] }
 0x241   : > { %2838 = vmatpush.msra.mxu2 %v2762_v33  ;;  %2908 = vmatpush.msrb.mxu0 %v2659_v35  ;;  %v2795_v33 = vld [vmem:[#allocation9 + $0x14e8] sm:$0xff]  ;;  %v2788_v35 = vld [vmem:[#allocation9 + $0x14b0] sm:$0xff] }
 0x242   : > { %2921 = vmatpush.msrb.mxu1 %v2751_v36  ;;  %v2728_v36 = vld [vmem:[#allocation9 + $0x12d0] sm:$0xff] }
 0x243   : > { %2839 = vmatpush.msra.mxu2 %v2758_v61  ;;  %2909 = vmatpush.msrb.mxu0 %v2655_v38  ;;  %v2790_v61 = vld [vmem:[#allocation9 + $0x14c0] sm:$0xff]  ;;  %v2791_v38 = vld [vmem:[#allocation9 + $0x14c8] sm:$0xff]  ;;  %v2616_v2 = vld [vmem:[#allocation9 + $0xf50] sm:$0xff] }
 0x244   : > { %2922 = vmatpush.msrb.mxu1 %v2747_v40  ;;  %v2724_v40 = vld [vmem:[#allocation9 + $0x12b0] sm:$0xff] }
 0x245   : > { %2840 = vmatpush.msra.mxu2 %v2754_v63  ;;  %2910 = vmatpush.msrb.mxu0 %v2651_v41  ;;  %v2786_v63 = vld [vmem:[#allocation9 + $0x14a0] sm:$0xff]  ;;  %v2780_v41 = vld [vmem:[#allocation9 + $0x1470] sm:$0xff] }
 0x246   : > { %2923 = vmatpush.msrb.mxu1 %v2743_v39  ;;  %4987 = vmatmul.msk.f32.gmra.mxu2 %vm2351_vm7, %v5971_v23  ;;  %v2720_v39 = vld [vmem:[#allocation9 + $0x1290] sm:$0xff] }
 0x247   : > { %2841 = vmatpush.msra.mxu2 %v2750_v42  ;;  %2911 = vmatpush.msrb.mxu0 %v2647_v43  ;;  %v2325_v24 = vpop.f32.mrf.mxu3  ;;  %v2782_v42 = vld [vmem:[#allocation9 + $0x1480] sm:$0xff]  ;;  %v2783_v43 = vld [vmem:[#allocation9 + $0x1488] sm:$0xff] }
 0x248   : > { %2924 = vmatpush.msrb.mxu1 %v2739_v44  ;;  %v2776_v44 = vld [vmem:[#allocation9 + $0x1450] sm:$0xff] }
 0x249   : > { %2842 = vmatpush.msra.mxu2 %v2746_v46  ;;  %2912 = vmatpush.msrb.mxu0 %v2643_v47  ;;  %v2716_v46 = vld [vmem:[#allocation9 + $0x1270] sm:$0xff]  ;;  %v2778_v47 = vld [vmem:[#allocation9 + $0x1460] sm:$0xff] }
 0x24a   : > { %2925 = vmatpush.msrb.mxu1 %v2735_v49  ;;  %v2779_v49 = vld [vmem:[#allocation9 + $0x1468] sm:$0xff] }
 0x24b   : > { %2843 = vmatpush.msra.mxu2 %v2742_v50  ;;  %2913 = vmatpush.msrb.mxu0 %v2639_v51  ;;  %v2772_v50 = vld [vmem:[#allocation9 + $0x1430] sm:$0xff] }
 0x24c   : > { %2926 = vmatpush.msrb.mxu1 %v2731_v52  ;;  %2914 = vmatmul.f32.vlgmr.msrb.gmra.mxu0 %v5929_v5  ;;  %v2722_v5 = vld [vmem:[#allocation9 + $0x12a0] sm:$0xff]  ;;  %v2712_v51 = vld [vmem:[#allocation9 + $0x1250] sm:$0xff] }
 0x24d   : > { %2844 = vmatpush.msra.mxu2 %v2738_v45  ;;  %2998 = vmatpush.msra.mxu0 %v2764_v53  ;;  %v2774_v52 = vld [vmem:[#allocation9 + $0x1440] sm:$0xff]  ;;  %v2775_v45 = vld [vmem:[#allocation9 + $0x1448] sm:$0xff]  ;;  %v2768_v53 = vld [vmem:[#allocation9 + $0x1410] sm:$0xff] }
 0x24e   : > { %2927 = vmatpush.msrb.mxu1 %v2727_v54  ;;  %4998 = vmatmul.msk.f32.vlgmr.msrb.gmra.mxu2 %vm2351_vm7, %v5978_v37  ;;  %v2708_v54 = vld [vmem:[#allocation9 + $0x1230] sm:$0xff] }
 0x24f   : > { %2845 = vmatpush.msra.mxu2 %v2734_v55  ;;  %2999 = vmatpush.msra.mxu0 %v2760_v56  ;;  %v2770_v55 = vld [vmem:[#allocation9 + $0x1420] sm:$0xff]  ;;  %v2637_v56 = vld [vmem:[#allocation9 + $0xff8] sm:$0xff] }
 0x250   : > { %2928 = vmatpush.msrb.mxu1 %v2723_v57  ;;  %v2771_v57 = vld [vmem:[#allocation9 + $0x1428] sm:$0xff] }
 0x251   : > { %2846 = vmatpush.msra.mxu2 %v2730_v60  ;;  %3000 = vmatpush.msra.mxu0 %v2756_v62  ;;  %v2704_v60 = vld [vmem:[#allocation9 + $0x1210] sm:$0xff]  ;;  %v2766_v62 = vld [vmem:[#allocation9 + $0x1400] sm:$0xff] }
 0x252   : > { %2929 = vmatpush.msrb.mxu1 %v2719_v7  ;;  %v2767_v7 = vld [vmem:[#allocation9 + $0x1408] sm:$0xff] }
 0x253   : > { %2847 = vmatpush.msra.mxu2 %v2726_v8  ;;  %3001 = vmatpush.msra.mxu0 %v2752_v9  ;;  %v2797_v8 = vld [vmem:[#allocation9 + $0x14f8] sm:$0xff]  ;;  %v2635_v9 = vld [vmem:[#allocation9 + $0xfe8] sm:$0xff] }
 0x254   : > { %2930 = vmatpush.msrb.mxu1 %v2715_v17  ;;  %v2629_v17 = vld [vmem:[#allocation9 + $0xfb8] sm:$0xff] }
 0x255   : > { %2848 = vmatpush.msra.mxu2 %v2722_v5  ;;  %3002 = vmatpush.msra.mxu0 %v2748_v18  ;;  %v2636_v5 = vld [vmem:[#allocation9 + $0xff0] sm:$0xff]  ;;  %v2793_v18 = vld [vmem:[#allocation9 + $0x14d8] sm:$0xff] }
 0x256   : > { %2931 = vmatpush.msrb.mxu1 %v2711_v10  ;;  %v2305_v16 = vpop.f32.mrf.mxu2  ;;  %4999 = vmatmul.msk.f32.gmra.mxu2 %vm2351_vm7, %v5989_v48  ;;  %v2631_v10 = vld [vmem:[#allocation9 + $0xfc8] sm:$0xff] }
 0x257   : > { %2849 = vmatpush.msra.mxu2 %v2718_v19  ;;  %3003 = vmatpush.msra.mxu0 %v2744_v11  ;;  %v2306_v22 = vadd.f32 %v2305_v16, %v2285_v13  ;;  %v2625_v19 = vld [vmem:[#allocation9 + $0xf98] sm:$0xff]  ;;  %v2632_v11 = vld [vmem:[#allocation9 + $0xfd0] sm:$0xff] }
 0x258   : > { %2932 = vmatpush.msrb.mxu1 %v2707_v3  ;;  %v2789_v3 = vld [vmem:[#allocation9 + $0x14b8] sm:$0xff]  ;;  %v2624_v16 = vld [vmem:[#allocation9 + $0xf90] sm:$0xff] }
 0x259   : > { %2850 = vmatpush.msra.mxu2 %v2714_v20  ;;  %3004 = vmatpush.msra.mxu0 %v2740_v15  ;;  %v2326_v4 = vadd.f32 %v2325_v24, %v2306_v22  ;;  %v2621_v20 = vld [vmem:[#allocation9 + $0xf78] sm:$0xff]  ;;  %v2623_v15 = vld [vmem:[#allocation9 + $0xf88] sm:$0xff] }
 0x25a   : > { %2933 = vmatpush.msrb.mxu1 %v2703_v21  ;;  %v2617_v13 = vld [vmem:[#allocation9 + $0xf58] sm:$0xff]  ;;  %v2619_v22 = vld [vmem:[#allocation9 + $0xf68] sm:$0xff] }
 0x25b   : > { %2851 = vmatpush.msra.mxu2 %v2710_v26  ;;  %2934 = vmatmul.f32.vlgmr.msrb.gmra.mxu1 %v5932_v6  ;;  %v2346_v31 = vadd.f32 %v2345_v29, %v2326_v4  ;;  %v2781_v21 = vld [vmem:[#allocation9 + $0x1478] sm:$0xff]  ;;  %v2620_v26 = vld [vmem:[#allocation9 + $0xf70] sm:$0xff]  ;;  %v2611_v29 = vld [vmem:[#allocation9 + $0xf28] sm:$0xff] }
 0x25c   : > { %3026 = vmatpush.msra.mxu1 %v2796_v25  ;;  %3005 = vmatpush.msra.mxu0 %v2736_v27  ;;  %v2777_v24 = vld [vmem:[#allocation9 + $0x1458] sm:$0xff]  ;;  %v2615_v27 = vld [vmem:[#allocation9 + $0xf48] sm:$0xff] }
 0x25d   : > { %2852 = vmatpush.msra.mxu2 %v2706_v28  ;;  %4988 = vmatpush.msk.msra.mxu3 %vm2358_vm6, %v2346_v31  ;;  %v2609_v25 = vld [vmem:[#allocation9 + $0xf18] sm:$0xff] }
 0x25e   : > { %3027 = vmatpush.msra.mxu1 %v2792_v30  ;;  %4989 = vmatmul.msk.f32.vlgmr.msra.gmra.mxu3 %vm2351_vm7, %v5962_v14  ;;  %v2787_v14 = vld [vmem:[#allocation9 + $0x14a8] sm:$0xff]  ;;  %v2773_v4 = vld [vmem:[#allocation9 + $0x1438] sm:$0xff]  ;;  %v2612_v30 = vld [vmem:[#allocation9 + $0xf30] sm:$0xff] }
 0x25f   : > { %2853 = vmatpush.msra.mxu2 %v2702_v32  ;;  %5000 = vmatpush.msk.msrb.mxu3 %vm2358_vm6, %v1799_v0  ;;  %v2605_v28 = vld [vmem:[#allocation9 + $0xef8] sm:$0xff]  ;;  %v2608_v0 = vld [vmem:[#allocation9 + $0xf10] sm:$0xff] }
 0x260   : > { %3006 = vmatpush.msra.mxu0 %v2732_v59  ;;  %2854 = vmatmul.f32.vlgmr.msra.gmra.mxu2 %v5932_v6  ;;  %v2769_v31 = vld [vmem:[#allocation9 + $0x1418] sm:$0xff]  ;;  %v2607_v59 = vld [vmem:[#allocation9 + $0xf08] sm:$0xff] }
 0x261   : > { %2866 = vmatpush.msra.mxu3 %v2794_v58  ;;  %2946 = vmatpush.msrb.mxu2 %v2795_v33  ;;  %v2601_v32 = vld [vmem:[#allocation9 + $0xed8] sm:$0xff]  ;;  %v2604_v58 = vld [vmem:[#allocation9 + $0xef0] sm:$0xff] }
 0x262   : > { %3028 = vmatpush.msra.mxu1 %v2788_v35  ;;  %3007 = vmatpush.msra.mxu0 %v2728_v36  ;;  %v2597_v33 = vld [vmem:[#allocation9 + $0xeb8] sm:$0xff]  ;;  %v2599_v36 = vld [vmem:[#allocation9 + $0xec8] sm:$0xff] }
 0x263   : > { %2867 = vmatpush.msra.mxu3 %v2790_v61  ;;  %2947 = vmatpush.msrb.mxu2 %v2791_v38  ;;  %v6037_v35 = vld [vmem:[#allocation2 + $0x18] sm:$0x7f]  ;;  %v2600_v61 = vld [vmem:[#allocation9 + $0xed0] sm:$0xff] }
 0x264   : > { %3029 = vmatpush.msra.mxu1 %v2784_v1  ;;  %3008 = vmatpush.msra.mxu0 %v2724_v40  ;;  %v2593_v38 = vld [vmem:[#allocation9 + $0xe98] sm:$0xff]  ;;  %v2595_v1 = vld [vmem:[#allocation9 + $0xea8] sm:$0xff]  ;;  %v2596_v40 = vld [vmem:[#allocation9 + $0xeb0] sm:$0xff] }
 0x265   : > { %2868 = vmatpush.msra.mxu3 %v2786_v63  ;;  %2948 = vmatpush.msrb.mxu2 %v2787_v14  ;;  %v2589_v63 = vld [vmem:[#allocation9 + $0xe78] sm:$0xff]  ;;  %v2591_v14 = vld [vmem:[#allocation9 + $0xe88] sm:$0xff] }
 0x266   : > { %3030 = vmatpush.msra.mxu1 %v2780_v41  ;;  %3009 = vmatpush.msra.mxu0 %v2720_v39  ;;  %v2592_v41 = vld [vmem:[#allocation9 + $0xe90] sm:$0xff]  ;;  %v2585_v39 = vld [vmem:[#allocation9 + $0xe58] sm:$0xff] }
 0x267   : > { %2869 = vmatpush.msra.mxu3 %v2782_v42  ;;  %2949 = vmatpush.msrb.mxu2 %v2783_v43  ;;  %v2587_v42 = vld [vmem:[#allocation9 + $0xe68] sm:$0xff]  ;;  %v2588_v43 = vld [vmem:[#allocation9 + $0xe70] sm:$0xff] }
 0x268   : > { %3031 = vmatpush.msra.mxu1 %v2776_v44  ;;  %4990 = vmatmul.msk.f32.gmra.mxu3 %vm2351_vm7, %v5971_v23  ;;  %v2633_v23 = vld [vmem:[#allocation9 + $0xfd8] sm:$0xff] }
 0x269   : > { %3010 = vmatpush.msra.mxu0 %v2716_v46  ;;  %2870 = vmatpush.msra.mxu3 %v2778_v47  ;;  %v2581_v44 = vld [vmem:[#allocation9 + $0xe38] sm:$0xff]  ;;  %v2583_v46 = vld [vmem:[#allocation9 + $0xe48] sm:$0xff]  ;;  %v2584_v47 = vld [vmem:[#allocation9 + $0xe50] sm:$0xff] }
 0x26a   : > { %2950 = vmatpush.msrb.mxu2 %v2779_v49  ;;  %3032 = vmatpush.msra.mxu1 %v2772_v50  ;;  %v2577_v49 = vld [vmem:[#allocation9 + $0xe18] sm:$0xff]  ;;  %v2579_v50 = vld [vmem:[#allocation9 + $0xe28] sm:$0xff] }
 0x26b   : > { %3011 = vmatpush.msra.mxu0 %v2712_v51  ;;  %2871 = vmatpush.msra.mxu3 %v2774_v52  ;;  %v2580_v51 = vld [vmem:[#allocation9 + $0xe30] sm:$0xff]  ;;  %v2575_v52 = vld [vmem:[#allocation9 + $0xe08] sm:$0xff] }
 0x26c   : > { %2951 = vmatpush.msrb.mxu2 %v2775_v45  ;;  %3033 = vmatpush.msra.mxu1 %v2768_v53  ;;  %v6043_v45 = vld [vmem:[#allocation2] sm:$0x7f]  ;;  %v2576_v53 = vld [vmem:[#allocation9 + $0xe10] sm:$0xff] }
 0x26d   : > { %3012 = vmatpush.msra.mxu0 %v2708_v54  ;;  %5005 = vmatmul.msk.f32.vlgmr.msra.gmra.mxu1 %vm1477_vm5, %v5925_v34  ;;  %v2700_v54 = vld [vmem:[#allocation9 + $0x11f0] sm:$0xff] }
 0x26e   : > { %2872 = vmatpush.msra.mxu3 %v2770_v55  ;;  %3038 = vmatpush.msrb.mxu1 %v2637_v56  ;;  %v2701_v55 = vld [vmem:[#allocation9 + $0x11f8] sm:$0xff]  ;;  %v2696_v56 = vld [vmem:[#allocation9 + $0x11d0] sm:$0xff] }
 0x26f   : > { %2952 = vmatpush.msrb.mxu2 %v2771_v57  ;;  %3013 = vmatpush.msra.mxu0 %v2704_v60  ;;  %v2697_v57 = vld [vmem:[#allocation9 + $0x11d8] sm:$0xff]  ;;  %v2692_v60 = vld [vmem:[#allocation9 + $0x11b0] sm:$0xff] }
 0x270   : > { %2873 = vmatpush.msra.mxu3 %v2766_v62  ;;  %3039 = vmatpush.msrb.mxu1 %v2633_v23  ;;  %v2693_v62 = vld [vmem:[#allocation9 + $0x11b8] sm:$0xff]  ;;  %v2688_v23 = vld [vmem:[#allocation9 + $0x1190] sm:$0xff] }
 0x271   : > { %2953 = vmatpush.msrb.mxu2 %v2767_v7  ;;  %3014 = vmatmul.f32.vlgmr.msra.gmra.mxu0 %v5932_v6  ;;  %v2628_v6 = vld [vmem:[#allocation9 + $0xfb0] sm:$0xff]  ;;  %v2689_v7 = vld [vmem:[#allocation9 + $0x1198] sm:$0xff] }
 0x272   : > { %5001 = vmatmul.msk.f32.vlgmr.msrb.gmra.mxu3 %vm2351_vm7, %v5978_v37  ;;  %3106 = vmatpush.msrb.mxu0 %v2797_v8  ;;  %v2785_v37 = vld [vmem:[#allocation9 + $0x1498] sm:$0xff]  ;;  %v2684_v8 = vld [vmem:[#allocation9 + $0x1170] sm:$0xff] }
 0x273   : > { %2878 = vmatpush.msrb.mxu3 %v2635_v9  ;;  %5004 = vmatmul.msk.f32.vlgmr.msrb.gmra.mxu2 %vm1477_vm5, %v5925_v34  ;;  %v2613_v34 = vld [vmem:[#allocation9 + $0xf38] sm:$0xff] }
 0x274   : > { %3040 = vmatpush.msrb.mxu1 %v2629_v17  ;;  %2958 = vmatpush.msra.mxu2 %v2636_v5  ;;  %v2685_v9 = vld [vmem:[#allocation9 + $0x1178] sm:$0xff]  ;;  %v2680_v17 = vld [vmem:[#allocation9 + $0x1150] sm:$0xff] }
 0x275   : > { %3107 = vmatpush.msrb.mxu0 %v2793_v18  ;;  %2879 = vmatpush.msrb.mxu3 %v2631_v10  ;;  %v2681_v5 = vld [vmem:[#allocation9 + $0x1158] sm:$0xff]  ;;  %v2676_v18 = vld [vmem:[#allocation9 + $0x1130] sm:$0xff] }
 0x276   : > { %3041 = vmatpush.msrb.mxu1 %v2625_v19  ;;  %2959 = vmatpush.msra.mxu2 %v2632_v11  ;;  %v2677_v10 = vld [vmem:[#allocation9 + $0x1138] sm:$0xff]  ;;  %v2672_v19 = vld [vmem:[#allocation9 + $0x1110] sm:$0xff] }
 0x277   : > { %3108 = vmatpush.msrb.mxu0 %v2789_v3  ;;  %2880 = vmatpush.msrb.mxu3 %v2627_v12  ;;  %v2673_v11 = vld [vmem:[#allocation9 + $0x1118] sm:$0xff]  ;;  %v2668_v3 = vld [vmem:[#allocation9 + $0x10f0] sm:$0xff] }
 0x278   : > { %3042 = vmatpush.msrb.mxu1 %v2621_v20  ;;  %2960 = vmatpush.msra.mxu2 %v2628_v6  ;;  %v2669_v12 = vld [vmem:[#allocation9 + $0x10f8] sm:$0xff]  ;;  %v2664_v20 = vld [vmem:[#allocation9 + $0x10d0] sm:$0xff] }
 0x279   : > { %3109 = vmatpush.msrb.mxu0 %v2785_v37  ;;  %2881 = vmatpush.msrb.mxu3 %v2623_v15  ;;  %v2665_v6 = vld [vmem:[#allocation9 + $0x10d8] sm:$0xff]  ;;  %v2660_v37 = vld [vmem:[#allocation9 + $0x10b0] sm:$0xff] }
 0x27a   : > { %3043 = vmatpush.msrb.mxu1 %v2617_v13  ;;  %2961 = vmatpush.msra.mxu2 %v2624_v16  ;;  %v2661_v15 = vld [vmem:[#allocation9 + $0x10b8] sm:$0xff]  ;;  %v2656_v13 = vld [vmem:[#allocation9 + $0x1090] sm:$0xff] }
 0x27b   : > { %3110 = vmatpush.msrb.mxu0 %v2781_v21  ;;  %5002 = vmatmul.msk.f32.gmra.mxu3 %vm2351_vm7, %v5989_v48  ;;  %v2603_v48 = vld [vmem:[#allocation9 + $0xee8] sm:$0xff]  ;;  %v2657_v16 = vld [vmem:[#allocation9 + $0x1098] sm:$0xff]  ;;  %v2652_v21 = vld [vmem:[#allocation9 + $0x1070] sm:$0xff] }
 0x27c   : > { %3044 = vmatpush.msrb.mxu1 %v2613_v34  ;;  %2882 = vmatpush.msrb.mxu3 %v2619_v22  ;;  %v2653_v34 = vld [vmem:[#allocation9 + $0x1078] sm:$0xff]  ;;  %v2648_v22 = vld [vmem:[#allocation9 + $0x1050] sm:$0xff] }
 0x27d   : > { %2962 = vmatpush.msra.mxu2 %v2620_v26  ;;  %3111 = vmatpush.msrb.mxu0 %v2777_v24  ;;  %v2649_v26 = vld [vmem:[#allocation9 + $0x1058] sm:$0xff]  ;;  %v2644_v24 = vld [vmem:[#allocation9 + $0x1030] sm:$0xff] }
 0x27e   : > { %3045 = vmatpush.msrb.mxu1 %v2609_v25  ;;  %2883 = vmatpush.msrb.mxu3 %v2615_v27  ;;  %v2645_v25 = vld [vmem:[#allocation9 + $0x1038] sm:$0xff]  ;;  %v2640_v27 = vld [vmem:[#allocation9 + $0x1010] sm:$0xff] }
 0x27f   : > { %2963 = vmatpush.msra.mxu2 %v2616_v2  ;;  %3112 = vmatpush.msrb.mxu0 %v2773_v4  ;;  %v2641_v2 = vld [vmem:[#allocation9 + $0x1018] sm:$0xff] }
 0x280   : > { %3046 = vmatpush.msrb.mxu1 %v2605_v28  ;;  %2884 = vmatpush.msrb.mxu3 %v2611_v29  ;;  %v2765_v4 = vld [vmem:[#allocation9 + $0x13f8] sm:$0xff]  ;;  %v6048_v28 = vld [vmem:[#allocation2 + $0x8] sm:$0x7f] }
 0x281   : > { %2964 = vmatpush.msra.mxu2 %v2612_v30  ;;  %3113 = vmatpush.msrb.mxu0 %v2769_v31  ;;  %v2761_v29 = vld [vmem:[#allocation9 + $0x13d8] sm:$0xff] }
 0x282   : > { %3047 = vmatpush.msrb.mxu1 %v2601_v32  ;;  %2885 = vmatpush.msrb.mxu3 %v2607_v59  ;;  %v2757_v30 = vld [vmem:[#allocation9 + $0x13b8] sm:$0xff] }
 0x283   : > { %2965 = vmatpush.msra.mxu2 %v2608_v0  ;;  %5006 = vmatmul.msk.f32.vlgmr.msrb.gmra.mxu0 %vm1477_vm5, %v6037_v35  ;;  %v2753_v31 = vld [vmem:[#allocation9 + $0x1398] sm:$0xff] }
 0x284   : > { %5003 = vmatmul.msk.f32.vlgmr.msra.gmra.mxu3 %vm1477_vm5, %v6037_v35  ;;  %3048 = vmatpush.msrb.mxu1 %v2597_v33  ;;  %v2749_v32 = vld [vmem:[#allocation9 + $0x1378] sm:$0xff] }
 0x285   : > { %2886 = vmatpush.msrb.mxu3 %v2603_v48  ;;  %2966 = vmatpush.msra.mxu2 %v2604_v58  ;;  %v2745_v59 = vld [vmem:[#allocation9 + $0x1358] sm:$0xff] }
 0x286   : > { %3049 = vmatpush.msrb.mxu1 %v2593_v38  ;;  %v2741_v0 = vld [vmem:[#allocation9 + $0x1338] sm:$0xff] }
 0x287   : > { %2887 = vmatpush.msrb.mxu3 %v2599_v36  ;;  %2967 = vmatpush.msra.mxu2 %v2600_v61  ;;  %v2737_v48 = vld [vmem:[#allocation9 + $0x1318] sm:$0xff] }
 0x288   : > { %3050 = vmatpush.msrb.mxu1 %v2589_v63  ;;  %v2733_v58 = vld [vmem:[#allocation9 + $0x12f8] sm:$0xff] }
 0x289   : > { %2888 = vmatpush.msrb.mxu3 %v2595_v1  ;;  %2968 = vmatpush.msra.mxu2 %v2596_v40  ;;  %v2729_v33 = vld [vmem:[#allocation9 + $0x12d8] sm:$0xff] }
 0x28a   : > { %3051 = vmatpush.msrb.mxu1 %v2585_v39  ;;  %v2725_v36 = vld [vmem:[#allocation9 + $0x12b8] sm:$0xff]  ;;  %v6057_v39 = vpop.f32.mrf.mxu0 }
 0x28b   : > { %2889 = vmatpush.msrb.mxu3 %v2591_v14  ;;  %2969 = vmatpush.msra.mxu2 %v2592_v41  ;;  %v2721_v61 = vld [vmem:[#allocation9 + $0x1298] sm:$0xff]  ;;  %v6052_v14 = vld [vmem:[#allocation2 + $0x10] sm:$0x7f] }
 0x28c   : > { %3052 = vmatpush.msrb.mxu1 %v2581_v44  ;;  %v2717_v38 = vld [vmem:[#allocation9 + $0x1278] sm:$0xff] }
 0x28d   : > { %2890 = vmatpush.msrb.mxu3 %v2587_v42  ;;  %2970 = vmatpush.msra.mxu2 %v2588_v43  ;;  %v2713_v1 = vld [vmem:[#allocation9 + $0x1258] sm:$0xff] }
 0x28e   : > { %3053 = vmatpush.msrb.mxu1 %v2577_v49  ;;  %v2709_v40 = vld [vmem:[#allocation9 + $0x1238] sm:$0xff] }
 0x28f   : > { %2891 = vmatpush.msrb.mxu3 %v2583_v46  ;;  %2971 = vmatpush.msra.mxu2 %v2584_v47  ;;  %v2705_v63 = vld [vmem:[#allocation9 + $0x1218] sm:$0xff] }
 0x290   : > { %3054 = vmatmul.f32.vlgmr.msrb.gmra.mxu1 %v6043_v45 }
 0x291   : > { %2892 = vmatpush.msrb.mxu3 %v2579_v50  ;;  %2972 = vmatpush.msra.mxu2 %v2580_v51 }
 0x292   : > { %v6065_v46 = vpop.f32.mrf.mxu0 }
 0x293   : > { %2893 = vmatpush.msrb.mxu3 %v2575_v52  ;;  %2973 = vmatpush.msra.mxu2 %v2576_v53 }
 0x294   : > { %2894 = vmatmul.f32.vlgmr.msrb.gmra.mxu3 %v6043_v45  ;;  %2974 = vmatmul.f32.vlgmr.msra.gmra.mxu2 %v6043_v45 }
 0x295   : > { %2978 = vmatpush.msra.mxu3 %v2700_v54  ;;  %3058 = vmatpush.msrb.mxu2 %v2701_v55 }
 0x296   : > { %v6055_v41 = vpop.f32.mrf.mxu1 }
 0x297   : > { %2979 = vmatpush.msra.mxu3 %v2696_v56  ;;  %3059 = vmatpush.msrb.mxu2 %v2697_v57 }
 0x299   : > { %2980 = vmatpush.msra.mxu3 %v2692_v60  ;;  %3060 = vmatpush.msrb.mxu2 %v2693_v62 }
 0x29a   : > { %v6073_v51 = vpop.f32.mrf.mxu0 }
 0x29b   : > { %2981 = vmatpush.msra.mxu3 %v2688_v23  ;;  %3061 = vmatpush.msrb.mxu2 %v2689_v7 }
 0x29d   : > { %2982 = vmatpush.msra.mxu3 %v2684_v8  ;;  %3062 = vmatpush.msrb.mxu2 %v2685_v9 }
 0x29e   : > { %v6063_v44 = vpop.f32.mrf.mxu1 }
 0x29f   : > { %2983 = vmatpush.msra.mxu3 %v2680_v17  ;;  %3063 = vmatpush.msrb.mxu2 %v2681_v5  ;;  %v6090_v5 = vld [vmem:[%s7032_s3 + $0x20] sm:$0xff] }
 0x2a1   : > { %2984 = vmatpush.msra.mxu3 %v2676_v18  ;;  %3064 = vmatpush.msrb.mxu2 %v2677_v10  ;;  %v3300_v18 = vld [vmem:[#allocation9 + $0x16e0] sm:$0xff] }
 0x2a2   : > { %v6081_v55 = vpop.f32.mrf.mxu0  ;;  %v3296_v10 = vld [vmem:[#allocation9 + $0x16c0] sm:$0xff] }
 0x2a3   : > { %2985 = vmatpush.msra.mxu3 %v2672_v19  ;;  %3065 = vmatpush.msrb.mxu2 %v2673_v11  ;;  %v3292_v19 = vld [vmem:[#allocation9 + $0x16a0] sm:$0xff] }
 0x2a4   : > { %v3288_v11 = vld [vmem:[#allocation9 + $0x1680] sm:$0xff] }
 0x2a5   : > { %2986 = vmatpush.msra.mxu3 %v2668_v3  ;;  %3066 = vmatpush.msrb.mxu2 %v2669_v12  ;;  %v6098_v3 = vld [vmem:[%s7032_s3 + $0x28] sm:$0x3f]  ;;  %v3284_v12 = vld [vmem:[#allocation9 + $0x1660] sm:$0xff] }
 0x2a6   : > { %v6071_v50 = vpop.f32.mrf.mxu1 }
 0x2a7   : > { %2987 = vmatpush.msra.mxu3 %v2664_v20  ;;  %3067 = vmatpush.msrb.mxu2 %v2665_v6  ;;  %v3280_v20 = vld [vmem:[#allocation9 + $0x1640] sm:$0xff] }
 0x2a8   : > { %v3276_v6 = vld [vmem:[#allocation9 + $0x1620] sm:$0xff] }
 0x2a9   : > { %2988 = vmatpush.msra.mxu3 %v2660_v37  ;;  %3068 = vmatpush.msrb.mxu2 %v2661_v15 }
 0x2aa   : > { %v2815_v62 = vpop.f32.mrf.mxu0 }
 0x2ab   : > { %2989 = vmatpush.msra.mxu3 %v2656_v13  ;;  %3069 = vmatpush.msrb.mxu2 %v2657_v16  ;;  %v3272_v13 = vld [vmem:[#allocation9 + $0x1600] sm:$0xff] }
 0x2ad   : > { %2990 = vmatpush.msra.mxu3 %v2652_v21  ;;  %3070 = vmatpush.msrb.mxu2 %v2653_v34  ;;  %v3268_v34 = vld [vmem:[#allocation9 + $0x15e0] sm:$0xff] }
 0x2ae   : > { %v6079_v54 = vpop.f32.mrf.mxu1 }
 0x2af   : > { %2991 = vmatpush.msra.mxu3 %v2648_v22  ;;  %3071 = vmatpush.msrb.mxu2 %v2649_v26 }
 0x2b1   : > { %2992 = vmatpush.msra.mxu3 %v2644_v24  ;;  %3072 = vmatpush.msrb.mxu2 %v2645_v25  ;;  %v3264_v24 = vld [vmem:[#allocation9 + $0x15c0] sm:$0xff] }
 0x2b3   : > { %2993 = vmatpush.msra.mxu3 %v2640_v27  ;;  %3073 = vmatpush.msrb.mxu2 %v2641_v2  ;;  %v3364_v27 = vld [vmem:[#allocation9 + $0x18e0] sm:$0xff] }
 0x2b4   : > { %2994 = vmatmul.f32.vlgmr.msra.gmra.mxu3 %v6048_v28  ;;  %3074 = vmatmul.f32.vlgmr.msrb.gmra.mxu2 %v6048_v28  ;;  %v3260_v2 = vld [vmem:[#allocation9 + $0x15a0] sm:$0xff] }
 0x2b5   : > { %3078 = vmatpush.msrb.mxu3 %v2765_v4  ;;  %v3360_v4 = vld [vmem:[#allocation9 + $0x18c0] sm:$0xff] }
 0x2b7   : > { %3079 = vmatpush.msrb.mxu3 %v2761_v29  ;;  %v3256_v29 = vld [vmem:[#allocation9 + $0x1580] sm:$0xff] }
 0x2b8   : > { %v2835_v60 = vpop.f32.mrf.mxu1 }
 0x2b9   : > { %3080 = vmatpush.msrb.mxu3 %v2757_v30  ;;  %v2836_v7 = vadd.f32 %v2835_v60, %v2815_v62  ;;  %v3356_v30 = vld [vmem:[#allocation9 + $0x18a0] sm:$0xff]  ;;  %v3353_v62 = vld [vmem:[#allocation9 + $0x1888] sm:$0xff] }
 0x2ba   : > { %v3328_v60 = vld [vmem:[#allocation9 + $0x17c0] sm:$0xff] }
 0x2bb   : > { %3081 = vmatpush.msrb.mxu3 %v2753_v31  ;;  %v3252_v31 = vld [vmem:[#allocation9 + $0x1560] sm:$0xff] }
 0x2bd   : > { %3082 = vmatpush.msrb.mxu3 %v2749_v32  ;;  %v3352_v32 = vld [vmem:[#allocation9 + $0x1880] sm:$0xff] }
 0x2bf   : > { %3083 = vmatpush.msrb.mxu3 %v2745_v59  ;;  %v3248_v59 = vld [vmem:[#allocation9 + $0x1540] sm:$0xff] }
 0x2c1   : > { %3084 = vmatpush.msrb.mxu3 %v2741_v0  ;;  %v6059_v42 = vpop.f32.mrf.mxu2  ;;  %v3348_v0 = vld [vmem:[#allocation9 + $0x1860] sm:$0xff] }
 0x2c3   : > { %3085 = vmatpush.msrb.mxu3 %v2737_v48  ;;  %v3244_v48 = vld [vmem:[#allocation9 + $0x1520] sm:$0xff] }
 0x2c5   : > { %3086 = vmatpush.msrb.mxu3 %v2733_v58  ;;  %v3344_v58 = vld [vmem:[#allocation9 + $0x1840] sm:$0xff] }
 0x2c7   : > { %3087 = vmatpush.msrb.mxu3 %v2729_v33  ;;  %v3240_v33 = vld [vmem:[#allocation9 + $0x1500] sm:$0xff] }
 0x2c9   : > { %3088 = vmatpush.msrb.mxu3 %v2725_v36  ;;  %v6067_v47 = vpop.f32.mrf.mxu2  ;;  %v2915_v37 = vpop.f32.mrf.mxu0  ;;  %v3340_v36 = vld [vmem:[#allocation9 + $0x1820] sm:$0xff] }
 0x2cb   : > { %3089 = vmatpush.msrb.mxu3 %v2721_v61  ;;  %v3365_v61 = vld [vmem:[#allocation9 + $0x18e8] sm:$0xff] }
 0x2cd   : > { %3090 = vmatpush.msrb.mxu3 %v2717_v38  ;;  %v3336_v38 = vld [vmem:[#allocation9 + $0x1800] sm:$0xff] }
 0x2cf   : > { %3091 = vmatpush.msrb.mxu3 %v2713_v1  ;;  %v3361_v1 = vld [vmem:[#allocation9 + $0x18c8] sm:$0xff] }
 0x2d1   : > { %3092 = vmatpush.msrb.mxu3 %v2709_v40  ;;  %v6075_v52 = vpop.f32.mrf.mxu2  ;;  %v3332_v40 = vld [vmem:[#allocation9 + $0x17e0] sm:$0xff] }
 0x2d3   : > { %3093 = vmatpush.msrb.mxu3 %v2705_v63  ;;  %v3357_v63 = vld [vmem:[#allocation9 + $0x18a8] sm:$0xff] }
 0x2d4   : > { %3094 = vmatmul.f32.vlgmr.msrb.gmra.mxu3 %v6052_v14 }
 0x2d8   : > { %v2935_v21 = vpop.f32.mrf.mxu1 }
 0x2d9   : > { %v6083_v56 = vpop.f32.mrf.mxu2 }
 0x2e1   : > { %v6061_v43 = vpop.f32.mrf.mxu3 }
 0x2e3   : > { %v2855_v23 = vpop.f32.mrf.mxu2 }
 0x2e4   : > { %v2856_v8 = vadd.f32 %v2855_v23, %v2836_v7  ;;  %v3324_v23 = vld [vmem:[#allocation9 + $0x17a0] sm:$0xff]  ;;  %v3349_v7 = vld [vmem:[#allocation9 + $0x1868] sm:$0xff] }
 0x2eb   : > { %v6069_v49 = vpop.f32.mrf.mxu3 }
 0x2f5   : > { %v6077_v53 = vpop.f32.mrf.mxu3 }
 0x2f6   : > { %v2955_v26 = vpop.f32.mrf.mxu2 }
 0x2fe   : > { %v6085_v57 = vpop.f32.mrf.mxu3 }
 0x307   : > { %v2875_v9 = vpop.f32.mrf.mxu3 }
 0x308   : > { %v2876_v17 = vadd.f32 %v2875_v9, %v2856_v8  ;;  %v3320_v8 = vld [vmem:[#allocation9 + $0x1780] sm:$0xff]  ;;  %v3345_v9 = vld [vmem:[#allocation9 + $0x1848] sm:$0xff] }
 0x30a   : > { %5009 = vmatpush.msk.msra.mxu0 %vm2358_vm6, %v2876_v17  ;;  %v3341_v17 = vld [vmem:[#allocation9 + $0x1828] sm:$0xff] }
 0x30b   : > { %5010 = vmatmul.msk.f32.vlgmr.msra.gmra.mxu0 %vm2351_vm7, %v6090_v5 }
 0x30c   : > { %3464 = vmatpush.msrb.mxu0 %v3300_v18 }
 0x30e   : > { %3465 = vmatpush.msrb.mxu0 %v3296_v10 }
 0x310   : > { %3466 = vmatpush.msrb.mxu0 %v3292_v19  ;;  %v3312_v19 = vld [vmem:[#allocation9 + $0x1740] sm:$0xff] }
 0x312   : > { %3467 = vmatpush.msrb.mxu0 %v3288_v11  ;;  %v3337_v11 = vld [vmem:[#allocation9 + $0x1808] sm:$0xff] }
 0x313   : > { %5011 = vmatmul.msk.f32.gmra.mxu0 %vm2351_vm7, %v6098_v3 }
 0x314   : > { %3468 = vmatpush.msrb.mxu0 %v3284_v12 }
 0x316   : > { %3469 = vmatpush.msrb.mxu0 %v3280_v20  ;;  %v3015_v20 = vpop.f32.mrf.mxu0 }
 0x317   : > { %v2895_v15 = vpop.f32.mrf.mxu3  ;;  %v2975_v18 = vpop.f32.mrf.mxu2 }
 0x318   : > { %v2916_v16 = vadd.f32 %v2915_v37, %v2895_v15  ;;  %3470 = vmatpush.msrb.mxu0 %v3276_v6  ;;  %v3308_v6 = vld [vmem:[#allocation9 + $0x1720] sm:$0xff]  ;;  %v3333_v37 = vld [vmem:[#allocation9 + $0x17e8] sm:$0xff] }
 0x31a   : > { %v2936_v22 = vadd.f32 %v2935_v21, %v2916_v16  ;;  %3471 = vmatpush.msrb.mxu0 %v3272_v13  ;;  %v3035_v13 = vpop.f32.mrf.mxu1  ;;  %v3304_v16 = vld [vmem:[#allocation9 + $0x1700] sm:$0xff] }
 0x31c   : > { %v2956_v25 = vadd.f32 %v2955_v26, %v2936_v22  ;;  %3472 = vmatpush.msrb.mxu0 %v3268_v34  ;;  %v3329_v34 = vld [vmem:[#allocation9 + $0x17c8] sm:$0xff]  ;;  %v3428_v22 = vld [vmem:[#allocation9 + $0x1ae0] sm:$0xff] }
 0x31d   : > { %v3429_v26 = vld [vmem:[#allocation9 + $0x1ae8] sm:$0xff] }
 0x31e   : > { %5012 = vmatpush.msk.msra.mxu1 %vm2358_vm6, %v2956_v25  ;;  %3473 = vmatpush.msrb.mxu0 %v3264_v24  ;;  %v3325_v24 = vld [vmem:[#allocation9 + $0x17a8] sm:$0xff]  ;;  %v3424_v25 = vld [vmem:[#allocation9 + $0x1ac0] sm:$0xff] }
 0x31f   : > { %5013 = vmatmul.msk.f32.vlgmr.msra.gmra.mxu1 %vm2351_vm7, %v6090_v5 }
 0x320   : > { %3484 = vmatpush.msrb.mxu1 %v3364_v27  ;;  %3474 = vmatpush.msrb.mxu0 %v3260_v2  ;;  %v3425_v27 = vld [vmem:[#allocation9 + $0x1ac8] sm:$0xff] }
 0x321   : > { %v3321_v2 = vld [vmem:[#allocation9 + $0x1788] sm:$0xff] }
 0x322   : > { %3485 = vmatpush.msrb.mxu1 %v3360_v4  ;;  %3475 = vmatpush.msrb.mxu0 %v3256_v29  ;;  %v3420_v4 = vld [vmem:[#allocation9 + $0x1aa0] sm:$0xff]  ;;  %v3421_v29 = vld [vmem:[#allocation9 + $0x1aa8] sm:$0xff] }
 0x324   : > { %3486 = vmatpush.msrb.mxu1 %v3356_v30  ;;  %3476 = vmatpush.msrb.mxu0 %v3252_v31  ;;  %v3317_v30 = vld [vmem:[#allocation9 + $0x1768] sm:$0xff]  ;;  %v3416_v31 = vld [vmem:[#allocation9 + $0x1a80] sm:$0xff] }
 0x326   : > { %3487 = vmatpush.msrb.mxu1 %v3352_v32  ;;  %3477 = vmatpush.msrb.mxu0 %v3248_v59  ;;  %v3417_v32 = vld [vmem:[#allocation9 + $0x1a88] sm:$0xff] }
 0x327   : > { %5014 = vmatmul.msk.f32.gmra.mxu1 %vm2351_vm7, %v6098_v3  ;;  %v3313_v59 = vld [vmem:[#allocation9 + $0x1748] sm:$0xff] }
 0x328   : > { %3488 = vmatpush.msrb.mxu1 %v3348_v0  ;;  %3478 = vmatpush.msrb.mxu0 %v3244_v48  ;;  %v3412_v0 = vld [vmem:[#allocation9 + $0x1a60] sm:$0xff]  ;;  %v3413_v48 = vld [vmem:[#allocation9 + $0x1a68] sm:$0xff] }
 0x32a   : > { %3489 = vmatpush.msrb.mxu1 %v3344_v58  ;;  %3479 = vmatpush.msrb.mxu0 %v3240_v33  ;;  %v3309_v58 = vld [vmem:[#allocation9 + $0x1728] sm:$0xff]  ;;  %v3408_v33 = vld [vmem:[#allocation9 + $0x1a40] sm:$0xff] }
 0x32b   : > { %3480 = vmatmul.f32.vlgmr.msrb.gmra.mxu0 %v6043_v45  ;;  %v3316_v45 = vld [vmem:[#allocation9 + $0x1760] sm:$0xff] }
 0x32c   : > { %3490 = vmatpush.msrb.mxu1 %v3340_v36  ;;  %3564 = vmatpush.msra.mxu0 %v3365_v61  ;;  %v3409_v36 = vld [vmem:[#allocation9 + $0x1a48] sm:$0xff] }
 0x32d   : > { %v3305_v61 = vld [vmem:[#allocation9 + $0x1708] sm:$0xff] }
 0x32e   : > { %3491 = vmatpush.msrb.mxu1 %v3336_v38  ;;  %3565 = vmatpush.msra.mxu0 %v3361_v1  ;;  %v3404_v38 = vld [vmem:[#allocation9 + $0x1a20] sm:$0xff]  ;;  %v3405_v1 = vld [vmem:[#allocation9 + $0x1a28] sm:$0xff] }
 0x330   : > { %3492 = vmatpush.msrb.mxu1 %v3332_v40  ;;  %3566 = vmatpush.msra.mxu0 %v3357_v63  ;;  %v3430_v40 = vld [vmem:[#allocation9 + $0x1af0] sm:$0xff]  ;;  %v3400_v63 = vld [vmem:[#allocation9 + $0x1a00] sm:$0xff] }
 0x332   : > { %3493 = vmatpush.msrb.mxu1 %v3328_v60  ;;  %3567 = vmatpush.msra.mxu0 %v3353_v62  ;;  %v3401_v60 = vld [vmem:[#allocation9 + $0x1a08] sm:$0xff]  ;;  %v3426_v62 = vld [vmem:[#allocation9 + $0x1ad0] sm:$0xff] }
 0x334   : > { %3494 = vmatpush.msrb.mxu1 %v3324_v23  ;;  %3568 = vmatpush.msra.mxu0 %v3349_v7  ;;  %v3396_v23 = vld [vmem:[#allocation9 + $0x19e0] sm:$0xff]  ;;  %v3397_v7 = vld [vmem:[#allocation9 + $0x19e8] sm:$0xff] }
 0x336   : > { %3495 = vmatpush.msrb.mxu1 %v3320_v8  ;;  %3569 = vmatpush.msra.mxu0 %v3345_v9  ;;  %v3422_v8 = vld [vmem:[#allocation9 + $0x1ab0] sm:$0xff]  ;;  %v3392_v9 = vld [vmem:[#allocation9 + $0x19c0] sm:$0xff] }
 0x337   : > { %v2995_v10 = vpop.f32.mrf.mxu3 }
 0x338   : > { %v2996_v12 = vadd.f32 %v2995_v10, %v2975_v18  ;;  %3496 = vmatpush.msrb.mxu1 %v3316_v45  ;;  %3570 = vmatpush.msra.mxu0 %v3341_v17  ;;  %v3393_v45 = vld [vmem:[#allocation9 + $0x19c8] sm:$0xff]  ;;  %v3418_v17 = vld [vmem:[#allocation9 + $0x1a90] sm:$0xff]  ;;  %v3388_v18 = vld [vmem:[#allocation9 + $0x19a0] sm:$0xff]  ;;  %v3075_v10 = vpop.f32.mrf.mxu2 }
 0x33a   : > { %v3016_v15 = vadd.f32 %v3015_v20, %v2996_v12  ;;  %3497 = vmatpush.msrb.mxu1 %v3312_v19  ;;  %3571 = vmatpush.msra.mxu0 %v3337_v11  ;;  %v3414_v19 = vld [vmem:[#allocation9 + $0x1a70] sm:$0xff]  ;;  %v3384_v11 = vld [vmem:[#allocation9 + $0x1980] sm:$0xff]  ;;  %v3055_v12 = vpop.f32.mrf.mxu1  ;;  %v3385_v20 = vld [vmem:[#allocation9 + $0x1988] sm:$0xff] }
 0x33c   : > { %v3036_v21 = vadd.f32 %v3035_v13, %v3016_v15  ;;  %3498 = vmatpush.msrb.mxu1 %v3308_v6  ;;  %3572 = vmatpush.msra.mxu0 %v3333_v37  ;;  %v3410_v6 = vld [vmem:[#allocation9 + $0x1a50] sm:$0xff]  ;;  %v3076_v37 = vadd.f32 %v3075_v10, %v3055_v12  ;;  %v3380_v15 = vld [vmem:[#allocation9 + $0x1960] sm:$0xff] }
 0x33d   : > { %v3436_v10 = vld [vmem:[#allocation9 + $0x1b20] sm:$0xff] }
 0x33e   : > { %5015 = vmatpush.msk.msra.mxu2 %vm2358_vm6, %v3036_v21  ;;  %3499 = vmatpush.msrb.mxu1 %v3304_v16  ;;  %v3381_v16 = vld [vmem:[#allocation9 + $0x1968] sm:$0xff]  ;;  %v3406_v21 = vld [vmem:[#allocation9 + $0x1a30] sm:$0xff]  ;;  %v3432_v12 = vld [vmem:[#allocation9 + $0x1b00] sm:$0xff] }
 0x33f   : > { %3573 = vmatpush.msra.mxu0 %v3329_v34  ;;  %5016 = vmatmul.msk.f32.vlgmr.msra.gmra.mxu2 %vm2351_vm7, %v6090_v5 }
 0x340   : > { %3500 = vmatmul.f32.vlgmr.msrb.gmra.mxu1 %v6048_v28  ;;  %3504 = vmatpush.msrb.mxu2 %v3428_v22  ;;  %v3376_v22 = vld [vmem:[#allocation9 + $0x1940] sm:$0xff] }
 0x341   : > { %3584 = vmatpush.msra.mxu1 %v3429_v26  ;;  %3574 = vmatpush.msra.mxu0 %v3325_v24  ;;  %v3115_v26 = vpop.f32.mrf.mxu0  ;;  %v3377_v24 = vld [vmem:[#allocation9 + $0x1948] sm:$0xff] }
 0x342   : > { %3505 = vmatpush.msrb.mxu2 %v3424_v25  ;;  %v3402_v25 = vld [vmem:[#allocation9 + $0x1a10] sm:$0xff] }
 0x343   : > { %3585 = vmatpush.msra.mxu1 %v3425_v27  ;;  %3575 = vmatpush.msra.mxu0 %v3321_v2  ;;  %v3372_v2 = vld [vmem:[#allocation9 + $0x1920] sm:$0xff] }
 0x344   : > { %3506 = vmatpush.msrb.mxu2 %v3420_v4  ;;  %v3373_v4 = vld [vmem:[#allocation9 + $0x1928] sm:$0xff] }
 0x345   : > { %3586 = vmatpush.msra.mxu1 %v3421_v29  ;;  %3576 = vmatpush.msra.mxu0 %v3317_v30  ;;  %v3398_v29 = vld [vmem:[#allocation9 + $0x19f0] sm:$0xff]  ;;  %v3368_v30 = vld [vmem:[#allocation9 + $0x1900] sm:$0xff] }
 0x346   : > { %3507 = vmatpush.msrb.mxu2 %v3416_v31  ;;  %v3460_v31 = vld [vmem:[#allocation9 + $0x1be0] sm:$0xff] }
 0x347   : > { %3587 = vmatpush.msra.mxu1 %v3417_v32  ;;  %3577 = vmatpush.msra.mxu0 %v3313_v59  ;;  %v3369_v32 = vld [vmem:[#allocation9 + $0x1908] sm:$0xff]  ;;  %v3394_v59 = vld [vmem:[#allocation9 + $0x19d0] sm:$0xff] }
 0x348   : > { %5017 = vmatmul.msk.f32.gmra.mxu2 %vm2351_vm7, %v6098_v3 }
 0x349   : > { %3508 = vmatpush.msrb.mxu2 %v3412_v0  ;;  %3588 = vmatpush.msra.mxu1 %v3413_v48  ;;  %v3456_v0 = vld [vmem:[#allocation9 + $0x1bc0] sm:$0xff]  ;;  %v3461_v48 = vld [vmem:[#allocation9 + $0x1be8] sm:$0xff] }
 0x34a   : > { %3578 = vmatpush.msra.mxu0 %v3309_v58  ;;  %v3462_v58 = vld [vmem:[#allocation9 + $0x1bf0] sm:$0xff] }
 0x34b   : > { %3509 = vmatpush.msrb.mxu2 %v3408_v33  ;;  %3589 = vmatpush.msra.mxu1 %v3409_v36  ;;  %v3390_v33 = vld [vmem:[#allocation9 + $0x19b0] sm:$0xff]  ;;  %v3452_v36 = vld [vmem:[#allocation9 + $0x1ba0] sm:$0xff] }
 0x34c   : > { %3579 = vmatpush.msra.mxu0 %v3305_v61  ;;  %v3457_v61 = vld [vmem:[#allocation9 + $0x1bc8] sm:$0xff] }
 0x34d   : > { %3510 = vmatpush.msrb.mxu2 %v3404_v38  ;;  %3580 = vmatmul.f32.vlgmr.msra.gmra.mxu0 %v6048_v28  ;;  %v3389_v28 = vld [vmem:[#allocation9 + $0x19a8] sm:$0xff]  ;;  %v3458_v38 = vld [vmem:[#allocation9 + $0x1bd0] sm:$0xff] }
 0x34e   : > { %3590 = vmatpush.msra.mxu1 %v3405_v1  ;;  %3664 = vmatpush.msrb.mxu0 %v3430_v40  ;;  %v3386_v1 = vld [vmem:[#allocation9 + $0x1990] sm:$0xff]  ;;  %v3453_v40 = vld [vmem:[#allocation9 + $0x1ba8] sm:$0xff] }
 0x34f   : > { %3511 = vmatpush.msrb.mxu2 %v3400_v63  ;;  %v3454_v63 = vld [vmem:[#allocation9 + $0x1bb0] sm:$0xff] }
 0x350   : > { %3591 = vmatpush.msra.mxu1 %v3401_v60  ;;  %3665 = vmatpush.msrb.mxu0 %v3426_v62  ;;  %v3382_v60 = vld [vmem:[#allocation9 + $0x1970] sm:$0xff]  ;;  %v3444_v62 = vld [vmem:[#allocation9 + $0x1b60] sm:$0xff] }
 0x351   : > { %3512 = vmatpush.msrb.mxu2 %v3396_v23  ;;  %v3449_v23 = vld [vmem:[#allocation9 + $0x1b88] sm:$0xff] }
 0x352   : > { %3592 = vmatpush.msra.mxu1 %v3397_v7  ;;  %3666 = vmatpush.msrb.mxu0 %v3422_v8  ;;  %v3450_v7 = vld [vmem:[#allocation9 + $0x1b90] sm:$0xff] }
 0x353   : > { %3513 = vmatpush.msrb.mxu2 %v3392_v9  ;;  %v3378_v8 = vld [vmem:[#allocation9 + $0x1950] sm:$0xff]  ;;  %v3440_v9 = vld [vmem:[#allocation9 + $0x1b40] sm:$0xff] }
 0x354   : > { %3593 = vmatpush.msra.mxu1 %v3393_v45  ;;  %3667 = vmatpush.msrb.mxu0 %v3418_v17  ;;  %v3445_v45 = vld [vmem:[#allocation9 + $0x1b68] sm:$0xff]  ;;  %v3446_v17 = vld [vmem:[#allocation9 + $0x1b70] sm:$0xff] }
 0x355   : > { %3514 = vmatpush.msrb.mxu2 %v3388_v18  ;;  %v3374_v18 = vld [vmem:[#allocation9 + $0x1930] sm:$0xff] }
 0x356   : > { %3594 = vmatpush.msra.mxu1 %v3389_v28  ;;  %3668 = vmatpush.msrb.mxu0 %v3414_v19  ;;  %v3441_v28 = vld [vmem:[#allocation9 + $0x1b48] sm:$0xff]  ;;  %v3442_v19 = vld [vmem:[#allocation9 + $0x1b50] sm:$0xff] }
 0x357   : > { %3515 = vmatpush.msrb.mxu2 %v3384_v11  ;;  %v3095_v13 = vpop.f32.mrf.mxu3  ;;  %v3370_v11 = vld [vmem:[#allocation9 + $0x1910] sm:$0xff] }
 0x358   : > { %3595 = vmatpush.msra.mxu1 %v3385_v20  ;;  %3669 = vmatpush.msrb.mxu0 %v3410_v6  ;;  %v3096_v34 = vadd.f32 %v3095_v13, %v3076_v37  ;;  %v3437_v20 = vld [vmem:[#allocation9 + $0x1b28] sm:$0xff]  ;;  %v3463_v6 = vld [vmem:[#allocation9 + $0x1bf8] sm:$0xff]  ;;  %v3434_v13 = vld [vmem:[#allocation9 + $0x1b10] sm:$0xff] }
 0x359   : > { %3516 = vmatpush.msrb.mxu2 %v3380_v15  ;;  %v3301_v37 = vld [vmem:[#allocation9 + $0x16e8] sm:$0xff] }
 0x35a   : > { %v3116_v27 = vadd.f32 %v3115_v26, %v3096_v34  ;;  %3596 = vmatpush.msra.mxu1 %v3381_v16  ;;  %3670 = vmatpush.msrb.mxu0 %v3406_v21  ;;  %v3433_v15 = vld [vmem:[#allocation9 + $0x1b08] sm:$0xff]  ;;  %v3459_v16 = vld [vmem:[#allocation9 + $0x1bd8] sm:$0xff]  ;;  %v3302_v34 = vld [vmem:[#allocation9 + $0x16f0] sm:$0xff] }
 0x35b   : > { %3517 = vmatpush.msrb.mxu2 %v3376_v22  ;;  %v3297_v21 = vld [vmem:[#allocation9 + $0x16c8] sm:$0xff]  ;;  %v3303_v22 = vld [vmem:[#allocation9 + $0x16f8] sm:$0xff] }
 0x35c   : > { %3597 = vmatpush.msra.mxu1 %v3377_v24  ;;  %3671 = vmatpush.msrb.mxu0 %v3402_v25  ;;  %v3455_v26 = vld [vmem:[#allocation9 + $0x1bb8] sm:$0xff]  ;;  %v3298_v24 = vld [vmem:[#allocation9 + $0x16d0] sm:$0xff] }
 0x35d   : > { %5018 = vmatpush.msk.msra.mxu3 %vm2358_vm6, %v3116_v27  ;;  %3518 = vmatpush.msrb.mxu2 %v3372_v2  ;;  %v3299_v25 = vld [vmem:[#allocation9 + $0x16d8] sm:$0xff]  ;;  %v3289_v2 = vld [vmem:[#allocation9 + $0x1688] sm:$0xff] }
 0x35e   : > { %3598 = vmatpush.msra.mxu1 %v3373_v4  ;;  %3672 = vmatpush.msrb.mxu0 %v3398_v29  ;;  %v3451_v27 = vld [vmem:[#allocation9 + $0x1b98] sm:$0xff]  ;;  %v3294_v4 = vld [vmem:[#allocation9 + $0x16b0] sm:$0xff] }
 0x35f   : > { %5019 = vmatmul.msk.f32.vlgmr.msra.gmra.mxu3 %vm2351_vm7, %v6090_v5  ;;  %3519 = vmatpush.msrb.mxu2 %v3368_v30  ;;  %v3448_v5 = vld [vmem:[#allocation9 + $0x1b80] sm:$0xff]  ;;  %v3295_v29 = vld [vmem:[#allocation9 + $0x16b8] sm:$0xff] }
 0x360   : > { %3532 = vmatpush.msrb.mxu3 %v3460_v31  ;;  %3599 = vmatpush.msra.mxu1 %v3369_v32  ;;  %v3447_v30 = vld [vmem:[#allocation9 + $0x1b78] sm:$0xff]  ;;  %v3285_v31 = vld [vmem:[#allocation9 + $0x1668] sm:$0xff]  ;;  %v3290_v32 = vld [vmem:[#allocation9 + $0x1690] sm:$0xff] }
 0x361   : > { %3673 = vmatpush.msrb.mxu0 %v3394_v59  ;;  %3520 = vmatmul.f32.vlgmr.msrb.gmra.mxu2 %v6052_v14  ;;  %v3291_v59 = vld [vmem:[#allocation9 + $0x1698] sm:$0xff] }
 0x362   : > { %3533 = vmatpush.msrb.mxu3 %v3456_v0  ;;  %3600 = vmatmul.f32.vlgmr.msra.gmra.mxu1 %v6052_v14  ;;  %v3443_v0 = vld [vmem:[#allocation9 + $0x1b58] sm:$0xff] }
 0x363   : > { %3612 = vmatpush.msra.mxu2 %v3461_v48  ;;  %3692 = vmatpush.msrb.mxu1 %v3462_v58  ;;  %v3286_v48 = vld [vmem:[#allocation9 + $0x1670] sm:$0xff]  ;;  %v3287_v58 = vld [vmem:[#allocation9 + $0x1678] sm:$0xff] }
 0x364   : > { %3674 = vmatpush.msrb.mxu0 %v3390_v33  ;;  %3534 = vmatpush.msrb.mxu3 %v3452_v36  ;;  %v3439_v33 = vld [vmem:[#allocation9 + $0x1b38] sm:$0xff]  ;;  %v3277_v36 = vld [vmem:[#allocation9 + $0x1628] sm:$0xff] }
 0x365   : > { %3613 = vmatpush.msra.mxu2 %v3457_v61  ;;  %3693 = vmatpush.msrb.mxu1 %v3458_v38  ;;  %v3282_v61 = vld [vmem:[#allocation9 + $0x1650] sm:$0xff]  ;;  %v3283_v38 = vld [vmem:[#allocation9 + $0x1658] sm:$0xff] }
 0x366   : > { %3675 = vmatpush.msrb.mxu0 %v3386_v1  ;;  %3535 = vmatpush.msrb.mxu3 %v3448_v5  ;;  %v3435_v1 = vld [vmem:[#allocation9 + $0x1b18] sm:$0xff]  ;;  %v3273_v5 = vld [vmem:[#allocation9 + $0x1608] sm:$0xff] }
 0x367   : > { %3614 = vmatpush.msra.mxu2 %v3453_v40  ;;  %3694 = vmatpush.msrb.mxu1 %v3454_v63  ;;  %v3278_v40 = vld [vmem:[#allocation9 + $0x1630] sm:$0xff]  ;;  %v3279_v63 = vld [vmem:[#allocation9 + $0x1638] sm:$0xff] }
 0x368   : > { %3676 = vmatpush.msrb.mxu0 %v3382_v60  ;;  %5020 = vmatmul.msk.f32.gmra.mxu3 %vm2351_vm7, %v6098_v3  ;;  %v3438_v3 = vld [vmem:[#allocation9 + $0x1b30] sm:$0xff]  ;;  %v3269_v60 = vld [vmem:[#allocation9 + $0x15e8] sm:$0xff] }
 0x369   : > { %3536 = vmatpush.msrb.mxu3 %v3444_v62  ;;  %3615 = vmatpush.msra.mxu2 %v3449_v23  ;;  %v3274_v62 = vld [vmem:[#allocation9 + $0x1610] sm:$0xff]  ;;  %v3275_v23 = vld [vmem:[#allocation9 + $0x1618] sm:$0xff] }
 0x36a   : > { %3695 = vmatpush.msrb.mxu1 %v3450_v7  ;;  %3677 = vmatpush.msrb.mxu0 %v3378_v8  ;;  %v5364_v7 = vld [vmem:[#allocation2 + $0x18] sm:$0x7f]  ;;  %v3265_v8 = vld [vmem:[#allocation9 + $0x15c8] sm:$0xff] }
 0x36b   : > { %3537 = vmatpush.msrb.mxu3 %v3440_v9  ;;  %3616 = vmatpush.msra.mxu2 %v3445_v45  ;;  %v3270_v9 = vld [vmem:[#allocation9 + $0x15f0] sm:$0xff]  ;;  %v3271_v45 = vld [vmem:[#allocation9 + $0x15f8] sm:$0xff] }
 0x36c   : > { %3696 = vmatpush.msrb.mxu1 %v3446_v17  ;;  %3678 = vmatpush.msrb.mxu0 %v3374_v18  ;;  %v3261_v17 = vld [vmem:[#allocation9 + $0x15a8] sm:$0xff]  ;;  %v3266_v18 = vld [vmem:[#allocation9 + $0x15d0] sm:$0xff] }
 0x36d   : > { %3538 = vmatpush.msrb.mxu3 %v3436_v10  ;;  %3617 = vmatpush.msra.mxu2 %v3441_v28  ;;  %v3267_v10 = vld [vmem:[#allocation9 + $0x15d8] sm:$0xff]  ;;  %v3257_v28 = vld [vmem:[#allocation9 + $0x1588] sm:$0xff] }
 0x36e   : > { %3697 = vmatpush.msrb.mxu1 %v3442_v19  ;;  %3679 = vmatpush.msrb.mxu0 %v3370_v11  ;;  %v3262_v19 = vld [vmem:[#allocation9 + $0x15b0] sm:$0xff]  ;;  %v3263_v11 = vld [vmem:[#allocation9 + $0x15b8] sm:$0xff] }
 0x36f   : > { %3539 = vmatpush.msrb.mxu3 %v3432_v12  ;;  %3618 = vmatpush.msra.mxu2 %v3437_v20  ;;  %v3253_v12 = vld [vmem:[#allocation9 + $0x1568] sm:$0xff]  ;;  %v3258_v20 = vld [vmem:[#allocation9 + $0x1590] sm:$0xff] }
 0x370   : > { %3680 = vmatmul.f32.vlgmr.msrb.gmra.mxu0 %v6052_v14  ;;  %3698 = vmatpush.msrb.mxu1 %v3438_v3  ;;  %v3293_v14 = vld [vmem:[#allocation9 + $0x16a8] sm:$0xff]  ;;  %v3259_v3 = vld [vmem:[#allocation9 + $0x1598] sm:$0xff] }
 0x371   : > { %3772 = vmatpush.msra.mxu0 %v3463_v6  ;;  %3544 = vmatpush.msra.mxu3 %v3301_v37  ;;  %v3249_v6 = vld [vmem:[#allocation9 + $0x1548] sm:$0xff]  ;;  %v3254_v37 = vld [vmem:[#allocation9 + $0x1570] sm:$0xff] }
 0x372   : > { %5021 = vmatmul.msk.f32.vlgmr.msrb.gmra.mxu3 %vm1477_vm5, %v6037_v35  ;;  %3619 = vmatpush.msra.mxu2 %v3433_v15  ;;  %v3255_v15 = vld [vmem:[#allocation9 + $0x1578] sm:$0xff] }
 0x373   : > { %3699 = vmatpush.msrb.mxu1 %v3434_v13  ;;  %3773 = vmatpush.msra.mxu0 %v3459_v16  ;;  %v3245_v13 = vld [vmem:[#allocation9 + $0x1528] sm:$0xff]  ;;  %v3250_v16 = vld [vmem:[#allocation9 + $0x1550] sm:$0xff] }
 0x374   : > { %3545 = vmatpush.msra.mxu3 %v3297_v21  ;;  %5022 = vmatmul.msk.f32.vlgmr.msra.gmra.mxu2 %vm1477_vm5, %v6037_v35  ;;  %v3251_v21 = vld [vmem:[#allocation9 + $0x1558] sm:$0xff] }
 0x375   : > { %3624 = vmatpush.msrb.mxu2 %v3302_v34  ;;  %5023 = vmatmul.msk.f32.vlgmr.msrb.gmra.mxu1 %vm1477_vm5, %v6037_v35  ;;  %v3281_v35 = vld [vmem:[#allocation9 + $0x1648] sm:$0xff] }
 0x376   : > { %3704 = vmatpush.msra.mxu1 %v3303_v22  ;;  %3774 = vmatpush.msra.mxu0 %v3455_v26  ;;  %v3241_v34 = vld [vmem:[#allocation9 + $0x1508] sm:$0xff]  ;;  %v3246_v22 = vld [vmem:[#allocation9 + $0x1530] sm:$0xff]  ;;  %v3247_v26 = vld [vmem:[#allocation9 + $0x1538] sm:$0xff] }
 0x377   : > { %3546 = vmatpush.msra.mxu3 %v3293_v14  ;;  %3625 = vmatpush.msrb.mxu2 %v3298_v24  ;;  %v3366_v14 = vld [vmem:[#allocation9 + $0x18f0] sm:$0xff] }
 0x378   : > { %3705 = vmatpush.msra.mxu1 %v3299_v25  ;;  %3775 = vmatpush.msra.mxu0 %v3451_v27  ;;  %v3242_v24 = vld [vmem:[#allocation9 + $0x1510] sm:$0xff]  ;;  %v3243_v25 = vld [vmem:[#allocation9 + $0x1518] sm:$0xff]  ;;  %v5365_v27 = vld [vmem:[#allocation2] sm:$0x7f] }
 0x379   : > { %3547 = vmatpush.msra.mxu3 %v3289_v2  ;;  %3626 = vmatpush.msrb.mxu2 %v3294_v4  ;;  %v3362_v2 = vld [vmem:[#allocation9 + $0x18d0] sm:$0xff]  ;;  %v3367_v4 = vld [vmem:[#allocation9 + $0x18f8] sm:$0xff] }
 0x37a   : > { %3706 = vmatpush.msra.mxu1 %v3295_v29  ;;  %3776 = vmatpush.msra.mxu0 %v3447_v30  ;;  %v3358_v29 = vld [vmem:[#allocation9 + $0x18b0] sm:$0xff]  ;;  %v3363_v30 = vld [vmem:[#allocation9 + $0x18d8] sm:$0xff] }
 0x37b   : > { %3548 = vmatpush.msra.mxu3 %v3285_v31  ;;  %3627 = vmatpush.msrb.mxu2 %v3290_v32  ;;  %v3354_v31 = vld [vmem:[#allocation9 + $0x1890] sm:$0xff]  ;;  %v3359_v32 = vld [vmem:[#allocation9 + $0x18b8] sm:$0xff] }
 0x37c   : > { %3707 = vmatpush.msra.mxu1 %v3291_v59  ;;  %3777 = vmatpush.msra.mxu0 %v3443_v0  ;;  %v3350_v59 = vld [vmem:[#allocation9 + $0x1870] sm:$0xff]  ;;  %v3355_v0 = vld [vmem:[#allocation9 + $0x1898] sm:$0xff] }
 0x37d   : > { %3549 = vmatpush.msra.mxu3 %v3281_v35  ;;  %3628 = vmatpush.msrb.mxu2 %v3286_v48  ;;  %v3346_v35 = vld [vmem:[#allocation9 + $0x1850] sm:$0xff]  ;;  %v3351_v48 = vld [vmem:[#allocation9 + $0x1878] sm:$0xff] }
 0x37e   : > { %3708 = vmatpush.msra.mxu1 %v3287_v58  ;;  %3778 = vmatpush.msra.mxu0 %v3439_v33  ;;  %v3342_v58 = vld [vmem:[#allocation9 + $0x1830] sm:$0xff]  ;;  %v3347_v33 = vld [vmem:[#allocation9 + $0x1858] sm:$0xff] }
 0x37f   : > { %3550 = vmatpush.msra.mxu3 %v3277_v36  ;;  %3629 = vmatpush.msrb.mxu2 %v3282_v61  ;;  %v3338_v36 = vld [vmem:[#allocation9 + $0x1810] sm:$0xff]  ;;  %v3343_v61 = vld [vmem:[#allocation9 + $0x1838] sm:$0xff] }
 0x380   : > { %3709 = vmatpush.msra.mxu1 %v3283_v38  ;;  %3779 = vmatpush.msra.mxu0 %v3435_v1  ;;  %v3334_v38 = vld [vmem:[#allocation9 + $0x17f0] sm:$0xff]  ;;  %v3339_v1 = vld [vmem:[#allocation9 + $0x1818] sm:$0xff] }
 0x381   : > { %3551 = vmatpush.msra.mxu3 %v3273_v5  ;;  %3630 = vmatpush.msrb.mxu2 %v3278_v40  ;;  %v3330_v5 = vld [vmem:[#allocation9 + $0x17d0] sm:$0xff]  ;;  %v3335_v40 = vld [vmem:[#allocation9 + $0x17f8] sm:$0xff] }
 0x382   : > { %3710 = vmatpush.msra.mxu1 %v3279_v63  ;;  %5024 = vmatmul.msk.f32.vlgmr.msra.gmra.mxu0 %vm1477_vm5, %v5364_v7  ;;  %v3326_v63 = vld [vmem:[#allocation9 + $0x17b0] sm:$0xff] }
 0x383   : > { %3552 = vmatpush.msra.mxu3 %v3269_v60  ;;  %3631 = vmatpush.msrb.mxu2 %v3274_v62  ;;  %v3331_v60 = vld [vmem:[#allocation9 + $0x17d8] sm:$0xff]  ;;  %v3322_v62 = vld [vmem:[#allocation9 + $0x1790] sm:$0xff] }
 0x384   : > { %3711 = vmatpush.msra.mxu1 %v3275_v23  ;;  %v3327_v23 = vld [vmem:[#allocation9 + $0x17b8] sm:$0xff]  ;;  %v3318_v7 = vld [vmem:[#allocation9 + $0x1770] sm:$0xff] }
 0x385   : > { %3553 = vmatpush.msra.mxu3 %v3265_v8  ;;  %3632 = vmatpush.msrb.mxu2 %v3270_v9  ;;  %v3323_v8 = vld [vmem:[#allocation9 + $0x1798] sm:$0xff]  ;;  %v3314_v9 = vld [vmem:[#allocation9 + $0x1750] sm:$0xff] }
 0x386   : > { %3712 = vmatpush.msra.mxu1 %v3271_v45  ;;  %v3319_v45 = vld [vmem:[#allocation9 + $0x1778] sm:$0xff] }
 0x387   : > { %3554 = vmatpush.msra.mxu3 %v3261_v17  ;;  %3633 = vmatpush.msrb.mxu2 %v3266_v18  ;;  %v3310_v17 = vld [vmem:[#allocation9 + $0x1730] sm:$0xff]  ;;  %v3315_v18 = vld [vmem:[#allocation9 + $0x1758] sm:$0xff] }
 0x388   : > { %3713 = vmatpush.msra.mxu1 %v3267_v10  ;;  %v3306_v10 = vld [vmem:[#allocation9 + $0x1710] sm:$0xff] }
 0x389   : > { %3555 = vmatpush.msra.mxu3 %v3257_v28  ;;  %3634 = vmatpush.msrb.mxu2 %v3262_v19  ;;  %v3311_v28 = vld [vmem:[#allocation9 + $0x1738] sm:$0xff] }
 0x38a   : > { %3714 = vmatpush.msra.mxu1 %v3263_v11  ;;  %v3431_v19 = vld [vmem:[#allocation9 + $0x1af8] sm:$0xff] }
 0x38b   : > { %3556 = vmatpush.msra.mxu3 %v3253_v12  ;;  %3635 = vmatpush.msrb.mxu2 %v3258_v20  ;;  %v3307_v11 = vld [vmem:[#allocation9 + $0x1718] sm:$0xff]  ;;  %v5366_v12 = vld [vmem:[#allocation2 + $0x8] sm:$0x7f] }
 0x38c   : > { %3715 = vmatpush.msra.mxu1 %v3259_v3  ;;  %v3427_v20 = vld [vmem:[#allocation9 + $0x1ad8] sm:$0xff] }
 0x38d   : > { %3557 = vmatpush.msra.mxu3 %v3249_v6  ;;  %3636 = vmatpush.msrb.mxu2 %v3254_v37  ;;  %v3423_v3 = vld [vmem:[#allocation9 + $0x1ab8] sm:$0xff] }
 0x38e   : > { %3716 = vmatpush.msra.mxu1 %v3255_v15  ;;  %v3419_v6 = vld [vmem:[#allocation9 + $0x1a98] sm:$0xff] }
 0x38f   : > { %3558 = vmatpush.msra.mxu3 %v3245_v13  ;;  %3637 = vmatpush.msrb.mxu2 %v3250_v16  ;;  %v3415_v37 = vld [vmem:[#allocation9 + $0x1a78] sm:$0xff] }
 0x390   : > { %3717 = vmatpush.msra.mxu1 %v3251_v21  ;;  %v3411_v15 = vld [vmem:[#allocation9 + $0x1a58] sm:$0xff] }
 0x391   : > { %3559 = vmatpush.msra.mxu3 %v3241_v34  ;;  %3638 = vmatpush.msrb.mxu2 %v3246_v22  ;;  %v3407_v13 = vld [vmem:[#allocation9 + $0x1a38] sm:$0xff] }
 0x392   : > { %3718 = vmatpush.msra.mxu1 %v3247_v26  ;;  %3560 = vmatmul.f32.vlgmr.msra.gmra.mxu3 %v5365_v27  ;;  %v3403_v16 = vld [vmem:[#allocation9 + $0x1a18] sm:$0xff] }
 0x393   : > { %3644 = vmatpush.msrb.mxu3 %v3366_v14  ;;  %3639 = vmatpush.msrb.mxu2 %v3242_v24  ;;  %v3399_v21 = vld [vmem:[#allocation9 + $0x19f8] sm:$0xff] }
 0x394   : > { %3719 = vmatpush.msra.mxu1 %v3243_v25  ;;  %3640 = vmatmul.f32.vlgmr.msrb.gmra.mxu2 %v5365_v27  ;;  %v3395_v34 = vld [vmem:[#allocation9 + $0x19d8] sm:$0xff] }
 0x395   : > { %3645 = vmatpush.msrb.mxu3 %v3362_v2  ;;  %3720 = vmatmul.f32.vlgmr.msra.gmra.mxu1 %v5365_v27  ;;  %v3391_v22 = vld [vmem:[#allocation9 + $0x19b8] sm:$0xff]  ;;  %v5367_v2 = vld [vmem:[#allocation2 + $0x10] sm:$0x7f] }
 0x396   : > { %3724 = vmatpush.msra.mxu2 %v3367_v4  ;;  %v3387_v26 = vld [vmem:[#allocation9 + $0x1998] sm:$0xff] }
 0x397   : > { %3646 = vmatpush.msrb.mxu3 %v3358_v29  ;;  %v3383_v14 = vld [vmem:[#allocation9 + $0x1978] sm:$0xff]  ;;  %v6132_v29 = vpop.f32.mrf.mxu0 }
 0x398   : > { %3725 = vmatpush.msra.mxu2 %v3363_v30  ;;  %v3379_v24 = vld [vmem:[#allocation9 + $0x1958] sm:$0xff] }
 0x399   : > { %3647 = vmatpush.msrb.mxu3 %v3354_v31  ;;  %v3375_v25 = vld [vmem:[#allocation9 + $0x1938] sm:$0xff] }
 0x39a   : > { %3726 = vmatpush.msra.mxu2 %v3359_v32  ;;  %v3371_v27 = vld [vmem:[#allocation9 + $0x1918] sm:$0xff] }
 0x39b   : > { %3648 = vmatpush.msrb.mxu3 %v3350_v59 }
 0x39c   : > { %3727 = vmatpush.msra.mxu2 %v3355_v0  ;;  %v6130_v4 = vpop.f32.mrf.mxu1 }
 0x39d   : > { %3649 = vmatpush.msrb.mxu3 %v3346_v35 }
 0x39e   : > { %3728 = vmatpush.msra.mxu2 %v3351_v48 }
 0x39f   : > { %3650 = vmatpush.msrb.mxu3 %v3342_v58  ;;  %v6140_v59 = vpop.f32.mrf.mxu0 }
 0x3a0   : > { %3729 = vmatpush.msra.mxu2 %v3347_v33 }
 0x3a1   : > { %3651 = vmatpush.msrb.mxu3 %v3338_v36 }
 0x3a2   : > { %3730 = vmatpush.msra.mxu2 %v3343_v61 }
 0x3a3   : > { %3652 = vmatpush.msrb.mxu3 %v3334_v38 }
 0x3a4   : > { %3731 = vmatpush.msra.mxu2 %v3339_v1  ;;  %v6138_v32 = vpop.f32.mrf.mxu1 }
 0x3a5   : > { %3653 = vmatpush.msrb.mxu3 %v3330_v5  ;;  %v6149_v5 = vld [vmem:[%s7032_s3 + $0x30] sm:$0xff] }
 0x3a6   : > { %3732 = vmatpush.msra.mxu2 %v3335_v40  ;;  %v6157_v40 = vld [vmem:[%s7032_s3 + $0x38] sm:$0x3f] }
 0x3a7   : > { %3654 = vmatpush.msrb.mxu3 %v3326_v63 }
 0x3a8   : > { %3733 = vmatpush.msra.mxu2 %v3331_v60  ;;  %v3481_v58 = vpop.f32.mrf.mxu0 }
 0x3a9   : > { %3655 = vmatpush.msrb.mxu3 %v3322_v62 }
 0x3aa   : > { %3734 = vmatpush.msra.mxu2 %v3327_v23 }
 0x3ab   : > { %3656 = vmatpush.msrb.mxu3 %v3318_v7 }
 0x3ac   : > { %3735 = vmatpush.msra.mxu2 %v3323_v8 }
 0x3ad   : > { %3657 = vmatpush.msrb.mxu3 %v3314_v9 }
 0x3ae   : > { %3736 = vmatpush.msra.mxu2 %v3319_v45 }
 0x3af   : > { %3658 = vmatpush.msrb.mxu3 %v3310_v17 }
 0x3b0   : > { %3737 = vmatpush.msra.mxu2 %v3315_v18  ;;  %v3946_v18 = vld [vmem:[%s7036_s7 + $0x78] sm:$0xff] }
 0x3b1   : > { %3659 = vmatpush.msrb.mxu3 %v3306_v10 }
 0x3b2   : > { %3738 = vmatpush.msra.mxu2 %v3311_v28  ;;  %3660 = vmatmul.f32.vlgmr.msrb.gmra.mxu3 %v5366_v12 }
 0x3b3   : > { %3744 = vmatpush.msra.mxu3 %v3431_v19  ;;  %v3945_v19 = vld [vmem:[%s7036_s7 + $0x70] sm:$0xff] }
 0x3b4   : > { %3739 = vmatpush.msra.mxu2 %v3307_v11 }
 0x3b5   : > { %3740 = vmatmul.f32.vlgmr.msra.gmra.mxu2 %v5366_v12  ;;  %3745 = vmatpush.msra.mxu3 %v3427_v20  ;;  %v3944_v20 = vld [vmem:[%s7036_s7 + $0x68] sm:$0xff] }
 0x3b7   : > { %3746 = vmatpush.msra.mxu3 %v3423_v3 }
 0x3b9   : > { %3747 = vmatpush.msra.mxu3 %v3419_v6  ;;  %v3943_v6 = vld [vmem:[%s7036_s7 + $0x60] sm:$0xff] }
 0x3bb   : > { %3748 = vmatpush.msra.mxu3 %v3415_v37  ;;  %v3942_v37 = vld [vmem:[%s7036_s7 + $0x58] sm:$0xff] }
 0x3bd   : > { %3749 = vmatpush.msra.mxu3 %v3411_v15  ;;  %v3501_v48 = vpop.f32.mrf.mxu1  ;;  %v3941_v15 = vld [vmem:[%s7036_s7 + $0x50] sm:$0xff] }
 0x3be   : > { %v3502_v36 = vadd.f32 %v3501_v48, %v3481_v58  ;;  %v3934_v48 = vld [vmem:[%s7036_s7 + $0x18] sm:$0xff]  ;;  %v3957_v58 = vld [vmem:[%s7036_s7 + $0xd0] sm:$0xff] }
 0x3bf   : > { %3750 = vmatpush.msra.mxu3 %v3407_v13  ;;  %v3940_v13 = vld [vmem:[%s7036_s7 + $0x48] sm:$0xff] }
 0x3c1   : > { %3751 = vmatpush.msra.mxu3 %v3403_v16  ;;  %v3939_v16 = vld [vmem:[%s7036_s7 + $0x40] sm:$0xff] }
 0x3c2   : > { %v6134_v30 = vpop.f32.mrf.mxu2 }
 0x3c3   : > { %3752 = vmatpush.msra.mxu3 %v3399_v21  ;;  %v3938_v21 = vld [vmem:[%s7036_s7 + $0x38] sm:$0xff] }
 0x3c5   : > { %3753 = vmatpush.msra.mxu3 %v3395_v34  ;;  %v3962_v34 = vld [vmem:[%s7036_s7 + $0xf8] sm:$0xff] }
 0x3c7   : > { %3754 = vmatpush.msra.mxu3 %v3391_v22  ;;  %v3937_v22 = vld [vmem:[%s7036_s7 + $0x30] sm:$0xff] }
 0x3c9   : > { %3755 = vmatpush.msra.mxu3 %v3387_v26  ;;  %v3961_v26 = vld [vmem:[%s7036_s7 + $0xf0] sm:$0xff] }
 0x3ca   : > { %v3581_v63 = vpop.f32.mrf.mxu0 }
 0x3cb   : > { %3756 = vmatpush.msra.mxu3 %v3383_v14  ;;  %v6142_v0 = vpop.f32.mrf.mxu2  ;;  %v3960_v14 = vld [vmem:[%s7036_s7 + $0xe8] sm:$0xff] }
 0x3cd   : > { %3757 = vmatpush.msra.mxu3 %v3379_v24  ;;  %v3936_v24 = vld [vmem:[%s7036_s7 + $0x28] sm:$0xff] }
 0x3cf   : > { %3758 = vmatpush.msra.mxu3 %v3375_v25  ;;  %v3959_v25 = vld [vmem:[%s7036_s7 + $0xe0] sm:$0xff] }
 0x3d1   : > { %3759 = vmatpush.msra.mxu3 %v3371_v27  ;;  %v3935_v27 = vld [vmem:[%s7036_s7 + $0x20] sm:$0xff] }
 0x3d2   : > { %3760 = vmatmul.f32.vlgmr.msra.gmra.mxu3 %v5367_v2  ;;  %v3958_v2 = vld [vmem:[%s7036_s7 + $0xd8] sm:$0xff] }
 0x3df   : > { %v3601_v23 = vpop.f32.mrf.mxu1 }
 0x3e2   : > { %v6136_v31 = vpop.f32.mrf.mxu3 }
 0x3e4   : > { %v3521_v33 = vpop.f32.mrf.mxu2 }
 0x3e5   : > { %v3522_v61 = vadd.f32 %v3521_v33, %v3502_v36  ;;  %v3933_v33 = vld [vmem:[%s7036_s7 + $0x10] sm:$0xff]  ;;  %v3956_v36 = vld [vmem:[%s7036_s7 + $0xc8] sm:$0xff] }
 0x3eb   : > { %v6144_v35 = vpop.f32.mrf.mxu3 }
 0x3ed   : > { %v3681_v28 = vpop.f32.mrf.mxu0 }
 0x3f2   : > { %v3701_v12 = vpop.f32.mrf.mxu1 }
 0x3f5   : > { %v3541_v38 = vpop.f32.mrf.mxu3 }
 0x3f6   : > { %v3542_v1 = vadd.f32 %v3541_v38, %v3522_v61  ;;  %v3932_v61 = vld [vmem:[%s7036_s7 + $0x8] sm:$0xff] }
 0x3f7   : > { %v3621_v8 = vpop.f32.mrf.mxu2 }
 0x3f8   : > { %5027 = vmatpush.msk.msrb.mxu0 %vm2358_vm6, %v3542_v1  ;;  %v3931_v1 = vld [vmem:[%s7036_s7] sm:$0xff] }
 0x3f9   : > { %5028 = vmatmul.msk.f32.vlgmr.msrb.gmra.mxu0 %vm2351_vm7, %v6149_v5 }
 0x3fa   : > { %3993 = vmatpush.msra.mxu0 %v3946_v18  ;;  %v3955_v18 = vld [vmem:[%s7036_s7 + $0xc0] sm:$0xff] }
 0x3fc   : > { %3994 = vmatpush.msra.mxu0 %v3945_v19  ;;  %v5068_v19 = vld [vmem:[%s7036_s7 + $0x298] sm:$0xff] }
 0x3fe   : > { %3995 = vmatpush.msra.mxu0 %v3944_v20  ;;  %v5066_v20 = vld [vmem:[%s7036_s7 + $0x288] sm:$0xff] }
 0x400   : > { %3996 = vmatpush.msra.mxu0 %v3943_v6  ;;  %v5065_v6 = vld [vmem:[%s7036_s7 + $0x280] sm:$0xff] }
 0x401   : > { %5029 = vmatmul.msk.f32.gmra.mxu0 %vm2351_vm7, %v6157_v40 }
 0x402   : > { %3997 = vmatpush.msra.mxu0 %v3942_v37  ;;  %v3950_v37 = vld [vmem:[%s7036_s7 + $0x98] sm:$0xff] }
 0x404   : > { %3998 = vmatpush.msra.mxu0 %v3941_v15  ;;  %v5064_v15 = vld [vmem:[%s7036_s7 + $0x278] sm:$0xff] }
 0x406   : > { %3999 = vmatpush.msra.mxu0 %v3940_v13  ;;  %v3949_v13 = vld [vmem:[%s7036_s7 + $0x90] sm:$0xff] }
 0x408   : > { %4000 = vmatpush.msra.mxu0 %v3939_v16  ;;  %v5063_v16 = vld [vmem:[%s7036_s7 + $0x270] sm:$0xff] }
 0x40a   : > { %4001 = vmatpush.msra.mxu0 %v3938_v21  ;;  %v5062_v21 = vld [vmem:[%s7036_s7 + $0x268] sm:$0xff] }
 0x40c   : > { %4002 = vmatpush.msra.mxu0 %v3937_v22  ;;  %v5061_v22 = vld [vmem:[%s7036_s7 + $0x260] sm:$0xff] }
 0x40e   : > { %4003 = vmatpush.msra.mxu0 %v3936_v24  ;;  %v5087_v24 = vld [vmem:[%s7036_s7 + $0x330] sm:$0xff] }
 0x410   : > { %4004 = vmatpush.msra.mxu0 %v3935_v27  ;;  %v5086_v27 = vld [vmem:[%s7036_s7 + $0x328] sm:$0xff] }
 0x412   : > { %4005 = vmatpush.msra.mxu0 %v3934_v48  ;;  %v5085_v48 = vld [vmem:[%s7036_s7 + $0x320] sm:$0xff] }
 0x414   : > { %4006 = vmatpush.msra.mxu0 %v3933_v33  ;;  %v5084_v33 = vld [vmem:[%s7036_s7 + $0x318] sm:$0xff] }
 0x415   : > { %v3561_v60 = vpop.f32.mrf.mxu3 }
 0x416   : > { %v3582_v62 = vadd.f32 %v3581_v63, %v3561_v60  ;;  %4007 = vmatpush.msra.mxu0 %v3932_v61  ;;  %v5072_v63 = vld [vmem:[%s7036_s7 + $0x2b8] sm:$0xff]  ;;  %v3721_v60 = vpop.f32.mrf.mxu1  ;;  %v5083_v61 = vld [vmem:[%s7036_s7 + $0x310] sm:$0xff] }
 0x417   : > { %v3641_v45 = vpop.f32.mrf.mxu2 }
 0x418   : > { %v3602_v7 = vadd.f32 %v3601_v23, %v3582_v62  ;;  %4008 = vmatpush.msra.mxu0 %v3931_v1  ;;  %v5071_v23 = vld [vmem:[%s7036_s7 + $0x2b0] sm:$0xff]  ;;  %v5082_v1 = vld [vmem:[%s7036_s7 + $0x308] sm:$0xff] }
 0x41a   : > { %v3622_v9 = vadd.f32 %v3621_v8, %v3602_v7  ;;  %4169 = vmatpush.msrb.mxu0 %v5072_v63 }
 0x41c   : > { %5030 = vmatpush.msk.msrb.mxu1 %vm2358_vm6, %v3622_v9  ;;  %v5070_v9 = vld [vmem:[%s7036_s7 + $0x2a8] sm:$0xff]  ;;  %4170 = vmatpush.msrb.mxu0 %v5071_v23  ;;  %v5081_v23 = vld [vmem:[%s7036_s7 + $0x300] sm:$0xff] }
 0x41d   : > { %5031 = vmatmul.msk.f32.vlgmr.msrb.gmra.mxu1 %vm2351_vm7, %v6149_v5 }
 0x41e   : > { %4016 = vmatpush.msra.mxu1 %v3962_v34  ;;  %4171 = vmatpush.msrb.mxu0 %v5070_v9  ;;  %v3947_v34 = vld [vmem:[%s7036_s7 + $0x80] sm:$0xff]  ;;  %v5128_v9 = vld [vmem:[%s7036_s7 + $0x3f8] sm:$0xff] }
 0x420   : > { %4017 = vmatpush.msra.mxu1 %v3961_v26  ;;  %v5088_v26 = vld [vmem:[%s7036_s7 + $0x338] sm:$0xff] }
 0x422   : > { %4018 = vmatpush.msra.mxu1 %v3960_v14  ;;  %v5060_v14 = vld [vmem:[%s7036_s7 + $0x258] sm:$0xff] }
 0x424   : > { %4019 = vmatpush.msra.mxu1 %v3959_v25  ;;  %v5059_v25 = vld [vmem:[%s7036_s7 + $0x250] sm:$0xff] }
 0x425   : > { %5032 = vmatmul.msk.f32.gmra.mxu1 %vm2351_vm7, %v6157_v40 }
 0x426   : > { %4020 = vmatpush.msra.mxu1 %v3958_v2  ;;  %v5058_v2 = vld [vmem:[%s7036_s7 + $0x248] sm:$0xff] }
 0x428   : > { %4021 = vmatpush.msra.mxu1 %v3957_v58  ;;  %v5057_v58 = vld [vmem:[%s7036_s7 + $0x240] sm:$0xff] }
 0x42a   : > { %4022 = vmatpush.msra.mxu1 %v3956_v36  ;;  %v6335_v36 = vld [vmem:[#allocation11] sm:$0xf] }
 0x42c   : > { %4023 = vmatpush.msra.mxu1 %v3955_v18  ;;  %v5127_v18 = vld [vmem:[%s7036_s7 + $0x3f0] sm:$0xff] }
 0x435   : > { %v3661_v17 = vpop.f32.mrf.mxu3 }
 0x436   : > { %v3662_v10 = vadd.f32 %v3661_v17, %v3641_v45  ;;  %v3781_v45 = vpop.f32.mrf.mxu0 }
 0x438   : > { %v3682_v11 = vadd.f32 %v3681_v28, %v3662_v10  ;;  %v3741_v38 = vpop.f32.mrf.mxu2  ;;  %v5069_v10 = vld [vmem:[%s7036_s7 + $0x2a0] sm:$0xff]  ;;  %v3954_v28 = vld [vmem:[%s7036_s7 + $0xb8] sm:$0xff] }
 0x439   : > { %v3742_v62 = vadd.f32 %v3741_v38, %v3721_v60  ;;  %4172 = vmatpush.msrb.mxu0 %v5069_v10  ;;  %4024 = vmatpush.msra.mxu1 %v3954_v28  ;;  %v2499_v38 = vadd.f32 %v6073_v51, %v6057_v39  ;;  %v3907_v60 = vperm.slane %v6335_v36, 0  ;;  %v5080_v39 = vld [vmem:[%s7036_s7 + $0x2f8] sm:$0xff]  ;;  %v5126_v28 = vld [vmem:[%s7036_s7 + $0x3e8] sm:$0xff] }
 0x43a   : > { %v3702_v3 = vadd.f32 %v3701_v12, %v3682_v11  ;;  %v3953_v11 = vld [vmem:[%s7036_s7 + $0xb0] sm:$0xff] }
 0x43b   : > { %v5067_v12 = vld [vmem:[%s7036_s7 + $0x290] sm:$0xff]  ;;  %4173 = vmatpush.msrb.mxu0 %v5068_v19  ;;  %4025 = vmatpush.msra.mxu1 %v3953_v11  ;;  %v3231_v63 = vadd.f32 %v6132_v29, %v2499_v38  ;;  %v5125_v11 = vld [vmem:[%s7036_s7 + $0x3e0] sm:$0xff]  ;;  %v3970_v38 = vld [vmem:[%s7036_s7 + $0x138] sm:$0xff] }
 0x43c   : > { %5033 = vmatpush.msk.msrb.mxu2 %vm2358_vm6, %v3702_v3  ;;  %v3951_v3 = vld [vmem:[%s7036_s7 + $0xa0] sm:$0xff] }
 0x43d   : > { %5034 = vmatmul.msk.f32.vlgmr.msrb.gmra.mxu2 %vm2351_vm7, %v6149_v5  ;;  %4174 = vmatpush.msrb.mxu0 %v5067_v12  ;;  %v5076_v12 = vld [vmem:[%s7036_s7 + $0x2d8] sm:$0xff] }
 0x43f   : > { %4175 = vmatpush.msrb.mxu0 %v5066_v20  ;;  %v5124_v20 = vld [vmem:[%s7036_s7 + $0x3d8] sm:$0xff] }
 0x441   : > { %4176 = vmatpush.msrb.mxu0 %v5065_v6  ;;  %v5123_v6 = vld [vmem:[%s7036_s7 + $0x3d0] sm:$0xff] }
 0x443   : > { %4177 = vmatpush.msrb.mxu0 %v5064_v15  ;;  %v5122_v15 = vld [vmem:[%s7036_s7 + $0x3c8] sm:$0xff] }
 0x445   : > { %5035 = vmatmul.msk.f32.gmra.mxu2 %vm2351_vm7, %v6157_v40  ;;  %4178 = vmatpush.msrb.mxu0 %v5063_v16  ;;  %v5073_v16 = vld [vmem:[%s7036_s7 + $0x2c0] sm:$0xff] }
 0x447   : > { %4179 = vmatpush.msrb.mxu0 %v5062_v21  ;;  %v3977_v21 = vld [vmem:[%s7036_s7 + $0x170] sm:$0xff] }
 0x449   : > { %4180 = vmatpush.msrb.mxu0 %v5061_v22  ;;  %v5120_v22 = vld [vmem:[%s7036_s7 + $0x3b8] sm:$0xff] }
 0x44b   : > { %4181 = vmatpush.msrb.mxu0 %v5060_v14  ;;  %v5119_v14 = vld [vmem:[%s7036_s7 + $0x3b0] sm:$0xff] }
 0x44d   : > { %4182 = vmatpush.msrb.mxu0 %v5059_v25  ;;  %v5118_v25 = vld [vmem:[%s7036_s7 + $0x3a8] sm:$0xff] }
 0x44f   : > { %4183 = vmatpush.msrb.mxu0 %v5058_v2  ;;  %v5117_v2 = vld [vmem:[%s7036_s7 + $0x3a0] sm:$0xff] }
 0x451   : > { %4184 = vmatpush.msrb.mxu0 %v5057_v58  ;;  %v5116_v58 = vld [vmem:[%s7036_s7 + $0x398] sm:$0xff] }
 0x455   : > { %v3761_v7 = vpop.f32.mrf.mxu3 }
 0x456   : > { %v3762_v8 = vadd.f32 %v3761_v7, %v3742_v62 }
 0x458   : > { %v3782_v17 = vadd.f32 %v3781_v45, %v3762_v8  ;;  %v2502_v8 = vadd.f32 %v6081_v55, %v6065_v46  ;;  %v5079_v45 = vld [vmem:[%s7036_s7 + $0x2f0] sm:$0xff]  ;;  %v5078_v55 = vld [vmem:[%s7036_s7 + $0x2e8] sm:$0xff] }
 0x45a   : > { %5036 = vmatpush.msk.msrb.mxu3 %vm2358_vm6, %v3782_v17  ;;  %v3235_v17 = vadd.f32 %v6140_v59, %v2502_v8  ;;  %v5077_v59 = vld [vmem:[%s7036_s7 + $0x2e0] sm:$0xff]  ;;  %v2525_v8 = vadd.f32 %v6079_v54, %v6063_v44  ;;  %v5143_v44 = vld [vmem:[%s7036_s7 + $0x470] sm:$0xff] }
 0x45b   : > { %5037 = vmatmul.msk.f32.vlgmr.msrb.gmra.mxu3 %vm2351_vm7, %v6149_v5  ;;  %v3952_v5 = vld [vmem:[%s7036_s7 + $0xa8] sm:$0xff] }
 0x45c   : > { %4026 = vmatpush.msra.mxu1 %v3952_v5 }
 0x45e   : > { %4027 = vmatpush.msra.mxu1 %v3951_v3  ;;  %v5075_v3 = vld [vmem:[%s7036_s7 + $0x2d0] sm:$0xff] }
 0x460   : > { %4028 = vmatpush.msra.mxu1 %v3950_v37  ;;  %v5074_v37 = vld [vmem:[%s7036_s7 + $0x2c8] sm:$0xff] }
 0x462   : > { %4029 = vmatpush.msra.mxu1 %v3949_v13  ;;  %v3978_v13 = vld [vmem:[%s7036_s7 + $0x178] sm:$0xff] }
 0x463   : > { %5038 = vmatmul.msk.f32.gmra.mxu3 %vm2351_vm7, %v6157_v40  ;;  %v3948_v40 = vld [vmem:[%s7036_s7 + $0x88] sm:$0xff]  ;;  %4039 = vmatpush.msra.mxu2 %v3978_v13  ;;  %v3983_v13 = vld [vmem:[%s7036_s7 + $0x1a0] sm:$0xff] }
 0x464   : > { %4030 = vmatpush.msra.mxu1 %v3948_v40  ;;  %v5121_v40 = vld [vmem:[%s7036_s7 + $0x3c0] sm:$0xff] }
 0x465   : > { %4040 = vmatpush.msra.mxu2 %v3977_v21  ;;  %v5136_v21 = vld [vmem:[%s7036_s7 + $0x438] sm:$0xff] }
 0x466   : > { %4031 = vmatpush.msra.mxu1 %v3947_v34  ;;  %v3976_v34 = vld [vmem:[%s7036_s7 + $0x168] sm:$0xff] }
 0x467   : > { %4041 = vmatpush.msra.mxu2 %v3976_v34  ;;  %v3981_v34 = vld [vmem:[%s7036_s7 + $0x190] sm:$0xff] }
 0x468   : > { %4192 = vmatpush.msrb.mxu1 %v5088_v26  ;;  %v3975_v26 = vld [vmem:[%s7036_s7 + $0x160] sm:$0xff] }
 0x469   : > { %4042 = vmatpush.msra.mxu2 %v3975_v26  ;;  %v3980_v26 = vld [vmem:[%s7036_s7 + $0x188] sm:$0xff] }
 0x46a   : > { %4193 = vmatpush.msrb.mxu1 %v5087_v24  ;;  %v3974_v24 = vld [vmem:[%s7036_s7 + $0x158] sm:$0xff] }
 0x46b   : > { %4043 = vmatpush.msra.mxu2 %v3974_v24  ;;  %v3979_v24 = vld [vmem:[%s7036_s7 + $0x180] sm:$0xff] }
 0x46c   : > { %4194 = vmatpush.msrb.mxu1 %v5086_v27  ;;  %v3973_v27 = vld [vmem:[%s7036_s7 + $0x150] sm:$0xff] }
 0x46d   : > { %4044 = vmatpush.msra.mxu2 %v3973_v27  ;;  %v5096_v27 = vld [vmem:[%s7036_s7 + $0x378] sm:$0xff] }
 0x46e   : > { %4195 = vmatpush.msrb.mxu1 %v5085_v48  ;;  %v3972_v48 = vld [vmem:[%s7036_s7 + $0x148] sm:$0xff] }
 0x46f   : > { %4045 = vmatpush.msra.mxu2 %v3972_v48  ;;  %v5055_v48 = vld [vmem:[%s7036_s7 + $0x230] sm:$0xff] }
 0x470   : > { %4196 = vmatpush.msrb.mxu1 %v5084_v33  ;;  %v3971_v33 = vld [vmem:[%s7036_s7 + $0x140] sm:$0xff] }
 0x471   : > { %4046 = vmatpush.msra.mxu2 %v3971_v33  ;;  %v5132_v33 = vld [vmem:[%s7036_s7 + $0x418] sm:$0xff] }
 0x472   : > { %4197 = vmatpush.msrb.mxu1 %v5083_v61  ;;  %v5115_v61 = vld [vmem:[%s7036_s7 + $0x390] sm:$0xff] }
 0x473   : > { %4047 = vmatpush.msra.mxu2 %v3970_v38  ;;  %v5094_v38 = vld [vmem:[%s7036_s7 + $0x368] sm:$0xff] }
 0x474   : > { %4198 = vmatpush.msrb.mxu1 %v5082_v1  ;;  %v2522_v1 = vadd.f32 %v6071_v50, %v6055_v41  ;;  %v3968_v41 = vld [vmem:[%s7036_s7 + $0x128] sm:$0xff] }
 0x476   : > { %v3822_v62 = vpop.f32.mrf.mxu0  ;;  %4199 = vmatpush.msrb.mxu1 %v5081_v23  ;;  %v3908_v23 = vperm.slane %v6335_v36, 1 }
 0x477   : > { %v3897_v7 = vadd.f32 %v3822_v62, %v3231_v63  ;;  %v5114_v63 = vld [vmem:[%s7036_s7 + $0x388] sm:$0xff]  ;;  %v3232_v62 = vadd.f32 %v6130_v4, %v2522_v1  ;;  %v5131_v1 = vld [vmem:[%s7036_s7 + $0x410] sm:$0xff] }
 0x478   : > { %4200 = vmatpush.msrb.mxu1 %v5080_v39 }
 0x479   : > { %v3915_v51 = vadd.f32 %v3907_v60, %v3897_v7  ;;  %v5113_v7 = vld [vmem:[%s7036_s7 + $0x380] sm:$0xff] }
 0x47a   : > { %4201 = vmatpush.msrb.mxu1 %v5079_v45  ;;  %v5144_v45 = vld [vmem:[%s7036_s7 + $0x478] sm:$0xff] }
 0x47b   : > { %v6355_v29 = vmax.f32 %v3915_v51, 0.0  ;;  %v3967_v51 = vld [vmem:[%s7036_s7 + $0x120] sm:$0xff] }
 0x47c   : > { %4202 = vmatpush.msrb.mxu1 %v5078_v55 }
 0x47d   : > { %4009 = vmatmul.f32.vlgmr.msra.gmra.mxu0 %v6355_v29 }
 0x47e   : > { %v3825_v46 = vpop.f32.mrf.mxu0  ;;  %4390 = vmatpush.msra.mxu0 %v5128_v9  ;;  %4203 = vmatpush.msrb.mxu1 %v5077_v59  ;;  %v5141_v59 = vld [vmem:[%s7036_s7 + $0x460] sm:$0xff] }
 0x47f   : > { %v3901_v10 = vadd.f32 %v3825_v46, %v3235_v17  ;;  %v3966_v17 = vld [vmem:[%s7036_s7 + $0x118] sm:$0xff]  ;;  %v3965_v46 = vld [vmem:[%s7036_s7 + $0x110] sm:$0xff] }
 0x480   : > { %4391 = vmatpush.msra.mxu0 %v5127_v18  ;;  %4204 = vmatpush.msrb.mxu1 %v5076_v12  ;;  %v3236_v18 = vadd.f32 %v6138_v32, %v2525_v8  ;;  %v5142_v32 = vld [vmem:[%s7036_s7 + $0x468] sm:$0xff] }
 0x481   : > { %v3919_v19 = vadd.f32 %v3907_v60, %v3901_v10  ;;  %v3969_v60 = vld [vmem:[%s7036_s7 + $0x130] sm:$0xff]  ;;  %v3964_v10 = vld [vmem:[%s7036_s7 + $0x108] sm:$0xff] }
 0x482   : > { %4392 = vmatpush.msra.mxu0 %v5126_v28  ;;  %4205 = vmatpush.msrb.mxu1 %v5075_v3  ;;  %v3985_v3 = vld [vmem:[%s7036_s7 + $0x1b0] sm:$0xff] }
 0x483   : > { %v6383_v5 = vmax.f32 %v3919_v19, 0.0  ;;  %4048 = vmatpush.msra.mxu2 %v3969_v60  ;;  %v3963_v19 = vld [vmem:[%s7036_s7 + $0x100] sm:$0xff] }
 0x484   : > { %4393 = vmatpush.msra.mxu0 %v5125_v11  ;;  %4206 = vmatpush.msrb.mxu1 %v5074_v37  ;;  %v3986_v11 = vld [vmem:[%s7036_s7 + $0x1b8] sm:$0xff]  ;;  %v3984_v37 = vld [vmem:[%s7036_s7 + $0x1a8] sm:$0xff]  ;;  %v5093_v60 = vld [vmem:[%s7036_s7 + $0x360] sm:$0xff] }
 0x485   : > { %4012 = vmatmul.f32.gmra.mxu0 %v6383_v5  ;;  %4049 = vmatpush.msra.mxu2 %v3968_v41  ;;  %v5052_v41 = vld [vmem:[%s7036_s7 + $0x218] sm:$0xff] }
 0x486   : > { %4394 = vmatpush.msra.mxu0 %v5124_v20  ;;  %4207 = vmatpush.msrb.mxu1 %v5073_v16  ;;  %v5140_v20 = vld [vmem:[%s7036_s7 + $0x458] sm:$0xff]  ;;  %v5137_v16 = vld [vmem:[%s7036_s7 + $0x440] sm:$0xff] }
 0x487   : > { %4050 = vmatpush.msra.mxu2 %v3967_v51  ;;  %4070 = vmatpush.msra.mxu3 %v3986_v11  ;;  %v3909_v51 = vperm.slane %v6335_v36, 2 }
 0x488   : > { %4395 = vmatpush.msra.mxu0 %v5123_v6  ;;  %v5139_v6 = vld [vmem:[%s7036_s7 + $0x450] sm:$0xff] }
 0x489   : > { %4051 = vmatpush.msra.mxu2 %v3966_v17  ;;  %4071 = vmatpush.msra.mxu3 %v3985_v3  ;;  %v5045_v3 = vld [vmem:[%s7036_s7 + $0x1e0] sm:$0xff] }
 0x48a   : > { %4396 = vmatpush.msra.mxu0 %v5122_v15  ;;  %v5138_v15 = vld [vmem:[%s7036_s7 + $0x448] sm:$0xff] }
 0x48b   : > { %4052 = vmatpush.msra.mxu2 %v3965_v46  ;;  %4072 = vmatpush.msra.mxu3 %v3984_v37  ;;  %v5191_v37 = vld [vmem:[%s7036_s7 + $0x598] sm:$0xff] }
 0x48c   : > { %4397 = vmatpush.msra.mxu0 %v5121_v40  ;;  %v3982_v40 = vld [vmem:[%s7036_s7 + $0x198] sm:$0xff] }
 0x48d   : > { %4053 = vmatpush.msra.mxu2 %v3964_v10  ;;  %4073 = vmatpush.msra.mxu3 %v3983_v13  ;;  %v5190_v13 = vld [vmem:[%s7036_s7 + $0x590] sm:$0xff] }
 0x48e   : > { %4398 = vmatpush.msra.mxu0 %v5120_v22  ;;  %v5135_v22 = vld [vmem:[%s7036_s7 + $0x430] sm:$0xff] }
 0x48f   : > { %4054 = vmatpush.msra.mxu2 %v3963_v19  ;;  %4074 = vmatpush.msra.mxu3 %v3982_v40  ;;  %v5046_v19 = vld [vmem:[%s7036_s7 + $0x1e8] sm:$0xff] }
 0x490   : > { %4399 = vmatpush.msra.mxu0 %v5119_v14  ;;  %v5134_v14 = vld [vmem:[%s7036_s7 + $0x428] sm:$0xff] }
 0x491   : > { %4075 = vmatpush.msra.mxu3 %v3981_v34  ;;  %4223 = vmatpush.msrb.mxu2 %v5096_v27  ;;  %v5189_v40 = vld [vmem:[%s7036_s7 + $0x588] sm:$0xff]  ;;  %v5188_v34 = vld [vmem:[%s7036_s7 + $0x580] sm:$0xff] }
 0x492   : > { %4400 = vmatpush.msra.mxu0 %v5118_v25  ;;  %v5056_v25 = vld [vmem:[%s7036_s7 + $0x238] sm:$0xff]  ;;  %v5184_v27 = vld [vmem:[%s7036_s7 + $0x560] sm:$0xff] }
 0x493   : > { %4076 = vmatpush.msra.mxu3 %v3980_v26  ;;  %v5187_v26 = vld [vmem:[%s7036_s7 + $0x578] sm:$0xff] }
 0x494   : > { %4401 = vmatpush.msra.mxu0 %v5117_v2  ;;  %v5133_v2 = vld [vmem:[%s7036_s7 + $0x420] sm:$0xff] }
 0x495   : > { %4077 = vmatpush.msra.mxu3 %v3979_v24  ;;  %v5185_v24 = vld [vmem:[%s7036_s7 + $0x568] sm:$0xff] }
 0x496   : > { %4402 = vmatpush.msra.mxu0 %v5116_v58  ;;  %v5095_v58 = vld [vmem:[%s7036_s7 + $0x370] sm:$0xff] }
 0x497   : > { %4146 = vmatpush.msrb.mxu3 %v5056_v25  ;;  %4224 = vmatpush.msrb.mxu2 %v5095_v58  ;;  %v2568_v25 = vadd.f32 %v6077_v53, %v6061_v43  ;;  %v5183_v58 = vld [vmem:[%s7036_s7 + $0x558] sm:$0xff]  ;;  %v5182_v43 = vld [vmem:[%s7036_s7 + $0x550] sm:$0xff] }
 0x498   : > { %4403 = vmatpush.msra.mxu0 %v5115_v61  ;;  %v5054_v61 = vld [vmem:[%s7036_s7 + $0x228] sm:$0xff] }
 0x499   : > { %4147 = vmatpush.msrb.mxu3 %v5055_v48  ;;  %4225 = vmatpush.msrb.mxu2 %v5094_v38  ;;  %v3910_v48 = vperm.slane %v6335_v36, 3  ;;  %v2571_v36 = vadd.f32 %v6085_v57, %v6069_v49 }
 0x49a   : > { %v3845_v50 = vpop.f32.mrf.mxu1  ;;  %4404 = vmatpush.msra.mxu0 %v5114_v63  ;;  %v5053_v63 = vld [vmem:[%s7036_s7 + $0x220] sm:$0xff] }
 0x49b   : > { %v3898_v39 = vadd.f32 %v3845_v50, %v3232_v62  ;;  %v5130_v62 = vld [vmem:[%s7036_s7 + $0x408] sm:$0xff]  ;;  %4148 = vmatpush.msrb.mxu3 %v5054_v61  ;;  %4226 = vmatpush.msrb.mxu2 %v5093_v60  ;;  %v5092_v50 = vld [vmem:[%s7036_s7 + $0x358] sm:$0xff] }
 0x49c   : > { %4405 = vmatpush.msra.mxu0 %v5113_v7  ;;  %v5129_v7 = vld [vmem:[%s7036_s7 + $0x400] sm:$0xff] }
 0x49d   : > { %v3916_v4 = vadd.f32 %v3908_v23, %v3898_v39  ;;  %4149 = vmatpush.msrb.mxu3 %v5053_v63  ;;  %4227 = vmatpush.msrb.mxu2 %v5092_v50  ;;  %v3238_v63 = vadd.f32 %v6144_v35, %v2571_v36  ;;  %v5156_v36 = vld [vmem:[%s7036_s7 + $0x4d8] sm:$0xff] }
 0x49f   : > { %v6473_v9 = vmax.f32 %v3916_v4, 0.0  ;;  %4150 = vmatpush.msrb.mxu3 %v5052_v41 }
 0x4a1   : > { %4032 = vmatmul.f32.vlgmr.msra.gmra.mxu1 %v6473_v9  ;;  %4185 = vmatmul.f32.vlgmr.msrb.gmra.mxu0 %v6473_v9 }
 0x4a2   : > { %v3848_v54 = vpop.f32.mrf.mxu1  ;;  %4413 = vmatpush.msra.mxu1 %v5144_v45  ;;  %v5090_v45 = vld [vmem:[%s7036_s7 + $0x348] sm:$0xff] }
 0x4a3   : > { %v3902_v55 = vadd.f32 %v3848_v54, %v3236_v18  ;;  %v5049_v18 = vld [vmem:[%s7036_s7 + $0x200] sm:$0xff]  ;;  %v2548_v54 = vadd.f32 %v6083_v56, %v6067_v47  ;;  %v5194_v47 = vld [vmem:[%s7036_s7 + $0x5b0] sm:$0xff] }
 0x4a4   : > { %4414 = vmatpush.msra.mxu1 %v5143_v44  ;;  %v5089_v44 = vld [vmem:[%s7036_s7 + $0x340] sm:$0xff]  ;;  %v5047_v56 = vld [vmem:[%s7036_s7 + $0x1f0] sm:$0xff] }
 0x4a5   : > { %v3920_v28 = vadd.f32 %v3908_v23, %v3902_v55  ;;  %v2545_v23 = vadd.f32 %v6075_v52, %v6059_v42  ;;  %v5051_v42 = vld [vmem:[%s7036_s7 + $0x210] sm:$0xff]  ;;  %v5195_v55 = vld [vmem:[%s7036_s7 + $0x5b8] sm:$0xff]  ;;  %v3237_v10 = vadd.f32 %v6142_v0, %v2548_v54  ;;  %v5193_v0 = vld [vmem:[%s7036_s7 + $0x5a8] sm:$0xff] }
 0x4a6   : > { %4415 = vmatpush.msra.mxu1 %v5142_v32  ;;  %v5091_v52 = vld [vmem:[%s7036_s7 + $0x350] sm:$0xff]  ;;  %4151 = vmatpush.msrb.mxu3 %v5051_v42  ;;  %v5048_v32 = vld [vmem:[%s7036_s7 + $0x1f8] sm:$0xff] }
 0x4a7   : > { %v6505_v12 = vmax.f32 %v3920_v28, 0.0  ;;  %v3233_v39 = vadd.f32 %v6134_v30, %v2545_v23  ;;  %4228 = vmatpush.msrb.mxu2 %v5091_v52  ;;  %v5050_v30 = vld [vmem:[%s7036_s7 + $0x208] sm:$0xff] }
 0x4a8   : > { %4416 = vmatpush.msra.mxu1 %v5141_v59  ;;  %4152 = vmatpush.msrb.mxu3 %v5050_v30 }
 0x4a9   : > { %4035 = vmatmul.f32.gmra.mxu1 %v6505_v12  ;;  %4188 = vmatmul.f32.gmra.mxu0 %v6505_v12 }
 0x4aa   : > { %4417 = vmatpush.msra.mxu1 %v5140_v20  ;;  %4229 = vmatpush.msrb.mxu2 %v5090_v45  ;;  %v5192_v20 = vld [vmem:[%s7036_s7 + $0x5a0] sm:$0xff] }
 0x4ab   : > { %4153 = vmatpush.msrb.mxu3 %v5049_v18 }
 0x4ac   : > { %4418 = vmatpush.msra.mxu1 %v5139_v6  ;;  %4230 = vmatpush.msrb.mxu2 %v5089_v44  ;;  %v5167_v44 = vld [vmem:[%s7036_s7 + $0x530] sm:$0xff] }
 0x4ad   : > { %4154 = vmatpush.msrb.mxu3 %v5048_v32  ;;  %v5166_v32 = vld [vmem:[%s7036_s7 + $0x528] sm:$0xff] }
 0x4ae   : > { %4419 = vmatpush.msra.mxu1 %v5138_v15  ;;  %v5044_v15 = vld [vmem:[%s7036_s7 + $0x1d8] sm:$0xff] }
 0x4af   : > { %4155 = vmatpush.msrb.mxu3 %v5047_v56  ;;  %v4086_v56 = vld [vmem:[%s7035_s6 + $0x8] sm:$0xff] }
 0x4b0   : > { %4420 = vmatpush.msra.mxu1 %v5137_v16  ;;  %v5043_v16 = vld [vmem:[%s7036_s7 + $0x1d0] sm:$0xff] }
 0x4b1   : > { %4406 = vmatmul.f32.vlgmr.msra.gmra.mxu0 %v6355_v29  ;;  %4156 = vmatpush.msrb.mxu3 %v5046_v19 }
 0x4b2   : > { %4421 = vmatpush.msra.mxu1 %v5136_v21  ;;  %v5042_v21 = vld [vmem:[%s7036_s7 + $0x1c8] sm:$0xff] }
 0x4b3   : > { %4157 = vmatpush.msrb.mxu3 %v5045_v3 }
 0x4b4   : > { %4422 = vmatpush.msra.mxu1 %v5135_v22  ;;  %v5041_v22 = vld [vmem:[%s7036_s7 + $0x1c0] sm:$0xff] }
 0x4b5   : > { %4158 = vmatpush.msrb.mxu3 %v5044_v15  ;;  %v5161_v15 = vld [vmem:[%s7036_s7 + $0x500] sm:$0xff] }
 0x4b6   : > { %4423 = vmatpush.msra.mxu1 %v5134_v14  ;;  %v5186_v14 = vld [vmem:[%s7036_s7 + $0x570] sm:$0xff] }
 0x4b7   : > { %4159 = vmatpush.msrb.mxu3 %v5043_v16 }
 0x4b8   : > { %4424 = vmatpush.msra.mxu1 %v5133_v2  ;;  %v3234_v2 = vadd.f32 %v6136_v31, %v2568_v25  ;;  %v5181_v31 = vld [vmem:[%s7036_s7 + $0x548] sm:$0xff]  ;;  %v5160_v25 = vld [vmem:[%s7036_s7 + $0x4f8] sm:$0xff] }
 0x4b9   : > { %4409 = vmatmul.f32.gmra.mxu0 %v6383_v5  ;;  %4160 = vmatpush.msrb.mxu3 %v5042_v21 }
 0x4ba   : > { %4425 = vmatpush.msra.mxu1 %v5132_v33 }
 0x4bb   : > { %4161 = vmatpush.msrb.mxu3 %v5041_v22 }
 0x4bc   : > { %4426 = vmatpush.msra.mxu1 %v5131_v1  ;;  %v5180_v1 = vld [vmem:[%s7036_s7 + $0x540] sm:$0xff] }
 0x4be   : > { %4427 = vmatpush.msra.mxu1 %v5130_v62 }
 0x4c0   : > { %v3868_v4 = vpop.f32.mrf.mxu2  ;;  %4428 = vmatpush.msra.mxu1 %v5129_v7 }
 0x4c1   : > { %v3899_v8 = vadd.f32 %v3868_v4, %v3233_v39 }
 0x4c3   : > { %v3917_v17 = vadd.f32 %v3909_v51, %v3899_v8 }
 0x4c5   : > { %v6622_v46 = vmax.f32 %v3917_v17, 0.0 }
 0x4c7   : > { %4055 = vmatmul.f32.vlgmr.msra.gmra.mxu2 %v6622_v46  ;;  %4208 = vmatmul.f32.vlgmr.msrb.gmra.mxu1 %v6622_v46 }
 0x4c8   : > { %v3871_v28 = vpop.f32.mrf.mxu2  ;;  %4592 = vmatpush.msrb.mxu1 %v5195_v55 }
 0x4c9   : > { %v3903_v59 = vadd.f32 %v3871_v28, %v3237_v10  ;;  %v5164_v28 = vld [vmem:[%s7036_s7 + $0x518] sm:$0xff] }
 0x4ca   : > { %4593 = vmatpush.msrb.mxu1 %v5194_v47  ;;  %v5165_v47 = vld [vmem:[%s7036_s7 + $0x520] sm:$0xff] }
 0x4cb   : > { %v3921_v11 = vadd.f32 %v3909_v51, %v3903_v59  ;;  %v5163_v59 = vld [vmem:[%s7036_s7 + $0x510] sm:$0xff] }
 0x4cc   : > { %4594 = vmatpush.msrb.mxu1 %v5193_v0 }
 0x4cd   : > { %v6651_v6 = vmax.f32 %v3921_v11, 0.0 }
 0x4ce   : > { %4595 = vmatpush.msrb.mxu1 %v5192_v20  ;;  %v5162_v20 = vld [vmem:[%s7036_s7 + $0x508] sm:$0xff] }
 0x4cf   : > { %4058 = vmatmul.f32.gmra.mxu2 %v6651_v6  ;;  %4211 = vmatmul.f32.gmra.mxu1 %v6651_v6 }
 0x4d0   : > { %4596 = vmatpush.msrb.mxu1 %v5191_v37 }
 0x4d2   : > { %4597 = vmatpush.msrb.mxu1 %v5190_v13 }
 0x4d4   : > { %4598 = vmatpush.msrb.mxu1 %v5189_v40  ;;  %v4087_v40 = vld [vmem:[%s7035_s6 + $0x10] sm:$0xff] }
 0x4d6   : > { %4599 = vmatpush.msrb.mxu1 %v5188_v34  ;;  %v5227_v34 = vld [vmem:[%s7036_s7 + $0x6b8] sm:$0xff] }
 0x4d7   : > { %4429 = vmatmul.f32.vlgmr.msra.gmra.mxu1 %v6473_v9 }
 0x4d8   : > { %4600 = vmatpush.msrb.mxu1 %v5187_v26  ;;  %v5226_v26 = vld [vmem:[%s7036_s7 + $0x6b0] sm:$0xff] }
 0x4da   : > { %4601 = vmatpush.msrb.mxu1 %v5186_v14 }
 0x4dc   : > { %4602 = vmatpush.msrb.mxu1 %v5185_v24  ;;  %v5099_v24 = vld [vmem:[%s7035_s6 + $0x20] sm:$0xff] }
 0x4de   : > { %v3891_v33 = vpop.f32.mrf.mxu3  ;;  %4603 = vmatpush.msrb.mxu1 %v5184_v27  ;;  %v5225_v27 = vld [vmem:[%s7036_s7 + $0x6a8] sm:$0xff] }
 0x4df   : > { %v3900_v61 = vadd.f32 %v3891_v33, %v3234_v2  ;;  %4432 = vmatmul.f32.gmra.mxu1 %v6505_v12  ;;  %v5159_v2 = vld [vmem:[%s7036_s7 + $0x4f0] sm:$0xff]  ;;  %v5158_v33 = vld [vmem:[%s7036_s7 + $0x4e8] sm:$0xff] }
 0x4e0   : > { %4604 = vmatpush.msrb.mxu1 %v5183_v58  ;;  %v4088_v58 = vld [vmem:[%s7035_s6 + $0x18] sm:$0xf] }
 0x4e1   : > { %v3918_v53 = vadd.f32 %v3910_v48, %v3900_v61  ;;  %v5223_v61 = vld [vmem:[%s7036_s7 + $0x698] sm:$0xff] }
 0x4e2   : > { %4605 = vmatpush.msrb.mxu1 %v5182_v43  ;;  %v5157_v43 = vld [vmem:[%s7036_s7 + $0x4e0] sm:$0xff] }
 0x4e3   : > { %v6708_v38 = vmax.f32 %v3918_v53, 0.0  ;;  %v5222_v53 = vld [vmem:[%s7036_s7 + $0x690] sm:$0xff] }
 0x4e4   : > { %4606 = vmatpush.msrb.mxu1 %v5181_v31  ;;  %v5100_v31 = vld [vmem:[%s7035_s6 + $0x28] sm:$0xff] }
 0x4e5   : > { %5039 = vmatmul.msk.f32.vlgmr.msra.gmra.mxu3 %vm1477_vm5, %v6708_v38  ;;  %5097 = vmatmul.msk.f32.vlgmr.msrb.gmra.mxu2 %vm1477_vm5, %v6708_v38 }
 0x4e6   : > { %v3894_v60 = vpop.f32.mrf.mxu3  ;;  %4607 = vmatpush.msrb.mxu1 %v5180_v1  ;;  %v5221_v1 = vld [vmem:[%s7036_s7 + $0x688] sm:$0xff] }
 0x4e7   : > { %v3904_v62 = vadd.f32 %v3894_v60, %v3238_v63  ;;  %4608 = vmatmul.f32.vlgmr.msrb.gmra.mxu1 %v6355_v29  ;;  %v5155_v63 = vld [vmem:[%s7036_s7 + $0x4d0] sm:$0xff]  ;;  %v5220_v60 = vld [vmem:[%s7036_s7 + $0x680] sm:$0xff] }
 0x4e9   : > { %v3922_v49 = vadd.f32 %v3910_v48, %v3904_v62  ;;  %v5224_v48 = vld [vmem:[%s7036_s7 + $0x6a0] sm:$0xff]  ;;  %v5154_v62 = vld [vmem:[%s7036_s7 + $0x4c8] sm:$0xff] }
 0x4eb   : > { %v6719_v57 = vmax.f32 %v3922_v49, 0.0  ;;  %v5219_v49 = vld [vmem:[%s7036_s7 + $0x678] sm:$0xff] }
 0x4ed   : > { %5040 = vmatmul.msk.f32.gmra.mxu3 %vm1477_vm5, %v6719_v57  ;;  %5098 = vmatmul.msk.f32.gmra.mxu2 %vm1477_vm5, %v6719_v57 }
 0x4ef   : > { %4611 = vmatmul.f32.gmra.mxu1 %v6383_v5 }
 0x4f5   : > { %4162 = vmatmul.f32.vlgmr.msrb.gmra.mxu3 %v6355_v29  ;;  %v4085_v29 = vld [vmem:[%s7035_s6] sm:$0xff] }
 0x4fa   : > { %v4010_v23 = vpop.f32.mrf.mxu0 }
 0x4fd   : > { %4165 = vmatmul.f32.gmra.mxu3 %v6383_v5  ;;  %v5168_v5 = vld [vmem:[%s7036_s7 + $0x538] sm:$0xff] }
 0x502   : > { %v4013_v39 = vpop.f32.mrf.mxu0 }
 0x51e   : > { %v4033_v35 = vpop.f32.mrf.mxu1  ;;  %v4186_v18 = vpop.f32.mrf.mxu0 }
 0x51f   : > { %v4034_v52 = vadd.f32 %v4033_v35, %v4010_v23  ;;  %v5153_v35 = vld [vmem:[%s7036_s7 + $0x4c0] sm:$0xff]  ;;  %v5218_v23 = vld [vmem:[%s7036_s7 + $0x670] sm:$0xff] }
 0x526   : > { %v4036_v50 = vpop.f32.mrf.mxu1  ;;  %v4189_v19 = vpop.f32.mrf.mxu0 }
 0x527   : > { %v4037_v42 = vadd.f32 %v4036_v50, %v4013_v39  ;;  %v5217_v50 = vld [vmem:[%s7036_s7 + $0x668] sm:$0xff]  ;;  %v5151_v39 = vld [vmem:[%s7036_s7 + $0x4b0] sm:$0xff] }
 0x544   : > { %v4209_v54 = vpop.f32.mrf.mxu1 }
 0x54a   : > { %v4056_v7 = vpop.f32.mrf.mxu2 }
 0x54b   : > { %v4057_v30 = vadd.f32 %v4056_v7, %v4034_v52  ;;  %v5101_v7 = vld [vmem:[%s7035_s6 + $0x30] sm:$0xff]  ;;  %v5215_v52 = vld [vmem:[%s7036_s7 + $0x658] sm:$0xff] }
 0x54c   : > { %v4212_v37 = vpop.f32.mrf.mxu1 }
 0x552   : > { %v4059_v51 = vpop.f32.mrf.mxu2 }
 0x553   : > { %v4060_v4 = vadd.f32 %v4059_v51, %v4037_v42  ;;  %v5216_v51 = vld [vmem:[%s7036_s7 + $0x660] sm:$0xff]  ;;  %v5150_v42 = vld [vmem:[%s7036_s7 + $0x4a8] sm:$0xff] }
 0x568   : > { %v4079_v41 = vpop.f32.mrf.mxu3  ;;  %v4232_v10 = vpop.f32.mrf.mxu2 }
 0x569   : > { %v4080_v17 = vadd.f32 %v4079_v41, %v4057_v30  ;;  %v5152_v41 = vld [vmem:[%s7036_s7 + $0x4b8] sm:$0xff] }
 0x56a   : > { %v5102_v30 = vld [vmem:[%s7035_s6 + $0x38] sm:$0xf] }
 0x570   : > { %v4082_v8 = vpop.f32.mrf.mxu3  ;;  %v4235_v21 = vpop.f32.mrf.mxu2 }
 0x571   : > { %v4083_v45 = vadd.f32 %v4082_v8, %v4060_v4  ;;  %v5149_v4 = vld [vmem:[%s7036_s7 + $0x4a0] sm:$0xff]  ;;  %v5214_v8 = vld [vmem:[%s7036_s7 + $0x650] sm:$0xff] }
 0x573   : > { %5108 = vmatpush.msk.msra.mxu3 %vm4256_vm8, %v4083_v45  ;;  %v5148_v45 = vld [vmem:[%s7036_s7 + $0x498] sm:$0xff] }
 0x575   : > { %4319 = vmatpush.msra.mxu3 %v4080_v17  ;;  %v5213_v17 = vld [vmem:[%s7036_s7 + $0x648] sm:$0xff] }
 0x576   : > { %5109 = vmatmul.msk.f32.vlgmr.msra.gmra.mxu3 %vm4243_vm9, %v4085_v29  ;;  %v5147_v29 = vld [vmem:[%s7036_s7 + $0x490] sm:$0xff] }
 0x577   : > { %4467 = vmatpush.msrb.mxu3 %v5168_v5  ;;  %v5212_v5 = vld [vmem:[%s7036_s7 + $0x640] sm:$0xff] }
 0x578   : > { %v4163_v55 = vpop.f32.mrf.mxu3 }
 0x579   : > { %4468 = vmatpush.msrb.mxu3 %v5167_v44  ;;  %v4187_v0 = vadd.f32 %v4186_v18, %v4163_v55  ;;  %v5146_v18 = vld [vmem:[%s7036_s7 + $0x488] sm:$0xff]  ;;  %v5145_v44 = vld [vmem:[%s7036_s7 + $0x480] sm:$0xff]  ;;  %v5210_v55 = vld [vmem:[%s7036_s7 + $0x630] sm:$0xff] }
 0x57b   : > { %4469 = vmatpush.msrb.mxu3 %v5166_v32  ;;  %v4210_v13 = vadd.f32 %v4209_v54, %v4187_v0  ;;  %v5211_v54 = vld [vmem:[%s7036_s7 + $0x638] sm:$0xff]  ;;  %v5209_v32 = vld [vmem:[%s7036_s7 + $0x628] sm:$0xff]  ;;  %v5202_v0 = vld [vmem:[%s7036_s7 + $0x5f0] sm:$0xff] }
 0x57d   : > { %4470 = vmatpush.msrb.mxu3 %v5165_v47  ;;  %v4233_v14 = vadd.f32 %v4232_v10, %v4210_v13  ;;  %v5208_v10 = vld [vmem:[%s7036_s7 + $0x620] sm:$0xff]  ;;  %v5207_v47 = vld [vmem:[%s7036_s7 + $0x618] sm:$0xff] }
 0x57e   : > { %5110 = vmatmul.msk.f32.gmra.mxu3 %vm4243_vm9, %v4086_v56  ;;  %v5205_v56 = vld [vmem:[%s7036_s7 + $0x608] sm:$0xff] }
 0x57f   : > { %4471 = vmatpush.msrb.mxu3 %v5164_v28  ;;  %v5204_v28 = vld [vmem:[%s7036_s7 + $0x600] sm:$0xff] }
 0x580   : > { %v4166_v11 = vpop.f32.mrf.mxu3 }
 0x581   : > { %v4190_v3 = vadd.f32 %v4189_v19, %v4166_v11  ;;  %4472 = vmatpush.msrb.mxu3 %v5163_v59  ;;  %v5203_v59 = vld [vmem:[%s7036_s7 + $0x5f8] sm:$0xff]  ;;  %v5200_v19 = vld [vmem:[%s7036_s7 + $0x5e0] sm:$0xff] }
 0x582   : > { %v5199_v11 = vld [vmem:[%s7036_s7 + $0x5d8] sm:$0xff] }
 0x583   : > { %v4213_v16 = vadd.f32 %v4212_v37, %v4190_v3  ;;  %4473 = vmatpush.msrb.mxu3 %v5162_v20  ;;  %v5198_v20 = vld [vmem:[%s7036_s7 + $0x5d0] sm:$0xff]  ;;  %v5197_v3 = vld [vmem:[%s7036_s7 + $0x5c8] sm:$0xff]  ;;  %v5196_v37 = vld [vmem:[%s7036_s7 + $0x5c0] sm:$0xff] }
 0x585   : > { %v4236_v22 = vadd.f32 %v4235_v21, %v4213_v16  ;;  %4474 = vmatpush.msrb.mxu3 %v5161_v15 }
 0x586   : > { %5111 = vmatmul.msk.f32.gmra.mxu3 %vm4243_vm9, %v4087_v40 }
 0x587   : > { %5103 = vmatpush.msk.msra.mxu2 %vm4256_vm8, %v4236_v22  ;;  %4638 = vmatpush.msra.mxu3 %v5227_v34 }
 0x589   : > { %4275 = vmatpush.msra.mxu2 %v4233_v14  ;;  %4639 = vmatpush.msra.mxu3 %v5226_v26 }
 0x58a   : > { %5104 = vmatmul.msk.f32.vlgmr.msra.gmra.mxu2 %vm4243_vm9, %v5099_v24 }
 0x58b   : > { %4436 = vmatpush.msrb.mxu2 %v5160_v25  ;;  %4640 = vmatpush.msra.mxu3 %v5225_v27 }
 0x58d   : > { %4437 = vmatpush.msrb.mxu2 %v5159_v2  ;;  %4641 = vmatpush.msra.mxu3 %v5224_v48  ;;  %v4430_v2 = vpop.f32.mrf.mxu1  ;;  %v4407_v48 = vpop.f32.mrf.mxu0 }
 0x58e   : > { %5112 = vmatmul.msk.f32.gmra.mxu3 %vm4243_vm9, %v4088_v58 }
 0x58f   : > { %4438 = vmatpush.msrb.mxu2 %v5158_v33  ;;  %4642 = vmatpush.msra.mxu3 %v5223_v61 }
 0x591   : > { %4439 = vmatpush.msrb.mxu2 %v5157_v43  ;;  %4643 = vmatpush.msra.mxu3 %v5222_v53  ;;  %v4431_v43 = vadd.f32 %v4430_v2, %v4407_v48 }
 0x592   : > { %5105 = vmatmul.msk.f32.gmra.mxu2 %vm4243_vm9, %v5100_v31 }
 0x593   : > { %4440 = vmatpush.msrb.mxu2 %v5156_v36  ;;  %4644 = vmatpush.msra.mxu3 %v5221_v1 }
 0x595   : > { %4441 = vmatpush.msrb.mxu2 %v5155_v63  ;;  %4645 = vmatpush.msra.mxu3 %v5220_v60  ;;  %v4433_v61 = vpop.f32.mrf.mxu1 }
 0x596   : > { %5169 = vmatmul.msk.f32.vlgmr.msrb.gmra.mxu3 %vm1477_vm5, %v6708_v38 }
 0x597   : > { %4442 = vmatpush.msrb.mxu2 %v5154_v62  ;;  %4646 = vmatpush.msra.mxu3 %v5219_v49  ;;  %v5171_v62 = vld [vmem:[%s7035_s6 + $0x40] sm:$0xff]  ;;  %v5235_v49 = vld [vmem:[%s7036_s7 + $0x6f8] sm:$0xff] }
 0x599   : > { %4443 = vmatpush.msrb.mxu2 %v5153_v35  ;;  %4647 = vmatpush.msra.mxu3 %v5218_v23  ;;  %v5234_v35 = vld [vmem:[%s7036_s7 + $0x6f0] sm:$0xff]  ;;  %v5233_v23 = vld [vmem:[%s7036_s7 + $0x6e8] sm:$0xff] }
 0x59a   : > { %5106 = vmatmul.msk.f32.gmra.mxu2 %vm4243_vm9, %v5101_v7  ;;  %v5232_v7 = vld [vmem:[%s7036_s7 + $0x6e0] sm:$0xff] }
 0x59b   : > { %4444 = vmatpush.msrb.mxu2 %v5152_v41  ;;  %4648 = vmatpush.msra.mxu3 %v5217_v50  ;;  %v5172_v41 = vld [vmem:[%s7035_s6 + $0x48] sm:$0xff]  ;;  %v5231_v50 = vld [vmem:[%s7036_s7 + $0x6d8] sm:$0xff] }
 0x59d   : > { %4445 = vmatpush.msrb.mxu2 %v5151_v39  ;;  %4649 = vmatpush.msra.mxu3 %v5216_v51  ;;  %v5230_v39 = vld [vmem:[%s7036_s7 + $0x6d0] sm:$0xff]  ;;  %v5229_v51 = vld [vmem:[%s7036_s7 + $0x6c8] sm:$0xff] }
 0x59e   : > { %5170 = vmatmul.msk.f32.gmra.mxu3 %vm1477_vm5, %v6719_v57 }
 0x59f   : > { %4446 = vmatpush.msrb.mxu2 %v5150_v42  ;;  %4650 = vmatpush.msra.mxu3 %v5215_v52  ;;  %v5228_v42 = vld [vmem:[%s7036_s7 + $0x6c0] sm:$0xff]  ;;  %v5173_v52 = vld [vmem:[%s7035_s6 + $0x50] sm:$0xff] }
 0x5a1   : > { %4447 = vmatpush.msrb.mxu2 %v5149_v4  ;;  %4651 = vmatpush.msra.mxu3 %v5214_v8  ;;  %v5174_v4 = vld [vmem:[%s7035_s6 + $0x58] sm:$0xf] }
 0x5a2   : > { %5107 = vmatmul.msk.f32.gmra.mxu2 %vm4243_vm9, %v5102_v30 }
 0x5a3   : > { %4448 = vmatpush.msrb.mxu2 %v5148_v45  ;;  %4652 = vmatpush.msra.mxu3 %v5213_v17 }
 0x5a5   : > { %4449 = vmatpush.msrb.mxu2 %v5147_v29  ;;  %4653 = vmatpush.msra.mxu3 %v5212_v5 }
 0x5a6   : > { %4654 = vmatmul.f32.vlgmr.msra.gmra.mxu3 %v6622_v46 }
 0x5a7   : > { %4450 = vmatpush.msrb.mxu2 %v5146_v18 }
 0x5a9   : > { %4451 = vmatpush.msrb.mxu2 %v5145_v44  ;;  %v4609_v44 = vpop.f32.mrf.mxu1 }
 0x5aa   : > { %4452 = vmatmul.f32.vlgmr.msrb.gmra.mxu2 %v6622_v46  ;;  %v5206_v46 = vld [vmem:[%s7036_s7 + $0x610] sm:$0xff] }
 0x5ab   : > { %4615 = vmatpush.msra.mxu2 %v5211_v54 }
 0x5ad   : > { %4616 = vmatpush.msra.mxu2 %v5210_v55 }
 0x5ae   : > { %4657 = vmatmul.f32.gmra.mxu3 %v6651_v6 }
 0x5af   : > { %4617 = vmatpush.msra.mxu2 %v5209_v32 }
 0x5b1   : > { %4618 = vmatpush.msra.mxu2 %v5208_v10 }
 0x5b2   : > { %4455 = vmatmul.f32.gmra.mxu2 %v6651_v6  ;;  %v5201_v6 = vld [vmem:[%s7036_s7 + $0x5e8] sm:$0xff] }
 0x5b3   : > { %4619 = vmatpush.msra.mxu2 %v5207_v47 }
 0x5b5   : > { %4620 = vmatpush.msra.mxu2 %v5206_v46  ;;  %v4612_v46 = vpop.f32.mrf.mxu1 }
 0x5b7   : > { %4621 = vmatpush.msra.mxu2 %v5205_v56 }
 0x5b9   : > { %4622 = vmatpush.msra.mxu2 %v5204_v28 }
 0x5bb   : > { %4623 = vmatpush.msra.mxu2 %v5203_v59  ;;  %v4737_v59 = vld [vmem:[#allocation3] sm:$0x1] }
 0x5bc   : > { %5254 = vpush %v4737_v59 }
 0x5bd   : > { %4624 = vmatpush.msra.mxu2 %v5202_v0 }
 0x5bf   : > { %4625 = vmatpush.msra.mxu2 %v5201_v6 }
 0x5c1   : > { %4626 = vmatpush.msra.mxu2 %v5200_v19 }
 0x5c3   : > { %4627 = vmatpush.msra.mxu2 %v5199_v11 }
 0x5c5   : > { %4628 = vmatpush.msra.mxu2 %v5198_v20  ;;  %v5238_v20 = vld [vmem:[%s7035_s6 + $0x60] sm:$0xff] }
 0x5c7   : > { %4629 = vmatpush.msra.mxu2 %v5197_v3  ;;  %v5239_v3 = vld [vmem:[%s7035_s6 + $0x68] sm:$0xff] }
 0x5c9   : > { %4630 = vmatpush.msra.mxu2 %v5196_v37  ;;  %v5240_v37 = vld [vmem:[%s7035_s6 + $0x70] sm:$0xff] }
 0x5ca   : > { %4631 = vmatmul.f32.vlgmr.msra.gmra.mxu2 %v6473_v9  ;;  %v4410_v9 = vpop.f32.mrf.mxu0 }
 0x5d2   : > { %4634 = vmatmul.f32.gmra.mxu2 %v6505_v12  ;;  %v4434_v12 = vadd.f32 %v4433_v61, %v4410_v9 }
 0x5ed   : > { %s5255_s21 = spop %5254 }
 0x5f9   : > { %v4321_v15 = vpop.f32.mrf.mxu3 }
 0x601   : > { %v4324_v40 = vpop.f32.mrf.mxu3 }
 0x609   : > { %v4327_v22 = vpop.f32.mrf.mxu3 }
 0x60d   : > { %v4277_v13 = vpop.f32.mrf.mxu2 }
 0x60e   : > { %v4322_v16 = vadd.f32 %v4321_v15, %v4277_v13  ;;  %v5241_v15 = vld [vmem:[%s7035_s6 + $0x78] sm:$0xf] }
 0x611   : > { %v4330_v24 = vpop.f32.mrf.mxu3 }
 0x615   : > { %v4280_v21 = vpop.f32.mrf.mxu2 }
 0x616   : > { %v4325_v34 = vadd.f32 %v4324_v40, %v4280_v21 }
 0x619   : > { %v4476_v58 = vpop.f32.mrf.mxu3 }
 0x61d   : > { %v4283_v26 = vpop.f32.mrf.mxu2 }
 0x61e   : > { %v4328_v14 = vadd.f32 %v4327_v22, %v4283_v26 }
 0x621   : > { %v4479_v1 = vpop.f32.mrf.mxu3 }
 0x625   : > { %v4286_v25 = vpop.f32.mrf.mxu2 }
 0x626   : > { %v4331_v27 = vadd.f32 %v4330_v24, %v4286_v25 }
 0x629   : > { %v4655_v32 = vpop.f32.mrf.mxu3 }
 0x62d   : > { %v4453_v33 = vpop.f32.mrf.mxu2 }
 0x62e   : > { %v4454_v31 = vadd.f32 %v4453_v33, %v4431_v43 }
 0x630   : > { %v4477_v60 = vadd.f32 %v4476_v58, %v4454_v31 }
 0x635   : > { %v4456_v53 = vpop.f32.mrf.mxu2 }
 0x636   : > { %v4457_v36 = vadd.f32 %v4456_v53, %v4434_v12 }
 0x638   : > { %v4480_v63 = vadd.f32 %v4479_v1, %v4457_v36 }
 0x63a   : > { %5175 = vmatpush.msk.msrb.mxu0 %vm4256_vm8, %v4480_v63 }
 0x63c   : > { %4517 = vmatpush.msrb.mxu0 %v4477_v60 }
 0x63d   : > { %5176 = vmatmul.msk.f32.vlgmr.msrb.gmra.mxu0 %vm4243_vm9, %v5171_v62 }
 0x63e   : > { %4669 = vmatpush.msra.mxu0 %v5235_v49 }
 0x640   : > { %4670 = vmatpush.msra.mxu0 %v5234_v35 }
 0x642   : > { %4671 = vmatpush.msra.mxu0 %v5233_v23 }
 0x644   : > { %4672 = vmatpush.msra.mxu0 %v5232_v7 }
 0x645   : > { %5177 = vmatmul.msk.f32.gmra.mxu0 %vm4243_vm9, %v5172_v41 }
 0x646   : > { %4673 = vmatpush.msra.mxu0 %v5231_v50 }
 0x648   : > { %4674 = vmatpush.msra.mxu0 %v5230_v39 }
 0x64a   : > { %4675 = vmatpush.msra.mxu0 %v5229_v51 }
 0x64c   : > { %4676 = vmatpush.msra.mxu0 %v5228_v42 }
 0x64d   : > { %5178 = vmatmul.msk.f32.gmra.mxu0 %vm4243_vm9, %v5173_v52  ;;  %v4632_v18 = vpop.f32.mrf.mxu2 }
 0x64e   : > { %v4633_v28 = vadd.f32 %v4632_v18, %v4609_v44 }
 0x650   : > { %v4656_v6 = vadd.f32 %v4655_v32, %v4633_v28 }
 0x655   : > { %5179 = vmatmul.msk.f32.gmra.mxu0 %vm4243_vm9, %v5174_v4  ;;  %v4635_v10 = vpop.f32.mrf.mxu2 }
 0x656   : > { %v4636_v56 = vadd.f32 %v4635_v10, %v4612_v46 }
 0x65d   : > { %5236 = vmatmul.msk.f32.vlgmr.msra.gmra.mxu0 %vm1477_vm5, %v6708_v38  ;;  %v4658_v38 = vpop.f32.mrf.mxu3 }
 0x65e   : > { %v4659_v0 = vadd.f32 %v4658_v38, %v4636_v56 }
 0x665   : > { %5237 = vmatmul.msk.f32.gmra.mxu0 %vm1477_vm5, %v6719_v57 }
 0x6ba   : > { %v4519_v8 = vpop.f32.mrf.mxu0 }
 0x6bb   : > { %v4531_v30 = vadd.f32 %v4519_v8, %v4322_v16  ;;  %v4739_v16 = vstv %s5255_s21 }
 0x6c2   : > { %v4522_v45 = vpop.f32.mrf.mxu0 }
 0x6c3   : > { %v4532_v17 = vadd.f32 %v4522_v45, %v4325_v34 }
 0x6ca   : > { %v4525_v29 = vpop.f32.mrf.mxu0 }
 0x6cb   : > { %v4533_v5 = vadd.f32 %v4525_v29, %v4328_v14 }
 0x6d2   : > { %v4528_v54 = vpop.f32.mrf.mxu0 }
 0x6d3   : > { %v4534_v55 = vadd.f32 %v4528_v54, %v4331_v27 }
 0x6da   : > { %v4678_v47 = vpop.f32.mrf.mxu0 }
 0x6db   : > { %v4679_v11 = vadd.f32 %v4678_v47, %v4656_v6 }
 0x6e2   : > { %v4681_v57 = vpop.f32.mrf.mxu0 }
 0x6e3   : > { %v4682_v19 = vadd.f32 %v4681_v57, %v4659_v0 }
 0x6e5   : > { %5242 = vmatpush.msk.msra.mxu1 %vm4256_vm8, %v4682_v19 }
 0x6e7   : > { %4719 = vmatpush.msra.mxu1 %v4679_v11 }
 0x6e8   : > { %5243 = vmatmul.msk.f32.vlgmr.msra.gmra.mxu1 %vm4243_vm9, %v5238_v20 }
 0x6f0   : > { %5244 = vmatmul.msk.f32.gmra.mxu1 %vm4243_vm9, %v5239_v3 }
 0x6f8   : > { %5245 = vmatmul.msk.f32.gmra.mxu1 %vm4243_vm9, %v5240_v37 }
 0x700   : > { %5246 = vmatmul.msk.f32.gmra.mxu1 %vm4243_vm9, %v5241_v15 }
 0x765   : > { %v4721_v13 = vpop.f32.mrf.mxu1 }
 0x766   : > { %v4733_v40 = vadd.f32 %v4721_v13, %v4531_v30 }
 0x768   : > { %v4740_v21 = vadd.f32 %v4739_v16, %v4733_v40 }
 0x76a   : > { %v5247_v34 = vmul.f32 -1.442695, %v4740_v21 }
 0x76c   : > { %5340 = vpow2.f32 %v5247_v34 }
 0x76d   : > { %v4724_v22 = vpop.f32.mrf.mxu1 }
 0x76e   : > { %v4734_v26 = vadd.f32 %v4724_v22, %v4532_v17 }
 0x770   : > { %v4741_v14 = vadd.f32 %v4739_v16, %v4734_v26 }
 0x772   : > { %v5341_v24 = vpop.eup %5340  ;;  %v5248_v25 = vmul.f32 -1.442695, %v4741_v14 }
 0x773   : > { %v4756_v27 = vadd.f32 1.0, %v5341_v24 }
 0x774   : > { %5342 = vpow2.f32 %v5248_v25 }
 0x775   : > { %5344 = vrcp.f32 %v4756_v27  ;;  %v4727_v2 = vpop.f32.mrf.mxu1  ;;  %v4771_v1 = vand.u32 2147483648, %v4756_v27  ;;  %v4769_v60 = vand.u32 2147483647, %v4756_v27  ;;  %vm4765_vm11 = vweird.f32 %v4756_v27 }
 0x776   : > { %v4735_v48 = vadd.f32 %v4727_v2, %v4533_v5 }
 0x777   : > { %v4772_v41 = vor.u32 1.1754944e-38, %v4771_v1  ;;  %vm4770_vm14 = vcmp.eq.f32.partialorder %v4769_v60, 8.507059e+37 }
 0x778   : > { %v4742_v58 = vadd.f32 %v4739_v16, %v4735_v48 }
 0x77a   : > { %v5343_v33 = vpop.eup %5342  ;;  %v5249_v61 = vmul.f32 -1.442695, %v4742_v58 }
 0x77b   : > { %v5345_v9 = vpop.eup %5344  ;;  %v4757_v43 = vadd.f32 1.0, %v5343_v33 }
 0x77c   : > { %v4761_v12 = vmul.f32 %v5345_v9, %v4756_v27  ;;  %5346 = vpow2.f32 %v5249_v61  ;;  %vm4766_vm10 = vweird.f32 %v5345_v9 }
 0x77d   : > { %5348 = vrcp.f32 %v4757_v43  ;;  %v4730_v53 = vpop.f32.mrf.mxu1  ;;  %vm4767_vm12 = vmor %vm4765_vm11, %vm4766_vm10  ;;  %v4786_v4 = vand.u32 2147483648, %v4757_v43  ;;  %v4784_v30 = vand.u32 2147483647, %v4757_v43  ;;  %vm4780_vm0 = vweird.f32 %v4757_v43 }
 0x77e   : > { %v4762_v31 = vsub.f32 1.0, %v4761_v12  ;;  %v4736_v36 = vadd.f32 %v4730_v53, %v4534_v55  ;;  %vm4824_vm10 = vcmask 224256  }
 0x77f   : > { %v4787_v5 = vor.u32 1.1754944e-38, %v4786_v4  ;;  %vm4785_vm2 = vcmp.eq.f32.partialorder %v4784_v30, 8.507059e+37 }
 0x780   : > { %v4763_v63 = vmul.f32 %v5345_v9, %v4762_v31  ;;  %v4743_v62 = vadd.f32 %v4739_v16, %v4736_v36 }
 0x782   : > { %v5347_v49 = vpop.eup %5346  ;;  %v4764_v35 = vadd.f32 %v5345_v9, %v4763_v63  ;;  %v5250_v23 = vmul.f32 -1.442695, %v4743_v62 }
 0x783   : > { %v5349_v7 = vpop.eup %5348  ;;  %v4758_v50 = vadd.f32 1.0, %v5347_v49 }
 0x784   : > { %v4768_v39 = vsel %vm4767_vm12, %v5345_v9, %v4764_v35  ;;  %v4776_v51 = vmul.f32 %v5349_v7, %v4757_v43  ;;  %5350 = vpow2.f32 %v5250_v23  ;;  %vm4781_vm15 = vweird.f32 %v5349_v7 }
 0x785   : > { %v4773_v42 = vsel %vm4770_vm14, %v4772_v41, %v4768_v39  ;;  %5352 = vrcp.f32 %v4758_v50  ;;  %vm4782_vm1 = vmor %vm4780_vm0, %vm4781_vm15  ;;  %v4801_v10 = vand.u32 2147483648, %v4758_v50  ;;  %v4799_v46 = vand.u32 2147483647, %v4758_v50 }
 0x786   : > { %4821 = vst.msk [vmem:[%s7007_s20] sm:$0xff] %vm4820_vm13, %v4773_v42  ;;  %v4777_v52 = vsub.f32 1.0, %v4776_v51  ;;  %vm4795_vm4 = vweird.f32 %v4758_v50 }
 0x787   : > { %v4802_v38 = vor.u32 1.1754944e-38, %v4801_v10  ;;  %vm4800_vm6 = vcmp.eq.f32.partialorder %v4799_v46, 8.507059e+37 }
 0x788   : > { %v4778_v8 = vmul.f32 %v5349_v7, %v4777_v52 }
 0x78a   : > { %v5351_v45 = vpop.eup %5350  ;;  %v4779_v17 = vadd.f32 %v5349_v7, %v4778_v8 }
 0x78b   : > { %v5353_v29 = vpop.eup %5352  ;;  %v4759_v18 = vadd.f32 1.0, %v5351_v45 }
 0x78c   : > { %v4783_v44 = vsel %vm4782_vm1, %v5349_v7, %v4779_v17  ;;  %v4791_v54 = vmul.f32 %v5353_v29, %v4758_v50  ;;  %vm4796_vm3 = vweird.f32 %v5353_v29 }
 0x78d   : > { %v4788_v55 = vsel %vm4785_vm2, %v4787_v5, %v4783_v44  ;;  %5354 = vrcp.f32 %v4759_v18  ;;  %vm4797_vm5 = vmor %vm4795_vm4, %vm4796_vm3  ;;  %v4816_v19 = vand.u32 2147483648, %v4759_v18  ;;  %v4814_v20 = vand.u32 2147483647, %v4759_v18 }
 0x78e   : > { %4822 = vst.msk [vmem:[%s7007_s20 + $0x8] sm:$0xff] %vm4820_vm13, %v4788_v55  ;;  %v4792_v32 = vsub.f32 1.0, %v4791_v54  ;;  %vm4810_vm8 = vweird.f32 %v4759_v18 }
 0x78f   : > { %v4817_v37 = vor.u32 1.1754944e-38, %v4816_v19  ;;  %vm4815_vm11 = vcmp.eq.f32.partialorder %v4814_v20, 8.507059e+37 }
 0x790   : > { %v4793_v47 = vmul.f32 %v5353_v29, %v4792_v32 }
 0x792   : > { %v4794_v56 = vadd.f32 %v5353_v29, %v4793_v47 }
 0x793   : > { %v5355_v28 = vpop.eup %5354 }
 0x794   : > { %v4798_v59 = vsel %vm4797_vm5, %v5353_v29, %v4794_v56  ;;  %v4806_v0 = vmul.f32 %v5355_v28, %v4759_v18  ;;  %vm4811_vm7 = vweird.f32 %v5355_v28 }
 0x795   : > { %v4803_v57 = vsel %vm4800_vm6, %v4802_v38, %v4798_v59  ;;  %vm4812_vm9 = vmor %vm4810_vm8, %vm4811_vm7 }
 0x796   : > { %4823 = vst.msk [vmem:[%s7007_s20 + $0x10] sm:$0xff] %vm4820_vm13, %v4803_v57  ;;  %v4807_v6 = vsub.f32 1.0, %v4806_v0 }
 0x798   : > { %v4808_v11 = vmul.f32 %v5355_v28, %v4807_v6 }
 0x79a   : > { %v4809_v3 = vadd.f32 %v5355_v28, %v4808_v11 }
 0x79c   : > { %v4813_v15 = vsel %vm4812_vm9, %v5355_v28, %v4809_v3 }
 0x79d   : > { %v4818_v13 = vsel %vm4815_vm11, %v4817_v37, %v4813_v15 }
 0x79e   : > { %4825 = vst.msk [vmem:[%s7007_s20 + $0x18] sm:$0xf] %vm4824_vm10, %v4818_v13 }
 0x79f PF: > { %p23_p3 = scmp.ge.s32.totalorder %s5682_s26, 4   ;;  %s7045_s11 = smov %s5552_s12 }
 0x7a0   : > { %s7046_s12 = smov %s5556_s13  ;;  %s7047_s13 = smov %s5694_s27 }
 0x7a1   : > { %s7048_s14 = smov %s5682_s26  ;;  %25 = sbr.rel (!%p23_p3) target bundleno = 8 (0x8), region = 142 }
 0x7a6   :  { %4847 = vsyncpa [#allocation5], 1 }
 0x7a7   :  { %4849 = vsyncpa [#allocation5 + $0x1], 1 }
 0x7a8   :  { %4850 = vsyncpa [#allocation7], 1 }
 0x7a9   :  { %4851 = vsyncpa [#allocation10], 1 }

</bundles_post_ra>
